<compile_context>
chip_gen: v7x
topology: tpu7x:2x2x1
jax: 0.10.0
libtpu: 0.0.40
codegen_flags: <defaults>
</compile_context>

<pallas_src>
import jax
import jax.numpy as jnp
from jax.experimental import pallas as pl
from jax.experimental.pallas import tpu as pltpu


_LANES = 128   # Cout tile = lane width of a vreg / MXU result


def _round_up(x, m):
    return (x + m - 1) // m * m


def _pick_row_tile(H, wp, cin_p, ct, x_bytes, out_bytes):
    """Output rows per grid step, sized so the per-step VMEM working set
    (double-buffered x/out blocks + f32 accumulator + per-tap matmul result)
    stays around <= 10 MiB."""
    budget = 10 * 1024 * 1024
    # Fixed cost of the 3 halo rows (x double-buffered + per-tap f32 result).
    halo_fixed = wp * (3 * cin_p * x_bytes * 2 + 3 * ct * 4)
    # Per output row: x (2 bufs), out (2 bufs), f32 acc + f32 tap result.
    per_row = wp * (2 * cin_p * x_bytes + (2 * out_bytes + 8) * ct)
    th = (budget - halo_fixed) // max(per_row, 1)
    th = max(1, min(64, th))
    if th >= 8:
        th = (th // 8) * 8
    return int(min(th, H))


def _conv3x3_kernel(x_ref, w_ref, b_ref, o_ref):
    # x_ref : (TH+3, Wp, Cin_p)  bf16  padded row window (+2 conv halo, +1 slack row)
    # w_ref : (9, Cin_p, CT)     bf16  tap-major (ky*3 + kx) weights
    # b_ref : (1, CT)            f32   bias
    # o_ref : (TH, Wp, CT)             output tile (cols >= W are scratch, cropped by caller)
    th, wp, ct = o_ref.shape
    cin = x_ref.shape[-1]
    rows_out = th * wp

    # Flatten the padded window once.  Wp % 16 == 0, so collapsing the leading
    # dims is layout-preserving (no per-tap relayout).
    xf = x_ref[...].reshape(-1, cin)                     # ((TH+3)*Wp, Cin_p)

    acc = None
    for ky in range(3):
        for kx in range(3):
            # One MXU matmul per tap on the *unshifted* operand (bf16 in, f32 out)...
            y = jnp.dot(xf, w_ref[ky * 3 + kx],
                        preferred_element_type=jnp.float32)   # ((TH+3)*Wp, CT)
            # ...then apply the (ky, kx) shift on the f32 result: a static
            # sublane-offset slice (XLU work, overlapped with the MXU).
            off = ky * wp + kx
            part = y[off:off + rows_out]
            acc = part if acc is None else acc + part

    acc = acc + b_ref[...]                               # f32 bias broadcast over rows
    o_ref[...] = acc.reshape(th, wp, ct).astype(o_ref.dtype)


def conv3x3(x_nchw, weight, bias, use_refl=True, compute_dtype=jnp.bfloat16):
    """Forward pass of Conv3x3.

    x_nchw : (N, Cin, H, W)
    weight : (Cout, Cin, 3, 3)   (PyTorch Conv2d layout)
    bias   : (Cout,)
    returns: (N, Cout, H, W)
    """
    N, Cin, H, W = x_nchw.shape
    Cout = weight.shape[0]
    out_dtype = x_nchw.dtype

    ct = _LANES
    cout_p = _round_up(Cout, ct)       # lane-dense output stores
    cin_p = _round_up(Cin, 8)
    wp = _round_up(W + 2, 16)          # keeps the in-kernel flatten layout-preserving (bf16)

    x_bytes = jnp.dtype(compute_dtype).itemsize
    out_bytes = jnp.dtype(out_dtype).itemsize
    th = _pick_row_tile(H, wp, cin_p, ct, x_bytes, out_bytes)
    n_row_tiles = -(-H // th)
    n_cout_tiles = cout_p // ct
    rows_padded = n_row_tiles * th + 3   # +2 conv halo, +1 slack row for the flat shifts

    # ---- layout glue (plain JAX, fused under jit): NCHW -> NHWC, pad, window ----
    # TODO(synk): the reflection pad + halo row-windowing still run as XLA glue
    # (one extra HBM pass); folding them into the kernel needs manual halo DMA
    # from an ANY-space ref.  Likewise, for very small Cin an im2col-in-VMEM
    # (K = 9*Cin) or a VPU formulation would raise MXU utilization further.
    x = jnp.transpose(x_nchw, (0, 2, 3, 1))                        # (N, H, W, Cin)
    mode = "reflect" if use_refl else "constant"
    xp = jnp.pad(x, ((0, 0), (1, 1), (1, 1), (0, 0)), mode=mode)   # (N, H+2, W+2, Cin)
    xp = jnp.pad(xp, ((0, 0),
                      (0, rows_padded - (H + 2)),
                      (0, wp - (W + 2)),
                      (0, cin_p - Cin)))
    xp = xp.astype(compute_dtype)
    # Overlapping row windows (3-row halo) materialized in HBM so plain Blocked
    # BlockSpecs (which cannot overlap) are used safely; batch and row-tile axes
    # are folded into a single leading grid axis.
    xw = jnp.stack([xp[:, t * th: t * th + th + 3] for t in range(n_row_tiles)],
                   axis=1)                                         # (N, T, TH+3, Wp, Cin_p)
    xw = xw.reshape(N * n_row_tiles, th + 3, wp, cin_p)

    # (Cout, Cin, 3, 3) -> (9, Cin_p, Cout_p), tap-major, zero-padded channels.
    w = jnp.transpose(weight, (2, 3, 1, 0)).reshape(9, Cin, Cout)
    w = jnp.pad(w, ((0, 0), (0, cin_p - Cin), (0, cout_p - Cout))).astype(compute_dtype)
    b = jnp.pad(bias, (0, cout_p - Cout)).reshape(1, cout_p).astype(jnp.float32)

    grid = (N * n_row_tiles, n_cout_tiles)
    out_win = pl.pallas_call(
        _conv3x3_kernel,
        out_shape=jax.ShapeDtypeStruct((N * n_row_tiles, th, wp, cout_p), out_dtype),
        grid_spec=pltpu.PrefetchScalarGridSpec(
            num_scalar_prefetch=0,
            grid=grid,
            in_specs=[
                pl.BlockSpec((None, th + 3, wp, cin_p), lambda g, c: (g, 0, 0, 0)),
                pl.BlockSpec((9, cin_p, ct), lambda g, c: (0, 0, c)),
                pl.BlockSpec((1, ct), lambda g, c: (0, c)),
            ],
            out_specs=pl.BlockSpec((None, th, wp, ct), lambda g, c: (g, 0, 0, c)),
        ),
        compiler_params=pltpu.CompilerParams(
            dimension_semantics=("parallel", "parallel")),
    )(xw, w, b)

    # Crop row/column/channel alignment padding and go back to NCHW.
    out = out_win.reshape(N, n_row_tiles * th, wp, cout_p)[:, :H, :W, :Cout]
    return jnp.transpose(out, (0, 3, 1, 2)).astype(out_dtype)


if __name__ == "__main__":
    N, Cin, Cout, H, W = 2, 4, 8, 16, 16

    key = jax.random.PRNGKey(0)
    k_x, k_w, k_b = jax.random.split(key, 3)

    x = jax.random.normal(k_x, (N, Cin, H, W), dtype=jnp.float32)
    fan_in = Cin * 3 * 3
    bound = 1.0 / float(fan_in) ** 0.5
    weight = jax.random.uniform(k_w, (Cout, Cin, 3, 3),
                                minval=-bound, maxval=bound, dtype=jnp.float32)
    bias = jax.random.uniform(k_b, (Cout,),
                              minval=-bound, maxval=bound, dtype=jnp.float32)

    conv = jax.jit(conv3x3, static_argnames=("use_refl", "compute_dtype"))
    out = conv(x, weight, bias, use_refl=True)
    out = jax.block_until_ready(out)
    assert out.shape == (N, Cout, H, W)

    # Reference: same bf16 inputs + f32 accumulation via XLA's native conv.
    x_pad_ref = jnp.pad(jnp.transpose(x, (0, 2, 3, 1)),
                        ((0, 0), (1, 1), (1, 1), (0, 0)),
                        mode="reflect").astype(jnp.bfloat16)
    w_hwio = jnp.transpose(weight, (2, 3, 1, 0)).astype(jnp.bfloat16)
    ref = jax.lax.conv_general_dilated(
        x_pad_ref, w_hwio, window_strides=(1, 1), padding="VALID",
        dimension_numbers=("NHWC", "HWIO", "NHWC"),
        preferred_element_type=jnp.float32)
    ref = jnp.transpose(ref + bias[None, None, None, :], (0, 3, 1, 2)).astype(x.dtype)

    max_err = float(jnp.max(jnp.abs(out - ref)))
    assert jnp.allclose(out, ref, atol=1e-2, rtol=1e-2), \
        f"mismatch vs XLA conv (max abs err {max_err})"

    print("KERNEL_OK")
</pallas_src>

<mosaic_0001>
module attributes {stable_mosaic.version = 11 : i64} {
  func.func @_conv3x3_kernel(%arg0: i32, %arg1: i32, %arg2: memref<1x19x32x8xbf16, #tpu.memory_space<vmem>>, %arg3: memref<9x8x128xbf16, #tpu.memory_space<vmem>>, %arg4: memref<1x128xf32, #tpu.memory_space<vmem>>, %arg5: memref<1x16x32x128xf32, #tpu.memory_space<vmem>>) attributes {dimension_semantics = [#tpu.dimension_semantics<parallel>, #tpu.dimension_semantics<parallel>], iteration_bounds = array<i64: 2, 1>, scalar_prefetch = 0 : i64, scratch_operands = 0 : i64, tpu.core_type = #tpu.core_type<tc>, window_params = [{transform_indices = @transform_0, window_bounds = array<i64: 1, 19, 32, 8>}, {transform_indices = @transform_1, window_bounds = array<i64: 9, 8, 128>}, {transform_indices = @transform_2, window_bounds = array<i64: 1, 128>}, {transform_indices = @transform_3, window_bounds = array<i64: 1, 16, 32, 128>}]} {
    %c0 = arith.constant 0 : index
    %c0_0 = arith.constant 0 : index
    %c0_1 = arith.constant 0 : index
    %c0_2 = arith.constant 0 : index
    %0 = vector.load %arg2[%c0, %c0_0, %c0_1, %c0_2] : memref<1x19x32x8xbf16, #tpu.memory_space<vmem>>, vector<1x19x32x8xbf16>
    %1 = vector.shape_cast %0 : vector<1x19x32x8xbf16> to vector<19x32x8xbf16>
    %2 = vector.shape_cast %1 : vector<19x32x8xbf16> to vector<608x8xbf16>
    %c0_3 = arith.constant 0 : index
    %c0_4 = arith.constant 0 : index
    %c0_5 = arith.constant 0 : index
    %3 = vector.load %arg3[%c0_3, %c0_4, %c0_5] : memref<9x8x128xbf16, #tpu.memory_space<vmem>>, vector<1x8x128xbf16>
    %4 = vector.shape_cast %3 : vector<1x8x128xbf16> to vector<8x128xbf16>
    %cst = arith.constant dense<0.000000e+00> : vector<608x128xf32>
    %5 = tpu.matmul %2, %4, %cst {dimension_numbers = #tpu.dot_dimension_numbers<[1], [0], [0], [1], [0, 0, 1, 1], [], []>} : vector<608x8xbf16>, vector<8x128xbf16>, vector<608x128xf32> -> vector<608x128xf32>
    %6 = vector.extract_strided_slice %5 {offsets = [0, 0], sizes = [512, 128], strides = [1, 1]} : vector<608x128xf32> to vector<512x128xf32>
    %c1 = arith.constant 1 : index
    %c0_6 = arith.constant 0 : index
    %c0_7 = arith.constant 0 : index
    %7 = vector.load %arg3[%c1, %c0_6, %c0_7] : memref<9x8x128xbf16, #tpu.memory_space<vmem>>, vector<1x8x128xbf16>
    %8 = vector.shape_cast %7 : vector<1x8x128xbf16> to vector<8x128xbf16>
    %cst_8 = arith.constant dense<0.000000e+00> : vector<608x128xf32>
    %9 = tpu.matmul %2, %8, %cst_8 {dimension_numbers = #tpu.dot_dimension_numbers<[1], [0], [0], [1], [0, 0, 1, 1], [], []>} : vector<608x8xbf16>, vector<8x128xbf16>, vector<608x128xf32> -> vector<608x128xf32>
    %10 = vector.extract_strided_slice %9 {offsets = [1, 0], sizes = [512, 128], strides = [1, 1]} : vector<608x128xf32> to vector<512x128xf32>
    %11 = arith.addf %6, %10 : vector<512x128xf32>
    %c2 = arith.constant 2 : index
    %c0_9 = arith.constant 0 : index
    %c0_10 = arith.constant 0 : index
    %12 = vector.load %arg3[%c2, %c0_9, %c0_10] : memref<9x8x128xbf16, #tpu.memory_space<vmem>>, vector<1x8x128xbf16>
    %13 = vector.shape_cast %12 : vector<1x8x128xbf16> to vector<8x128xbf16>
    %cst_11 = arith.constant dense<0.000000e+00> : vector<608x128xf32>
    %14 = tpu.matmul %2, %13, %cst_11 {dimension_numbers = #tpu.dot_dimension_numbers<[1], [0], [0], [1], [0, 0, 1, 1], [], []>} : vector<608x8xbf16>, vector<8x128xbf16>, vector<608x128xf32> -> vector<608x128xf32>
    %15 = vector.extract_strided_slice %14 {offsets = [2, 0], sizes = [512, 128], strides = [1, 1]} : vector<608x128xf32> to vector<512x128xf32>
    %16 = arith.addf %11, %15 : vector<512x128xf32>
    %c3 = arith.constant 3 : index
    %c0_12 = arith.constant 0 : index
    %c0_13 = arith.constant 0 : index
    %17 = vector.load %arg3[%c3, %c0_12, %c0_13] : memref<9x8x128xbf16, #tpu.memory_space<vmem>>, vector<1x8x128xbf16>
    %18 = vector.shape_cast %17 : vector<1x8x128xbf16> to vector<8x128xbf16>
    %cst_14 = arith.constant dense<0.000000e+00> : vector<608x128xf32>
    %19 = tpu.matmul %2, %18, %cst_14 {dimension_numbers = #tpu.dot_dimension_numbers<[1], [0], [0], [1], [0, 0, 1, 1], [], []>} : vector<608x8xbf16>, vector<8x128xbf16>, vector<608x128xf32> -> vector<608x128xf32>
    %20 = vector.extract_strided_slice %19 {offsets = [32, 0], sizes = [512, 128], strides = [1, 1]} : vector<608x128xf32> to vector<512x128xf32>
    %21 = arith.addf %16, %20 : vector<512x128xf32>
    %c4 = arith.constant 4 : index
    %c0_15 = arith.constant 0 : index
    %c0_16 = arith.constant 0 : index
    %22 = vector.load %arg3[%c4, %c0_15, %c0_16] : memref<9x8x128xbf16, #tpu.memory_space<vmem>>, vector<1x8x128xbf16>
    %23 = vector.shape_cast %22 : vector<1x8x128xbf16> to vector<8x128xbf16>
    %cst_17 = arith.constant dense<0.000000e+00> : vector<608x128xf32>
    %24 = tpu.matmul %2, %23, %cst_17 {dimension_numbers = #tpu.dot_dimension_numbers<[1], [0], [0], [1], [0, 0, 1, 1], [], []>} : vector<608x8xbf16>, vector<8x128xbf16>, vector<608x128xf32> -> vector<608x128xf32>
    %25 = vector.extract_strided_slice %24 {offsets = [33, 0], sizes = [512, 128], strides = [1, 1]} : vector<608x128xf32> to vector<512x128xf32>
    %26 = arith.addf %21, %25 : vector<512x128xf32>
    %c5 = arith.constant 5 : index
    %c0_18 = arith.constant 0 : index
    %c0_19 = arith.constant 0 : index
    %27 = vector.load %arg3[%c5, %c0_18, %c0_19] : memref<9x8x128xbf16, #tpu.memory_space<vmem>>, vector<1x8x128xbf16>
    %28 = vector.shape_cast %27 : vector<1x8x128xbf16> to vector<8x128xbf16>
    %cst_20 = arith.constant dense<0.000000e+00> : vector<608x128xf32>
    %29 = tpu.matmul %2, %28, %cst_20 {dimension_numbers = #tpu.dot_dimension_numbers<[1], [0], [0], [1], [0, 0, 1, 1], [], []>} : vector<608x8xbf16>, vector<8x128xbf16>, vector<608x128xf32> -> vector<608x128xf32>
    %30 = vector.extract_strided_slice %29 {offsets = [34, 0], sizes = [512, 128], strides = [1, 1]} : vector<608x128xf32> to vector<512x128xf32>
    %31 = arith.addf %26, %30 : vector<512x128xf32>
    %c6 = arith.constant 6 : index
    %c0_21 = arith.constant 0 : index
    %c0_22 = arith.constant 0 : index
    %32 = vector.load %arg3[%c6, %c0_21, %c0_22] : memref<9x8x128xbf16, #tpu.memory_space<vmem>>, vector<1x8x128xbf16>
    %33 = vector.shape_cast %32 : vector<1x8x128xbf16> to vector<8x128xbf16>
    %cst_23 = arith.constant dense<0.000000e+00> : vector<608x128xf32>
    %34 = tpu.matmul %2, %33, %cst_23 {dimension_numbers = #tpu.dot_dimension_numbers<[1], [0], [0], [1], [0, 0, 1, 1], [], []>} : vector<608x8xbf16>, vector<8x128xbf16>, vector<608x128xf32> -> vector<608x128xf32>
    %35 = vector.extract_strided_slice %34 {offsets = [64, 0], sizes = [512, 128], strides = [1, 1]} : vector<608x128xf32> to vector<512x128xf32>
    %36 = arith.addf %31, %35 : vector<512x128xf32>
    %c7 = arith.constant 7 : index
    %c0_24 = arith.constant 0 : index
    %c0_25 = arith.constant 0 : index
    %37 = vector.load %arg3[%c7, %c0_24, %c0_25] : memref<9x8x128xbf16, #tpu.memory_space<vmem>>, vector<1x8x128xbf16>
    %38 = vector.shape_cast %37 : vector<1x8x128xbf16> to vector<8x128xbf16>
    %cst_26 = arith.constant dense<0.000000e+00> : vector<608x128xf32>
    %39 = tpu.matmul %2, %38, %cst_26 {dimension_numbers = #tpu.dot_dimension_numbers<[1], [0], [0], [1], [0, 0, 1, 1], [], []>} : vector<608x8xbf16>, vector<8x128xbf16>, vector<608x128xf32> -> vector<608x128xf32>
    %40 = vector.extract_strided_slice %39 {offsets = [65, 0], sizes = [512, 128], strides = [1, 1]} : vector<608x128xf32> to vector<512x128xf32>
    %41 = arith.addf %36, %40 : vector<512x128xf32>
    %c8 = arith.constant 8 : index
    %c0_27 = arith.constant 0 : index
    %c0_28 = arith.constant 0 : index
    %42 = vector.load %arg3[%c8, %c0_27, %c0_28] : memref<9x8x128xbf16, #tpu.memory_space<vmem>>, vector<1x8x128xbf16>
    %43 = vector.shape_cast %42 : vector<1x8x128xbf16> to vector<8x128xbf16>
    %cst_29 = arith.constant dense<0.000000e+00> : vector<608x128xf32>
    %44 = tpu.matmul %2, %43, %cst_29 {dimension_numbers = #tpu.dot_dimension_numbers<[1], [0], [0], [1], [0, 0, 1, 1], [], []>} : vector<608x8xbf16>, vector<8x128xbf16>, vector<608x128xf32> -> vector<608x128xf32>
    %45 = vector.extract_strided_slice %44 {offsets = [66, 0], sizes = [512, 128], strides = [1, 1]} : vector<608x128xf32> to vector<512x128xf32>
    %46 = arith.addf %41, %45 : vector<512x128xf32>
    %c0_30 = arith.constant 0 : index
    %c0_31 = arith.constant 0 : index
    %47 = vector.load %arg4[%c0_30, %c0_31] : memref<1x128xf32, #tpu.memory_space<vmem>>, vector<1x128xf32>
    %48 = vector.broadcast %47 : vector<1x128xf32> to vector<512x128xf32>
    %49 = arith.addf %46, %48 : vector<512x128xf32>
    %50 = vector.shape_cast %49 : vector<512x128xf32> to vector<16x32x128xf32>
    %c0_32 = arith.constant 0 : index
    %c0_33 = arith.constant 0 : index
    %c0_34 = arith.constant 0 : index
    %c0_35 = arith.constant 0 : index
    %51 = vector.load %arg5[%c0_32, %c0_33, %c0_34, %c0_35] : memref<1x16x32x128xf32, #tpu.memory_space<vmem>>, vector<1x16x32x128xf32>
    %52 = vector.shape_cast %51 : vector<1x16x32x128xf32> to vector<16x32x128xf32>
    %53 = vector.shape_cast %50 : vector<16x32x128xf32> to vector<1x16x32x128xf32>
    tpu.vector_store %arg5[%c0_32, %c0_33, %c0_34, %c0_35], %53 {strides = array<i32>} : memref<1x16x32x128xf32, #tpu.memory_space<vmem>>, vector<1x16x32x128xf32>,
    return
  }
  func.func @transform_0(%arg0: i32, %arg1: i32) -> (i32, i32, i32, i32) {
    %c0_i32 = arith.constant 0 : i32
    %c0_i32_0 = arith.constant 0 : i32
    %c0_i32_1 = arith.constant 0 : i32
    %c0_i32_2 = arith.constant 0 : i32
    return %arg0, %c0_i32, %c0_i32_0, %c0_i32_1 : i32, i32, i32, i32
  }
  func.func @transform_1(%arg0: i32, %arg1: i32) -> (i32, i32, i32) {
    %c0_i32 = arith.constant 0 : i32
    %c0_i32_0 = arith.constant 0 : i32
    %c0_i32_1 = arith.constant 0 : i32
    return %c0_i32, %c0_i32_0, %arg1 : i32, i32, i32
  }
  func.func @transform_2(%arg0: i32, %arg1: i32) -> (i32, i32) {
    %c0_i32 = arith.constant 0 : i32
    %c0_i32_0 = arith.constant 0 : i32
    return %c0_i32, %arg1 : i32, i32
  }
  func.func @transform_3(%arg0: i32, %arg1: i32) -> (i32, i32, i32, i32) {
    %c0_i32 = arith.constant 0 : i32
    %c0_i32_0 = arith.constant 0 : i32
    %c0_i32_1 = arith.constant 0 : i32
    return %arg0, %c0_i32, %c0_i32_0, %arg1 : i32, i32, i32, i32
  }
}

</mosaic_0001>

<bundles_post_ra>
// kernel: conv3x3.1
= control target key start
LH: loop header
LB: loop body
LE: loop exit
PB: predicated region body
PF: predicated region fallthrough
CT: control target
= control target key end

     0   :  { %s7880_s12 = smov 0   ;;  %s7882_s13 = smov 0   ;;  %s10072_s0 = inlined_call_operand.vmem [shape: bf16[2,19,32,8], index: 0, kind: input, shape index: {}]   ;;  %s10073_s1 = inlined_call_operand.vmem [shape: bf16[9,8,128], index: 1, kind: input, shape index: {}]   ;;  %s10074_s2 = inlined_call_operand.vmem [shape: f32[1,128], index: 2, kind: input, shape index: {}]   ;;  %s10075_s3 = inlined_call_operand.vmem [shape: f32[2,16,32,128], index: 3, kind: output, shape index: {}]  }
   0x1   :  { %s7884_s14 = smov 0  }
   0x2 LB: > { %s25_s15 = sadd.s32 1, %s7854_s13  ;;  %p5888_p0 = scmp.ge.s32.totalorder %s7858_s14, 1  ;;  %s7858_s14 = sphi %s7884_s14, %s13_s14   ;;  %s7854_s13 = sphi %s7882_s13, %s10317_s13   ;;  %s7850_s12 = sphi %s7880_s12, %s10316_s12  }
   0x3   : > { %p27_p1 = scmp.ge.s32.totalorder %s25_s15, 2  ;;  %p168_p2 = scmp.lt.s32.totalorder %s7858_s14, 3 }
   0x5   : > { %s10319_s15 = smov (%p27_p1, %s25_s15), 0  ;;  %p169_p3 = pnand %p5888_p0, %p168_p2 }
   0x7   : > { %172 = sbr.rel (%p169_p3) target bundleno = 923 (0x39b), region = 32 }
   0xe   : > { %v299_v0 = vld [vmem:[%s10073_s1] sm:$0xf]  ;;  %vm605_vm0 = vcmask 1043456   ;;  %p202_p4 = scmp.lt.s32.totalorder %s7850_s12, 1  ;;  %v6007_v2 = vld [vmem:[%s10073_s1 + $0x8] sm:$0xf] }
   0xf   : > { %7723 = vmatprep.subr.msk.bf16.mxu0 %vm605_vm0, %v299_v0  ;;  %7724 = vmatprep.subr.msk.bf16.mxu1 %vm605_vm0, %v299_v0  ;;  %v607_v1 = vsel %vm605_vm0, %v299_v0, 0  ;;  %v5968_v3 = vld [vmem:[%s10073_s1 + $0x4] sm:$0xf]  ;;  %vm490_vm1 = vcmask 64512   ;;  %v1591_v7 = vsel %vm605_vm0, %v6007_v2, 0  ;;  %vm1330_vm2 = vcmask 1046528  }
  0x10   : > { %6636 = vmatpush3.bf16.msra.mxu0 %v607_v1  ;;  %7338 = vmatpush3.bf16.msra.mxu1 %v607_v1  ;;  %s10321_s12 = smov (!%p202_p4, %s7850_s12), 1  ;;  %v7935_v8 = vld [vmem:[%s10073_s1 + $0x10] sm:$0xf]  ;;  %v937_v10 = vsel %vm605_vm0, %v5968_v3, 0  ;;  %v7946_v11 = vld [vmem:[%s10073_s1 + $0xc] sm:$0xf] }
  0x11   : > { %7726 = vmatprep.subr.msk.bf16.mxu0 %vm605_vm0, %v6007_v2  ;;  %7725 = vmatprep.subr.msk.bf16.mxu1 %vm605_vm0, %v5968_v3  ;;  %s7733_s22 = smul.u32 304, %s10321_s12  ;;  %v2639_v46 = vsel %vm605_vm0, %v7935_v8, 0  ;;  %v2245_v47 = vsel %vm605_vm0, %v7946_v11, 0  ;;  %v8163_v48 = vld [vmem:[%s10073_s1 + $0x14] sm:$0xf]  ;;  %vm1984_vm3 = vcmask 1045504  }
  0x12   : > { %v8172_v49 = vld [vmem:[%s10073_s1 + $0x18] sm:$0xf]  ;;  %v3292_v58 = vsel %vm605_vm0, %v8163_v48, 0  ;;  %s6283_s11 = sshll.u32 %s10321_s12, 9 }
  0x13   : > { %s7918_s25 = scalar_lea.vmem %s10072_s0, %s7733_s22  ;;  %v3945_v62 = vsel %vm605_vm0, %v8172_v49, 0  ;;  %s9748_s19 = scalar_lea.vmem %s10075_s3, %s6283_s11 }
  0x14   : > { %v7921_v4 = vld [vmem:[%s7918_s25] sm:$0xff]   ;;  %v7929_v6 = vld [vmem:[%s7918_s25 + $0x8] sm:$0xff]   ;;  %v7951_v12 = vld [vmem:[%s7918_s25 + $0x10] sm:$0xff]  }
  0x15   : > { %v7924_v5 = vld [vmem:[%s7918_s25 + $0xa0] sm:$0xff]   ;;  %6637 = vmatprep.mubr.msk.bf16.mxu0 %vm490_vm1, %v7921_v4  ;;  %v7940_v9 = vld [vmem:[%s7918_s25 + $0xa8] sm:$0xff]   ;;  %v7956_v13 = vld [vmem:[%s7918_s25 + $0xb0] sm:$0xff]  }
  0x16   : > { %6677 = vmatprep.mubr.msk.bf16.mxu1 %vm490_vm1, %v7924_v5  ;;  %6638 = vmatmul.mubr.msk.bf16.vlgmr.msra.gmra.mrb[0].mxu0 %vm490_vm1, %v7929_v6  ;;  %v7963_v14 = vld [vmem:[%s7918_s25 + $0x18] sm:$0xff]   ;;  %v7973_v16 = vld [vmem:[%s7918_s25 + $0x20] sm:$0xff]   ;;  %v7987_v18 = vld [vmem:[%s7918_s25 + $0x28] sm:$0xff]  }
  0x17   : > { %6678 = vmatmul.mubr.msk.bf16.vlgmr.msra.gmra.mrb[0].mxu1 %vm490_vm1, %v7940_v9  ;;  %6792 = vmatpush3.bf16.msra.mxu0 %v1591_v7  ;;  %v7968_v15 = vld [vmem:[%s7918_s25 + $0xb8] sm:$0xff]   ;;  %v7976_v17 = vld [vmem:[%s7918_s25 + $0xc0] sm:$0xff]   ;;  %v7990_v19 = vld [vmem:[%s7918_s25 + $0xc8] sm:$0xff]  }
  0x18   : > { %6714 = vmatpush3.bf16.msra.mxu1 %v937_v10  ;;  %6641 = vmatprep.mubr.msk.bf16.mxu0 %vm490_vm1, %v7951_v12  ;;  %v7993_v20 = vld [vmem:[%s7918_s25 + $0x30] sm:$0xff]   ;;  %v8007_v22 = vld [vmem:[%s7918_s25 + $0x38] sm:$0xff]   ;;  %v8013_v24 = vld [vmem:[%s7918_s25 + $0x40] sm:$0xff]  }
  0x19   : > { %6681 = vmatprep.mubr.msk.bf16.mxu1 %vm490_vm1, %v7956_v13  ;;  %7728 = vmatprep.subr.msk.bf16.mxu1 %vm605_vm0, %v7935_v8  ;;  %v7996_v21 = vld [vmem:[%s7918_s25 + $0xd0] sm:$0xff]   ;;  %v8010_v23 = vld [vmem:[%s7918_s25 + $0xd8] sm:$0xff]   ;;  %v8016_v25 = vld [vmem:[%s7918_s25 + $0xe0] sm:$0xff]  }
  0x1a   : > { %7727 = vmatprep.subr.msk.bf16.mxu0 %vm605_vm0, %v7946_v11  ;;  %v8027_v26 = vld [vmem:[%s7918_s25 + $0x48] sm:$0xff]   ;;  %v8033_v28 = vld [vmem:[%s7918_s25 + $0x50] sm:$0xff]   ;;  %v8047_v30 = vld [vmem:[%s7918_s25 + $0x58] sm:$0xff]  }
  0x1b   : > { %v8030_v27 = vld [vmem:[%s7918_s25 + $0xe8] sm:$0xff]   ;;  %v8036_v29 = vld [vmem:[%s7918_s25 + $0xf0] sm:$0xff]   ;;  %v8050_v31 = vld [vmem:[%s7918_s25 + $0xf8] sm:$0xff]  }
  0x1c   : > { %v8053_v32 = vld [vmem:[%s7918_s25 + $0x60] sm:$0xff]   ;;  %v8067_v34 = vld [vmem:[%s7918_s25 + $0x68] sm:$0xff]   ;;  %v8073_v36 = vld [vmem:[%s7918_s25 + $0x70] sm:$0xff]  }
  0x1d   : > { %v8056_v33 = vld [vmem:[%s7918_s25 + $0x100] sm:$0xff]   ;;  %v8070_v35 = vld [vmem:[%s7918_s25 + $0x108] sm:$0xff]   ;;  %v8076_v37 = vld [vmem:[%s7918_s25 + $0x110] sm:$0xff]  }
  0x1e   : > { %6642 = vmatmul.mubr.msk.bf16.gmra.mrb[4].mxu0 %vm490_vm1, %v7963_v14  ;;  %v8087_v38 = vld [vmem:[%s7918_s25 + $0x78] sm:$0xff]   ;;  %v8093_v40 = vld [vmem:[%s7918_s25 + $0x80] sm:$0xff]   ;;  %v8107_v42 = vld [vmem:[%s7918_s25 + $0x88] sm:$0xff]  }
  0x1f   : > { %6682 = vmatmul.mubr.msk.bf16.gmra.mrb[4].mxu1 %vm490_vm1, %v7968_v15  ;;  %6645 = vmatprep.mubr.msk.bf16.mxu0 %vm490_vm1, %v7973_v16  ;;  %v8090_v39 = vld [vmem:[%s7918_s25 + $0x118] sm:$0xff]   ;;  %v8096_v41 = vld [vmem:[%s7918_s25 + $0x120] sm:$0xff]   ;;  %v8110_v43 = vld [vmem:[%s7918_s25 + $0x128] sm:$0xff]  }
  0x20   : > { %6685 = vmatprep.mubr.msk.bf16.mxu1 %vm490_vm1, %v7976_v17  ;;  %v8113_v44 = vld [vmem:[%s7918_s25 + $0x90] sm:$0xff]   ;;  %v8124_v45 = vld [vmem:[%s7918_s25 + $0x98] sm:$0xff]  }
  0x26   : > { %6646 = vmatmul.mubr.msk.bf16.gmra.mrb[8].mxu0 %vm490_vm1, %v7987_v18 }
  0x27   : > { %6686 = vmatmul.mubr.msk.bf16.gmra.mrb[8].mxu1 %vm490_vm1, %v7990_v19  ;;  %6649 = vmatprep.mubr.msk.bf16.mxu0 %vm490_vm1, %v7993_v20 }
  0x28   : > { %6689 = vmatprep.mubr.msk.bf16.mxu1 %vm490_vm1, %v7996_v21 }
  0x2e   : > { %6650 = vmatmul.mubr.msk.bf16.gmra.mrb[12].mxu0 %vm490_vm1, %v8007_v22 }
  0x2f   : > { %6690 = vmatmul.mubr.msk.bf16.gmra.mrb[12].mxu1 %vm490_vm1, %v8010_v23  ;;  %6653 = vmatprep.mubr.msk.bf16.mxu0 %vm490_vm1, %v8013_v24 }
  0x30   : > { %6693 = vmatprep.mubr.msk.bf16.mxu1 %vm490_vm1, %v8016_v25 }
  0x36   : > { %6654 = vmatmul.mubr.msk.bf16.gmra.mrb[16].mxu0 %vm490_vm1, %v8027_v26 }
  0x37   : > { %6694 = vmatmul.mubr.msk.bf16.gmra.mrb[16].mxu1 %vm490_vm1, %v8030_v27  ;;  %6657 = vmatprep.mubr.msk.bf16.mxu0 %vm490_vm1, %v8033_v28 }
  0x38   : > { %6697 = vmatprep.mubr.msk.bf16.mxu1 %vm490_vm1, %v8036_v29 }
  0x3e   : > { %6658 = vmatmul.mubr.msk.bf16.gmra.mrb[20].mxu0 %vm490_vm1, %v8047_v30 }
  0x3f   : > { %6698 = vmatmul.mubr.msk.bf16.gmra.mrb[20].mxu1 %vm490_vm1, %v8050_v31  ;;  %6661 = vmatprep.mubr.msk.bf16.mxu0 %vm490_vm1, %v8053_v32 }
  0x40   : > { %6701 = vmatprep.mubr.msk.bf16.mxu1 %vm490_vm1, %v8056_v33 }
  0x46   : > { %6662 = vmatmul.mubr.msk.bf16.gmra.mrb[24].mxu0 %vm490_vm1, %v8067_v34 }
  0x47   : > { %6702 = vmatmul.mubr.msk.bf16.gmra.mrb[24].mxu1 %vm490_vm1, %v8070_v35  ;;  %6665 = vmatprep.mubr.msk.bf16.mxu0 %vm490_vm1, %v8073_v36 }
  0x48   : > { %6705 = vmatprep.mubr.msk.bf16.mxu1 %vm490_vm1, %v8076_v37 }
  0x4e   : > { %6666 = vmatmul.mubr.msk.bf16.gmra.mrb[28].mxu0 %vm490_vm1, %v8087_v38 }
  0x4f   : > { %6706 = vmatmul.mubr.msk.bf16.gmra.mrb[28].mxu1 %vm490_vm1, %v8090_v39  ;;  %6669 = vmatprep.mubr.msk.bf16.mxu0 %vm490_vm1, %v8093_v40 }
  0x50   : > { %6709 = vmatprep.mubr.msk.bf16.mxu1 %vm490_vm1, %v8096_v41 }
  0x56   : > { %6670 = vmatmul.mubr.msk.bf16.gmra.mrb[32].mxu0 %vm490_vm1, %v8107_v42 }
  0x57   : > { %6710 = vmatmul.mubr.msk.bf16.gmra.mrb[32].mxu1 %vm490_vm1, %v8110_v43  ;;  %6673 = vmatprep.mubr.msk.bf16.mxu0 %vm490_vm1, %v8113_v44 }
  0x58   : > { %6715 = vmatprep.mubr.msk.bf16.mxu1 %vm490_vm1, %v7921_v4 }
  0x5e   : > { %6674 = vmatmul.mubr.msk.bf16.gmra.mrb[36].mxu0 %vm490_vm1, %v8124_v45 }
  0x5f   : > { %6716 = vmatmul.mubr.msk.bf16.vlgmr.msra.gmra.mrb[36].mxu1 %vm490_vm1, %v7929_v6  ;;  %6793 = vmatprep.mubr.msk.bf16.mxu0 %vm490_vm1, %v7921_v4 }
  0x60   : > { %6948 = vmatpush3.bf16.msra.mxu1 %v2639_v46  ;;  %6719 = vmatprep.mubr.msk.bf16.mxu1 %vm490_vm1, %v7951_v12 }
  0x61   : > { %7729 = vmatprep.subr.msk.bf16.mxu1 %vm605_vm0, %v8163_v48 }
  0x66   : > { %6794 = vmatmul.mubr.msk.bf16.vlgmr.msra.gmra.mrb[40].mxu0 %vm490_vm1, %v7929_v6 }
  0x67   : > { %6720 = vmatmul.mubr.msk.bf16.gmra.mrb[40].mxu1 %vm490_vm1, %v7963_v14  ;;  %6870 = vmatpush3.bf16.msra.mxu0 %v2245_v47 }
  0x68   : > { %6723 = vmatprep.mubr.msk.bf16.mxu1 %vm490_vm1, %v7973_v16  ;;  %6797 = vmatprep.mubr.msk.bf16.mxu0 %vm490_vm1, %v7951_v12 }
  0x69   : > { %7730 = vmatprep.subr.msk.bf16.mxu0 %vm605_vm0, %v8172_v49 }
  0x6e   : > { %6798 = vmatmul.mubr.msk.bf16.gmra.mrb[44].mxu0 %vm490_vm1, %v7963_v14 }
  0x6f   : > { %6724 = vmatmul.mubr.msk.bf16.gmra.mrb[44].mxu1 %vm490_vm1, %v7987_v18  ;;  %6801 = vmatprep.mubr.msk.bf16.mxu0 %vm490_vm1, %v7973_v16 }
  0x70   : > { %6727 = vmatprep.mubr.msk.bf16.mxu1 %vm490_vm1, %v7993_v20 }
  0x76   : > { %6802 = vmatmul.mubr.msk.bf16.gmra.mrb[48].mxu0 %vm490_vm1, %v7987_v18 }
  0x77   : > { %6728 = vmatmul.mubr.msk.bf16.gmra.mrb[48].mxu1 %vm490_vm1, %v8007_v22  ;;  %6805 = vmatprep.mubr.msk.bf16.mxu0 %vm490_vm1, %v7993_v20 }
  0x78   : > { %6731 = vmatprep.mubr.msk.bf16.mxu1 %vm490_vm1, %v8013_v24 }
  0x7e   : > { %6806 = vmatmul.mubr.msk.bf16.gmra.mrb[52].mxu0 %vm490_vm1, %v8007_v22 }
  0x7f   : > { %6732 = vmatmul.mubr.msk.bf16.gmra.mrb[52].mxu1 %vm490_vm1, %v8027_v26  ;;  %6809 = vmatprep.mubr.msk.bf16.mxu0 %vm490_vm1, %v8013_v24 }
  0x80   : > { %6735 = vmatprep.mubr.msk.bf16.mxu1 %vm490_vm1, %v8033_v28 }
  0x86   : > { %6810 = vmatmul.mubr.msk.bf16.gmra.mrb[56].mxu0 %vm490_vm1, %v8027_v26 }
  0x87   : > { %6736 = vmatmul.mubr.msk.bf16.gmra.mrb[56].mxu1 %vm490_vm1, %v8047_v30  ;;  %6813 = vmatprep.mubr.msk.bf16.mxu0 %vm490_vm1, %v8033_v28 }
  0x88   : > { %6739 = vmatprep.mubr.msk.bf16.mxu1 %vm490_vm1, %v8053_v32 }
  0x8e   : > { %6814 = vmatmul.mubr.msk.bf16.gmra.mrb[60].mxu0 %vm490_vm1, %v8047_v30 }
  0x8f   : > { %6740 = vmatmul.mubr.msk.bf16.gmra.mrb[60].mxu1 %vm490_vm1, %v8067_v34  ;;  %6817 = vmatprep.mubr.msk.bf16.mxu0 %vm490_vm1, %v8053_v32 }
  0x90   : > { %6743 = vmatprep.mubr.msk.bf16.mxu1 %vm490_vm1, %v8073_v36 }
  0x96   : > { %6818 = vmatmul.mubr.msk.bf16.gmra.mrb[64].mxu0 %vm490_vm1, %v8067_v34 }
  0x97   : > { %6744 = vmatmul.mubr.msk.bf16.gmra.mrb[64].mxu1 %vm490_vm1, %v8087_v38  ;;  %6821 = vmatprep.mubr.msk.bf16.mxu0 %vm490_vm1, %v8073_v36 }
  0x98   : > { %6747 = vmatprep.mubr.msk.bf16.mxu1 %vm490_vm1, %v8093_v40 }
  0x9e   : > { %6822 = vmatmul.mubr.msk.bf16.gmra.mrb[68].mxu0 %vm490_vm1, %v8087_v38 }
  0x9f   : > { %6748 = vmatmul.mubr.msk.bf16.gmra.mrb[68].mxu1 %vm490_vm1, %v8107_v42  ;;  %6825 = vmatprep.mubr.msk.bf16.mxu0 %vm490_vm1, %v8093_v40 }
  0xa0   : > { %6751 = vmatprep.mubr.msk.bf16.mxu1 %vm490_vm1, %v8113_v44 }
  0xa6   : > { %6826 = vmatmul.mubr.msk.bf16.gmra.mrb[72].mxu0 %vm490_vm1, %v8107_v42 }
  0xa7   : > { %6752 = vmatmul.mubr.msk.bf16.gmra.mrb[72].mxu1 %vm490_vm1, %v8124_v45  ;;  %6829 = vmatprep.mubr.msk.bf16.mxu0 %vm490_vm1, %v8113_v44 }
  0xa8   : > { %6755 = vmatprep.mubr.msk.bf16.mxu1 %vm490_vm1, %v7924_v5 }
  0xae   : > { %6830 = vmatmul.mubr.msk.bf16.gmra.mrb[76].mxu0 %vm490_vm1, %v8124_v45 }
  0xaf   : > { %6756 = vmatmul.mubr.msk.bf16.gmra.mrb[76].mxu1 %vm490_vm1, %v7940_v9  ;;  %6833 = vmatprep.mubr.msk.bf16.mxu0 %vm490_vm1, %v7924_v5 }
  0xb0   : > { %6759 = vmatprep.mubr.msk.bf16.mxu1 %vm490_vm1, %v7956_v13 }
  0xb6   : > { %6834 = vmatmul.mubr.msk.bf16.gmra.mrb[80].mxu0 %vm490_vm1, %v7940_v9 }
  0xb7   : > { %6760 = vmatmul.mubr.msk.bf16.gmra.mrb[80].mxu1 %vm490_vm1, %v7968_v15  ;;  %6837 = vmatprep.mubr.msk.bf16.mxu0 %vm490_vm1, %v7956_v13 }
  0xb8   : > { %6763 = vmatprep.mubr.msk.bf16.mxu1 %vm490_vm1, %v7976_v17 }
  0xbe   : > { %6838 = vmatmul.mubr.msk.bf16.gmra.mrb[84].mxu0 %vm490_vm1, %v7968_v15 }
  0xbf   : > { %6764 = vmatmul.mubr.msk.bf16.gmra.mrb[84].mxu1 %vm490_vm1, %v7990_v19  ;;  %6841 = vmatprep.mubr.msk.bf16.mxu0 %vm490_vm1, %v7976_v17 }
  0xc0   : > { %6767 = vmatprep.mubr.msk.bf16.mxu1 %vm490_vm1, %v7996_v21 }
  0xc6   : > { %6842 = vmatmul.mubr.msk.bf16.gmra.mrb[88].mxu0 %vm490_vm1, %v7990_v19 }
  0xc7   : > { %6768 = vmatmul.mubr.msk.bf16.gmra.mrb[88].mxu1 %vm490_vm1, %v8010_v23  ;;  %6845 = vmatprep.mubr.msk.bf16.mxu0 %vm490_vm1, %v7996_v21 }
  0xc8   : > { %6771 = vmatprep.mubr.msk.bf16.mxu1 %vm490_vm1, %v8016_v25 }
  0xce   : > { %6846 = vmatmul.mubr.msk.bf16.gmra.mrb[92].mxu0 %vm490_vm1, %v8010_v23 }
  0xcf   : > { %6772 = vmatmul.mubr.msk.bf16.gmra.mrb[92].mxu1 %vm490_vm1, %v8030_v27  ;;  %6849 = vmatprep.mubr.msk.bf16.mxu0 %vm490_vm1, %v8016_v25 }
  0xd0   : > { %6775 = vmatprep.mubr.msk.bf16.mxu1 %vm490_vm1, %v8036_v29 }
  0xd6   : > { %6850 = vmatmul.mubr.msk.bf16.gmra.mrb[96].mxu0 %vm490_vm1, %v8030_v27 }
  0xd7   : > { %6776 = vmatmul.mubr.msk.bf16.gmra.mrb[96].mxu1 %vm490_vm1, %v8050_v31  ;;  %6853 = vmatprep.mubr.msk.bf16.mxu0 %vm490_vm1, %v8036_v29 }
  0xd8   : > { %6779 = vmatprep.mubr.msk.bf16.mxu1 %vm490_vm1, %v8056_v33 }
  0xde   : > { %6854 = vmatmul.mubr.msk.bf16.gmra.mrb[100].mxu0 %vm490_vm1, %v8050_v31 }
  0xdf   : > { %6780 = vmatmul.mubr.msk.bf16.gmra.mrb[100].mxu1 %vm490_vm1, %v8070_v35  ;;  %6857 = vmatprep.mubr.msk.bf16.mxu0 %vm490_vm1, %v8056_v33 }
  0xe0   : > { %6783 = vmatprep.mubr.msk.bf16.mxu1 %vm490_vm1, %v8076_v37 }
  0xe6   : > { %6858 = vmatmul.mubr.msk.bf16.gmra.mrb[104].mxu0 %vm490_vm1, %v8070_v35 }
  0xe7   : > { %6784 = vmatmul.mubr.msk.bf16.gmra.mrb[104].mxu1 %vm490_vm1, %v8090_v39  ;;  %6861 = vmatprep.mubr.msk.bf16.mxu0 %vm490_vm1, %v8076_v37 }
  0xe8   : > { %6787 = vmatprep.mubr.msk.bf16.mxu1 %vm490_vm1, %v8096_v41 }
  0xea   : > { %v8288_v50 = vpop.f32.mrb[0].mxu1 }
  0xeb   : > { %v8290_v51 = vpop.f32.mrb[1].mxu1 }
  0xec   : > { %v8292_v52 = vpop.f32.mrb[2].mxu1 }
  0xed   : > { %v8294_v53 = vpop.f32.mrb[3].mxu1 }
  0xee   : > { %6862 = vmatmul.mubr.msk.bf16.gmra.mrb[108].mxu0 %vm490_vm1, %v8090_v39 }
  0xef   : > { %6788 = vmatmul.mubr.msk.bf16.gmra.mrb[108].mxu1 %vm490_vm1, %v8110_v43  ;;  %6865 = vmatprep.mubr.msk.bf16.mxu0 %vm490_vm1, %v8096_v41 }
  0xf0   : > { %6949 = vmatprep.mubr.msk.bf16.mxu1 %vm490_vm1, %v7921_v4 }
  0xf2   : > { %v8304_v54 = vpop.f32.mrb[4].mxu1 }
  0xf3   : > { %v8306_v55 = vpop.f32.mrb[5].mxu1 }
  0xf4   : > { %v8308_v56 = vpop.f32.mrb[6].mxu1 }
  0xf5   : > { %v8310_v57 = vpop.f32.mrb[7].mxu1 }
  0xf6   : > { %6866 = vmatmul.mubr.msk.bf16.gmra.mrb[112].mxu0 %vm490_vm1, %v8110_v43 }
  0xf7   : > { %6950 = vmatmul.mubr.msk.bf16.vlgmr.msra.gmra.mrb[112].mxu1 %vm490_vm1, %v7929_v6  ;;  %6871 = vmatprep.mubr.msk.bf16.mxu0 %vm490_vm1, %v7921_v4 }
  0xf8   : > { %7026 = vmatpush3.bf16.msra.mxu1 %v3292_v58  ;;  %6953 = vmatprep.mubr.msk.bf16.mxu1 %vm490_vm1, %v7951_v12 }
  0xfa   : > { %v8322_v59 = vpop.f32.mrb[8].mxu1 }
  0xfb   : > { %v8324_v60 = vpop.f32.mrb[9].mxu1 }
  0xfc   : > { %v8326_v61 = vpop.f32.mrb[10].mxu1 }
  0xfd   : > { %v8330_v63 = vpop.f32.mrb[11].mxu1 }
  0xfe   : > { %6872 = vmatmul.mubr.msk.bf16.vlgmr.msra.gmra.mrb[116].mxu0 %vm490_vm1, %v7929_v6 }
  0xff   : > { %6954 = vmatmul.mubr.msk.bf16.gmra.mrb[116].mxu1 %vm490_vm1, %v7963_v14  ;;  %7104 = vmatpush3.bf16.msra.mxu0 %v3945_v62 }
 0x100   : > { %6875 = vmatprep.mubr.msk.bf16.mxu0 %vm490_vm1, %v7951_v12  ;;  %6957 = vmatprep.mubr.msk.bf16.mxu1 %vm490_vm1, %v7973_v16 }
 0x102   : > { %v8340_v0 = vpop.f32.mrb[12].mxu1 }
 0x103   : > { %v8342_v1 = vpop.f32.mrb[13].mxu1 }
 0x104   : > { %v8344_v2 = vpop.f32.mrb[14].mxu1 }
 0x105   : > { %v8346_v3 = vpop.f32.mrb[15].mxu1 }
 0x106   : > { %6876 = vmatmul.mubr.msk.bf16.gmra.mrb[0].mxu0 %vm490_vm1, %v7963_v14 }
 0x107   : > { %6958 = vmatmul.mubr.msk.bf16.gmra.mrb[120].mxu1 %vm490_vm1, %v7987_v18  ;;  %6879 = vmatprep.mubr.msk.bf16.mxu0 %vm490_vm1, %v7973_v16  ;;  %v8389_v16 = vld [vmem:[%s10073_s1 + $0x1c] sm:$0xf] }
 0x108   : > { %6961 = vmatprep.mubr.msk.bf16.mxu1 %vm490_vm1, %v7993_v20  ;;  %7731 = vmatprep.subr.msk.bf16.mxu1 %vm605_vm0, %v8389_v16 }
 0x10a   : > { %v8356_v4 = vpop.f32.mrb[16].mxu1 }
 0x10b   : > { %v8358_v6 = vpop.f32.mrb[17].mxu1 }
 0x10c   : > { %v8360_v7 = vpop.f32.mrb[18].mxu1 }
 0x10d   : > { %10090 = vst [vmem:[#allocation2_spill] sm:$0xff] %v8360_v7  ;;  %v8362_v8 = vpop.f32.mrb[19].mxu1 }
 0x10e   : > { %6880 = vmatmul.mubr.msk.bf16.gmra.mrb[4].mxu0 %vm490_vm1, %v7987_v18  ;;  %v8398_v18 = vld [vmem:[%s10073_s1 + $0x20] sm:$0xf] }
 0x10f   : > { %6962 = vmatmul.mubr.msk.bf16.gmra.mrb[124].mxu1 %vm490_vm1, %v8007_v22  ;;  %6883 = vmatprep.mubr.msk.bf16.mxu0 %vm490_vm1, %v7993_v20 }
 0x110   : > { %6965 = vmatprep.mubr.msk.bf16.mxu1 %vm490_vm1, %v8013_v24  ;;  %7732 = vmatprep.subr.msk.bf16.mxu0 %vm605_vm0, %v8398_v18 }
 0x112   : > { %v8372_v10 = vpop.f32.mrb[20].mxu1 }
 0x113   : > { %10091 = vst [vmem:[#allocation3_spill] sm:$0xff] %v8372_v10  ;;  %v8374_v11 = vpop.f32.mrb[21].mxu1 }
 0x114   : > { %10092 = vst [vmem:[#allocation4_spill] sm:$0xff] %v8374_v11  ;;  %v8376_v12 = vpop.f32.mrb[22].mxu1 }
 0x115   : > { %10093 = vst [vmem:[#allocation5_spill] sm:$0xff] %v8376_v12  ;;  %v8378_v14 = vpop.f32.mrb[23].mxu1 }
 0x116   : > { %10094 = vst [vmem:[#allocation6_spill] sm:$0xff] %v8378_v14  ;;  %6884 = vmatmul.mubr.msk.bf16.gmra.mrb[8].mxu0 %vm490_vm1, %v8007_v22 }
 0x117   : > { %6966 = vmatmul.mubr.msk.bf16.gmra.mrb[128].mxu1 %vm490_vm1, %v8027_v26  ;;  %6887 = vmatprep.mubr.msk.bf16.mxu0 %vm490_vm1, %v8013_v24 }
 0x118   : > { %6969 = vmatprep.mubr.msk.bf16.mxu1 %vm490_vm1, %v8033_v28 }
 0x11a   : > { %v6703_v20 = vpop.f32.mrb[24].mxu1 }
 0x11b   : > { %v899_v22 = vpop.f32.mrb[25].mxu1 }
 0x11c   : > { %v6704_v24 = vpop.f32.mrb[26].mxu1 }
 0x11d   : > { %v901_v46 = vpop.f32.mrb[27].mxu1 }
 0x11e   : > { %6888 = vmatmul.mubr.msk.bf16.gmra.mrb[12].mxu0 %vm490_vm1, %v8027_v26 }
 0x11f   : > { %6970 = vmatmul.mubr.msk.bf16.gmra.mrb[132].mxu1 %vm490_vm1, %v8047_v30  ;;  %6891 = vmatprep.mubr.msk.bf16.mxu0 %vm490_vm1, %v8033_v28 }
 0x120   : > { %6973 = vmatprep.mubr.msk.bf16.mxu1 %vm490_vm1, %v8053_v32 }
 0x122   : > { %v6707_v47 = vpop.f32.mrb[28].mxu1 }
 0x123   : > { %v911_v48 = vpop.f32.mrb[29].mxu1 }
 0x124   : > { %v6708_v49 = vpop.f32.mrb[30].mxu1 }
 0x125   : > { %v913_v58 = vpop.f32.mrb[31].mxu1 }
 0x126   : > { %6892 = vmatmul.mubr.msk.bf16.gmra.mrb[16].mxu0 %vm490_vm1, %v8047_v30 }
 0x127   : > { %6974 = vmatmul.mubr.msk.bf16.gmra.mrb[136].mxu1 %vm490_vm1, %v8067_v34  ;;  %6895 = vmatprep.mubr.msk.bf16.mxu0 %vm490_vm1, %v8053_v32 }
 0x128   : > { %6977 = vmatprep.mubr.msk.bf16.mxu1 %vm490_vm1, %v8073_v36 }
 0x12a   : > { %v6711_v26 = vpop.f32.mrb[32].mxu1 }
 0x12b   : > { %v923_v28 = vpop.f32.mrb[33].mxu1 }
 0x12c   : > { %v6712_v62 = vpop.f32.mrb[34].mxu1 }
 0x12d   : > { %v925_v20 = vpop.f32.mrb[35].mxu1 }
 0x12e   : > { %6896 = vmatmul.mubr.msk.bf16.gmra.mrb[20].mxu0 %vm490_vm1, %v8067_v34 }
 0x12f   : > { %6978 = vmatmul.mubr.msk.bf16.gmra.mrb[140].mxu1 %vm490_vm1, %v8087_v38  ;;  %6899 = vmatprep.mubr.msk.bf16.mxu0 %vm490_vm1, %v8073_v36 }
 0x130   : > { %6981 = vmatprep.mubr.msk.bf16.mxu1 %vm490_vm1, %v8093_v40 }
 0x132   : > { %v6717_v30 = vpop.f32.mrb[36].mxu1 }
 0x133   : > { %v1334_v32 = vrot.slane %v6717_v30, 1  ;;  %v973_v22 = vpop.f32.mrb[37].mxu1 }
 0x134   : > { %v1331_v24 = vrot.slane %v973_v22, 1  ;;  %v6718_v46 = vpop.f32.mrb[38].mxu1 }
 0x135   : > { %v1336_v47 = vrot.slane %v6718_v46, 1  ;;  %v976_v48 = vpop.f32.mrb[39].mxu1 }
 0x136   : > { %6900 = vmatmul.mubr.msk.bf16.gmra.mrb[24].mxu0 %vm490_vm1, %v8087_v38  ;;  %v1332_v34 = vrot.slane %v976_v48, 1 }
 0x137   : > { %6982 = vmatmul.mubr.msk.bf16.gmra.mrb[144].mxu1 %vm490_vm1, %v8107_v42  ;;  %v1337_v36 = vsel %vm1330_vm2, %v1334_v32, %v1336_v47  ;;  %6903 = vmatprep.mubr.msk.bf16.mxu0 %vm490_vm1, %v8093_v40 }
 0x138   : > { %v1333_v49 = vsel %vm1330_vm2, %v1331_v24, %v1332_v34  ;;  %v1335_v58 = vsel %vm1330_vm2, %v1332_v34, %v1334_v32  ;;  %6985 = vmatprep.mubr.msk.bf16.mxu1 %vm490_vm1, %v8113_v44 }
 0x139   : > { %v6795_v26 = vpop.f32.mrb[40].mxu0 }
 0x13a   : > { %v6721_v28 = vpop.f32.mrb[40].mxu1  ;;  %v1627_v62 = vpop.f32.mrb[41].mxu0  ;;  %v1988_v22 = vrot.slane %v6795_v26, 2 }
 0x13b   : > { %v1342_v38 = vrot.slane %v6721_v28, 1  ;;  %v989_v20 = vpop.f32.mrb[41].mxu1  ;;  %v6796_v30 = vpop.f32.mrb[42].mxu0  ;;  %v1985_v40 = vrot.slane %v1627_v62, 2 }
 0x13c   : > { %v1338_v46 = vrot.slane %v989_v20, 1  ;;  %v1990_v48 = vrot.slane %v6796_v30, 2  ;;  %v1630_v12 = vpop.f32.mrb[43].mxu0  ;;  %v6722_v14 = vpop.f32.mrb[42].mxu1 }
 0x13d   : > { %v1986_v11 = vrot.slane %v1630_v12, 2  ;;  %v1344_v24 = vrot.slane %v6722_v14, 1  ;;  %v992_v10 = vpop.f32.mrb[43].mxu1 }
 0x13e   : > { %v1991_v32 = vsel %vm1984_vm3, %v1988_v22, %v1990_v48  ;;  %6904 = vmatmul.mubr.msk.bf16.gmra.mrb[28].mxu0 %vm490_vm1, %v8107_v42  ;;  %v1340_v34 = vrot.slane %v992_v10, 1  ;;  %v1339_v28 = vsel %vm1330_vm2, %v1336_v47, %v1338_v46 }
 0x13f   : > { %v8441_v7 = vadd.f32 %v1991_v32, %v1337_v36  ;;  %v1987_v26 = vsel %vm1984_vm3, %v1985_v40, %v1986_v11  ;;  %v1989_v20 = vsel %vm1984_vm3, %v1986_v11, %v1988_v22  ;;  %6986 = vmatmul.mubr.msk.bf16.gmra.mrb[148].mxu1 %vm490_vm1, %v8124_v45  ;;  %v1345_v12 = vsel %vm1330_vm2, %v1342_v38, %v1344_v24 }
 0x140   : > { %v8448_v14 = vadd.f32 %v1987_v26, %v1333_v49  ;;  %v8450_v62 = vadd.f32 %v1989_v20, %v1335_v58  ;;  %v1341_v42 = vsel %vm1330_vm2, %v1338_v46, %v1340_v34  ;;  %v1343_v10 = vsel %vm1330_vm2, %v1340_v34, %v1342_v38  ;;  %6907 = vmatprep.mubr.msk.bf16.mxu0 %vm490_vm1, %v8113_v44 }
 0x141   : > { %10095 = vst [vmem:[#allocation7_spill] sm:$0xff] %v8441_v7  ;;  %v6799_v47 = vpop.f32.mrb[44].mxu0  ;;  %6989 = vmatprep.mubr.msk.bf16.mxu1 %vm490_vm1, %v7924_v5 }
 0x142   : > { %10096 = vst [vmem:[#allocation8_spill] sm:$0xff] %v8448_v14  ;;  %10097 = vst [vmem:[#allocation9_spill] sm:$0xff] %v8450_v62  ;;  %v6725_v11 = vpop.f32.mrb[44].mxu1  ;;  %v1643_v36 = vpop.f32.mrb[45].mxu0  ;;  %v1996_v32 = vrot.slane %v6799_v47, 2 }
 0x143   : > { %v1350_v30 = vrot.slane %v6725_v11, 1  ;;  %v1005_v22 = vpop.f32.mrb[45].mxu1  ;;  %v1992_v40 = vrot.slane %v1643_v36, 2  ;;  %v6800_v49 = vpop.f32.mrb[46].mxu0 }
 0x144   : > { %v1346_v58 = vrot.slane %v1005_v22, 1  ;;  %v1998_v26 = vrot.slane %v6800_v49, 2  ;;  %v1646_v20 = vpop.f32.mrb[47].mxu0  ;;  %v6726_v46 = vpop.f32.mrb[46].mxu1 }
 0x145   : > { %v1993_v38 = vsel %vm1984_vm3, %v1990_v48, %v1992_v40  ;;  %v1994_v34 = vrot.slane %v1646_v20, 2  ;;  %v1352_v62 = vrot.slane %v6726_v46, 1  ;;  %v1008_v44 = vpop.f32.mrb[47].mxu1 }
 0x146   : > { %v8459_v14 = vadd.f32 %v1993_v38, %v1339_v28  ;;  %v1999_v7 = vsel %vm1984_vm3, %v1996_v32, %v1998_v26  ;;  %6908 = vmatmul.mubr.msk.bf16.gmra.mrb[32].mxu0 %vm490_vm1, %v8124_v45  ;;  %v1348_v11 = vrot.slane %v1008_v44, 1  ;;  %v1347_v36 = vsel %vm1330_vm2, %v1344_v24, %v1346_v58 }
 0x147   : > { %v8465_v47 = vadd.f32 %v1999_v7, %v1345_v12  ;;  %v1995_v22 = vsel %vm1984_vm3, %v1992_v40, %v1994_v34  ;;  %v1997_v49 = vsel %vm1984_vm3, %v1994_v34, %v1996_v32  ;;  %6990 = vmatmul.mubr.msk.bf16.gmra.mrb[152].mxu1 %vm490_vm1, %v7940_v9  ;;  %v1353_v48 = vsel %vm1330_vm2, %v1350_v30, %v1352_v62 }
 0x148   : > { %v8472_v28 = vadd.f32 %v1995_v22, %v1341_v42  ;;  %v8474_v20 = vadd.f32 %v1997_v49, %v1343_v10  ;;  %v1349_v45 = vsel %vm1330_vm2, %v1346_v58, %v1348_v11  ;;  %v1351_v46 = vsel %vm1330_vm2, %v1348_v11, %v1350_v30  ;;  %6911 = vmatprep.mubr.msk.bf16.mxu0 %vm490_vm1, %v7924_v5 }
 0x149   : > { %v6803_v7 = vpop.f32.mrb[48].mxu0  ;;  %6993 = vmatprep.mubr.msk.bf16.mxu1 %vm490_vm1, %v7956_v13 }
 0x14a   : > { %10098 = vst [vmem:[#allocation10_spill] sm:$0xff] %v8472_v28  ;;  %10099 = vst [vmem:[#allocation11_spill] sm:$0xff] %v8474_v20  ;;  %v6729_v24 = vpop.f32.mrb[48].mxu1  ;;  %v1659_v12 = vpop.f32.mrb[49].mxu0  ;;  %v2004_v34 = vrot.slane %v6803_v7, 2 }
 0x14b   : > { %v1358_v40 = vrot.slane %v6729_v24, 1  ;;  %v1021_v32 = vpop.f32.mrb[49].mxu1  ;;  %v2000_v38 = vrot.slane %v1659_v12, 2  ;;  %v6804_v42 = vpop.f32.mrb[50].mxu0 }
 0x14c   : > { %v1354_v10 = vrot.slane %v1021_v32, 1  ;;  %v2006_v44 = vrot.slane %v6804_v42, 2  ;;  %v1662_v22 = vpop.f32.mrb[51].mxu0  ;;  %v6730_v58 = vpop.f32.mrb[50].mxu1 }
 0x14d   : > { %v2001_v30 = vsel %vm1984_vm3, %v1998_v26, %v2000_v38  ;;  %v2002_v11 = vrot.slane %v1662_v22, 2  ;;  %v1360_v49 = vrot.slane %v6730_v58, 1  ;;  %v1024_v5 = vpop.f32.mrb[51].mxu1 }
 0x14e   : > { %v8483_v20 = vadd.f32 %v2001_v30, %v1347_v36  ;;  %v2007_v28 = vsel %vm1984_vm3, %v2004_v34, %v2006_v44  ;;  %6912 = vmatmul.mubr.msk.bf16.gmra.mrb[36].mxu0 %vm490_vm1, %v7940_v9  ;;  %v1356_v24 = vrot.slane %v1024_v5, 1  ;;  %v1355_v12 = vsel %vm1330_vm2, %v1352_v62, %v1354_v10 }
 0x14f   : > { %v8489_v7 = vadd.f32 %v2007_v28, %v1353_v48  ;;  %v2003_v32 = vsel %vm1984_vm3, %v2000_v38, %v2002_v11  ;;  %v2005_v42 = vsel %vm1984_vm3, %v2002_v11, %v2004_v34  ;;  %6994 = vmatmul.mubr.msk.bf16.gmra.mrb[156].mxu1 %vm490_vm1, %v7968_v15  ;;  %v1361_v26 = vsel %vm1330_vm2, %v1358_v40, %v1360_v49 }
 0x150   : > { %v8496_v36 = vadd.f32 %v2003_v32, %v1349_v45  ;;  %v8498_v22 = vadd.f32 %v2005_v42, %v1351_v46  ;;  %v1357_v9 = vsel %vm1330_vm2, %v1354_v10, %v1356_v24  ;;  %v1359_v58 = vsel %vm1330_vm2, %v1356_v24, %v1358_v40  ;;  %6915 = vmatprep.mubr.msk.bf16.mxu0 %vm490_vm1, %v7956_v13 }
 0x151   : > { %v6807_v62 = vpop.f32.mrb[52].mxu0  ;;  %6997 = vmatprep.mubr.msk.bf16.mxu1 %vm490_vm1, %v7976_v17 }
 0x152   : > { %10100 = vst [vmem:[#allocation12_spill] sm:$0xff] %v8496_v36  ;;  %10101 = vst [vmem:[#allocation13_spill] sm:$0xff] %v8498_v22  ;;  %v6733_v48 = vpop.f32.mrb[52].mxu1  ;;  %v1675_v28 = vpop.f32.mrb[53].mxu0  ;;  %v2012_v11 = vrot.slane %v6807_v62, 2 }
 0x153   : > { %v1366_v38 = vrot.slane %v6733_v48, 1  ;;  %v1037_v34 = vpop.f32.mrb[53].mxu1  ;;  %v2008_v30 = vrot.slane %v1675_v28, 2  ;;  %v6808_v45 = vpop.f32.mrb[54].mxu0 }
 0x154   : > { %v1362_v46 = vrot.slane %v1037_v34, 1  ;;  %v2014_v5 = vrot.slane %v6808_v45, 2  ;;  %v1678_v32 = vpop.f32.mrb[55].mxu0  ;;  %v6734_v10 = vpop.f32.mrb[54].mxu1 }
 0x155   : > { %v2009_v40 = vsel %vm1984_vm3, %v2006_v44, %v2008_v30  ;;  %v2010_v24 = vrot.slane %v1678_v32, 2  ;;  %v1368_v42 = vrot.slane %v6734_v10, 1  ;;  %v1040_v13 = vpop.f32.mrb[55].mxu1 }
 0x156   : > { %v8507_v22 = vadd.f32 %v2009_v40, %v1355_v12  ;;  %v2015_v36 = vsel %vm1984_vm3, %v2012_v11, %v2014_v5  ;;  %6916 = vmatmul.mubr.msk.bf16.gmra.mrb[120].mxu0 %vm490_vm1, %v7968_v15  ;;  %v1364_v48 = vrot.slane %v1040_v13, 1  ;;  %v1363_v28 = vsel %vm1330_vm2, %v1360_v49, %v1362_v46 }
 0x157   : > { %v8513_v62 = vadd.f32 %v2015_v36, %v1361_v26  ;;  %v2011_v34 = vsel %vm1984_vm3, %v2008_v30, %v2010_v24  ;;  %v2013_v45 = vsel %vm1984_vm3, %v2010_v24, %v2012_v11  ;;  %6998 = vmatmul.mubr.msk.bf16.gmra.mrb[160].mxu1 %vm490_vm1, %v7990_v19  ;;  %v1369_v44 = vsel %vm1330_vm2, %v1366_v38, %v1368_v42 }
 0x158   : > { %v8520_v12 = vadd.f32 %v2011_v34, %v1357_v9  ;;  %v8522_v32 = vadd.f32 %v2013_v45, %v1359_v58  ;;  %v1365_v15 = vsel %vm1330_vm2, %v1362_v46, %v1364_v48  ;;  %v1367_v10 = vsel %vm1330_vm2, %v1364_v48, %v1366_v38  ;;  %6919 = vmatprep.mubr.msk.bf16.mxu0 %vm490_vm1, %v7976_v17 }
 0x159   : > { %v6811_v49 = vpop.f32.mrb[56].mxu0  ;;  %7001 = vmatprep.mubr.msk.bf16.mxu1 %vm490_vm1, %v7996_v21 }
 0x15a   : > { %10102 = vst [vmem:[#allocation14_spill] sm:$0xff] %v8520_v12  ;;  %10103 = vst [vmem:[#allocation15_spill] sm:$0xff] %v8522_v32  ;;  %v6737_v26 = vpop.f32.mrb[56].mxu1  ;;  %v1691_v36 = vpop.f32.mrb[57].mxu0  ;;  %v2020_v24 = vrot.slane %v6811_v49, 2 }
 0x15b   : > { %v1374_v30 = vrot.slane %v6737_v26, 1  ;;  %v1053_v11 = vpop.f32.mrb[57].mxu1  ;;  %v2016_v40 = vrot.slane %v1691_v36, 2  ;;  %v6812_v9 = vpop.f32.mrb[58].mxu0 }
 0x15c   : > { %v1370_v58 = vrot.slane %v1053_v11, 1  ;;  %v2022_v13 = vrot.slane %v6812_v9, 2  ;;  %v1694_v34 = vpop.f32.mrb[59].mxu0  ;;  %v6738_v46 = vpop.f32.mrb[58].mxu1 }
 0x15d   : > { %v2017_v38 = vsel %vm1984_vm3, %v2014_v5, %v2016_v40  ;;  %v2018_v48 = vrot.slane %v1694_v34, 2  ;;  %v1376_v45 = vrot.slane %v6738_v46, 1  ;;  %v1056_v17 = vpop.f32.mrb[59].mxu1 }
 0x15e   : > { %v8531_v32 = vadd.f32 %v2017_v38, %v1363_v28  ;;  %v2023_v12 = vsel %vm1984_vm3, %v2020_v24, %v2022_v13  ;;  %6920 = vmatmul.mubr.msk.bf16.gmra.mrb[124].mxu0 %vm490_vm1, %v7990_v19  ;;  %v1372_v26 = vrot.slane %v1056_v17, 1  ;;  %v1371_v36 = vsel %vm1330_vm2, %v1368_v42, %v1370_v58 }
 0x15f   : > { %v8537_v49 = vadd.f32 %v2023_v12, %v1369_v44  ;;  %v2019_v11 = vsel %vm1984_vm3, %v2016_v40, %v2018_v48  ;;  %v2021_v9 = vsel %vm1984_vm3, %v2018_v48, %v2020_v24  ;;  %7002 = vmatmul.mubr.msk.bf16.gmra.mrb[164].mxu1 %vm490_vm1, %v8010_v23  ;;  %v1377_v5 = vsel %vm1330_vm2, %v1374_v30, %v1376_v45 }
 0x160   : > { %v8544_v28 = vadd.f32 %v2019_v11, %v1365_v15  ;;  %v8546_v34 = vadd.f32 %v2021_v9, %v1367_v10  ;;  %v1373_v19 = vsel %vm1330_vm2, %v1370_v58, %v1372_v26  ;;  %v1375_v46 = vsel %vm1330_vm2, %v1372_v26, %v1374_v30  ;;  %6923 = vmatprep.mubr.msk.bf16.mxu0 %vm490_vm1, %v7996_v21 }
 0x161   : > { %v6815_v42 = vpop.f32.mrb[60].mxu0  ;;  %7005 = vmatprep.mubr.msk.bf16.mxu1 %vm490_vm1, %v8016_v25 }
 0x162   : > { %10104 = vst [vmem:[#allocation16_spill] sm:$0xff] %v8544_v28  ;;  %10105 = vst [vmem:[#allocation17_spill] sm:$0xff] %v8546_v34  ;;  %v6741_v44 = vpop.f32.mrb[60].mxu1  ;;  %v1707_v12 = vpop.f32.mrb[61].mxu0  ;;  %v2028_v48 = vrot.slane %v6815_v42, 2 }
 0x163   : > { %v1382_v40 = vrot.slane %v6741_v44, 1  ;;  %v1069_v24 = vpop.f32.mrb[61].mxu1  ;;  %v2024_v38 = vrot.slane %v1707_v12, 2  ;;  %v6816_v15 = vpop.f32.mrb[62].mxu0 }
 0x164   : > { %v1378_v10 = vrot.slane %v1069_v24, 1  ;;  %v2030_v17 = vrot.slane %v6816_v15, 2  ;;  %v1710_v11 = vpop.f32.mrb[63].mxu0  ;;  %v6742_v58 = vpop.f32.mrb[62].mxu1 }
 0x165   : > { %v2025_v30 = vsel %vm1984_vm3, %v2022_v13, %v2024_v38  ;;  %v2026_v26 = vrot.slane %v1710_v11, 2  ;;  %v1384_v9 = vrot.slane %v6742_v58, 1  ;;  %v1072_v21 = vpop.f32.mrb[63].mxu1 }
 0x166   : > { %v8555_v34 = vadd.f32 %v2025_v30, %v1371_v36  ;;  %v2031_v28 = vsel %vm1984_vm3, %v2028_v48, %v2030_v17  ;;  %6924 = vmatmul.mubr.msk.bf16.gmra.mrb[128].mxu0 %vm490_vm1, %v8010_v23  ;;  %v1380_v44 = vrot.slane %v1072_v21, 1  ;;  %v1379_v12 = vsel %vm1330_vm2, %v1376_v45, %v1378_v10 }
 0x167   : > { %v8561_v42 = vadd.f32 %v2031_v28, %v1377_v5  ;;  %v2027_v24 = vsel %vm1984_vm3, %v2024_v38, %v2026_v26  ;;  %v2029_v15 = vsel %vm1984_vm3, %v2026_v26, %v2028_v48  ;;  %7006 = vmatmul.mubr.msk.bf16.gmra.mrb[168].mxu1 %vm490_vm1, %v8030_v27  ;;  %v1385_v13 = vsel %vm1330_vm2, %v1382_v40, %v1384_v9 }
 0x168   : > { %v8568_v36 = vadd.f32 %v2027_v24, %v1373_v19  ;;  %v8570_v11 = vadd.f32 %v2029_v15, %v1375_v46  ;;  %v1381_v23 = vsel %vm1330_vm2, %v1378_v10, %v1380_v44  ;;  %v1383_v58 = vsel %vm1330_vm2, %v1380_v44, %v1382_v40  ;;  %6927 = vmatprep.mubr.msk.bf16.mxu0 %vm490_vm1, %v8016_v25 }
 0x169   : > { %v6819_v45 = vpop.f32.mrb[64].mxu0  ;;  %7009 = vmatprep.mubr.msk.bf16.mxu1 %vm490_vm1, %v8036_v29 }
 0x16a   : > { %10106 = vst [vmem:[#allocation18_spill] sm:$0xff] %v8568_v36  ;;  %10107 = vst [vmem:[#allocation19_spill] sm:$0xff] %v8570_v11  ;;  %v6745_v5 = vpop.f32.mrb[64].mxu1  ;;  %v1723_v28 = vpop.f32.mrb[65].mxu0  ;;  %v2036_v26 = vrot.slane %v6819_v45, 2 }
 0x16b   : > { %v1390_v38 = vrot.slane %v6745_v5, 1  ;;  %v1085_v48 = vpop.f32.mrb[65].mxu1  ;;  %v2032_v30 = vrot.slane %v1723_v28, 2  ;;  %v6820_v19 = vpop.f32.mrb[66].mxu0 }
 0x16c   : > { %v1386_v46 = vrot.slane %v1085_v48, 1  ;;  %v2038_v21 = vrot.slane %v6820_v19, 2  ;;  %v1726_v24 = vpop.f32.mrb[67].mxu0  ;;  %v6746_v10 = vpop.f32.mrb[66].mxu1 }
 0x16d   : > { %v2033_v40 = vsel %vm1984_vm3, %v2030_v17, %v2032_v30  ;;  %v2034_v44 = vrot.slane %v1726_v24, 2  ;;  %v1392_v15 = vrot.slane %v6746_v10, 1  ;;  %v1088_v25 = vpop.f32.mrb[67].mxu1 }
 0x16e   : > { %v8579_v11 = vadd.f32 %v2033_v40, %v1379_v12  ;;  %v2039_v36 = vsel %vm1984_vm3, %v2036_v26, %v2038_v21  ;;  %6928 = vmatmul.mubr.msk.bf16.gmra.mrb[132].mxu0 %vm490_vm1, %v8030_v27  ;;  %v1388_v5 = vrot.slane %v1088_v25, 1  ;;  %v1387_v28 = vsel %vm1330_vm2, %v1384_v9, %v1386_v46 }
 0x16f   : > { %v8585_v45 = vadd.f32 %v2039_v36, %v1385_v13  ;;  %v2035_v48 = vsel %vm1984_vm3, %v2032_v30, %v2034_v44  ;;  %v2037_v19 = vsel %vm1984_vm3, %v2034_v44, %v2036_v26  ;;  %7010 = vmatmul.mubr.msk.bf16.gmra.mrb[172].mxu1 %vm490_vm1, %v8050_v31  ;;  %v1393_v17 = vsel %vm1330_vm2, %v1390_v38, %v1392_v15 }
 0x170   : > { %v8592_v12 = vadd.f32 %v2035_v48, %v1381_v23  ;;  %v8594_v24 = vadd.f32 %v2037_v19, %v1383_v58  ;;  %v1389_v27 = vsel %vm1330_vm2, %v1386_v46, %v1388_v5  ;;  %v1391_v10 = vsel %vm1330_vm2, %v1388_v5, %v1390_v38  ;;  %6931 = vmatprep.mubr.msk.bf16.mxu0 %vm490_vm1, %v8036_v29 }
 0x171   : > { %v6823_v9 = vpop.f32.mrb[68].mxu0  ;;  %7013 = vmatprep.mubr.msk.bf16.mxu1 %vm490_vm1, %v8056_v33 }
 0x172   : > { %10108 = vst [vmem:[#allocation20_spill] sm:$0xff] %v8592_v12  ;;  %10109 = vst [vmem:[#allocation21_spill] sm:$0xff] %v8594_v24  ;;  %v6749_v13 = vpop.f32.mrb[68].mxu1  ;;  %v1739_v36 = vpop.f32.mrb[69].mxu0  ;;  %v2044_v44 = vrot.slane %v6823_v9, 2 }
 0x173   : > { %v1398_v30 = vrot.slane %v6749_v13, 1  ;;  %v1101_v26 = vpop.f32.mrb[69].mxu1  ;;  %v2040_v40 = vrot.slane %v1739_v36, 2  ;;  %v6824_v23 = vpop.f32.mrb[70].mxu0 }
 0x174   : > { %v1394_v58 = vrot.slane %v1101_v26, 1  ;;  %v2046_v25 = vrot.slane %v6824_v23, 2  ;;  %v1742_v48 = vpop.f32.mrb[71].mxu0  ;;  %v6750_v46 = vpop.f32.mrb[70].mxu1 }
 0x175   : > { %v2041_v38 = vsel %vm1984_vm3, %v2038_v21, %v2040_v40  ;;  %v2042_v5 = vrot.slane %v1742_v48, 2  ;;  %v1400_v19 = vrot.slane %v6750_v46, 1  ;;  %v1104_v29 = vpop.f32.mrb[71].mxu1 }
 0x176   : > { %v8603_v24 = vadd.f32 %v2041_v38, %v1387_v28  ;;  %v2047_v12 = vsel %vm1984_vm3, %v2044_v44, %v2046_v25  ;;  %6932 = vmatmul.mubr.msk.bf16.gmra.mrb[136].mxu0 %vm490_vm1, %v8050_v31  ;;  %v1396_v13 = vrot.slane %v1104_v29, 1  ;;  %v1395_v36 = vsel %vm1330_vm2, %v1392_v15, %v1394_v58 }
 0x177   : > { %v8609_v9 = vadd.f32 %v2047_v12, %v1393_v17  ;;  %v2043_v26 = vsel %vm1984_vm3, %v2040_v40, %v2042_v5  ;;  %v2045_v23 = vsel %vm1984_vm3, %v2042_v5, %v2044_v44  ;;  %7014 = vmatmul.mubr.msk.bf16.gmra.mrb[176].mxu1 %vm490_vm1, %v8070_v35  ;;  %v1401_v21 = vsel %vm1330_vm2, %v1398_v30, %v1400_v19 }
 0x178   : > { %v8616_v28 = vadd.f32 %v2043_v26, %v1389_v27  ;;  %v8618_v48 = vadd.f32 %v2045_v23, %v1391_v10  ;;  %v1397_v31 = vsel %vm1330_vm2, %v1394_v58, %v1396_v13  ;;  %v1399_v46 = vsel %vm1330_vm2, %v1396_v13, %v1398_v30  ;;  %6935 = vmatprep.mubr.msk.bf16.mxu0 %vm490_vm1, %v8056_v33 }
 0x179   : > { %v6827_v15 = vpop.f32.mrb[72].mxu0  ;;  %7017 = vmatprep.mubr.msk.bf16.mxu1 %vm490_vm1, %v8076_v37 }
 0x17a   : > { %10110 = vst [vmem:[#allocation22_spill] sm:$0xff] %v8616_v28  ;;  %10111 = vst [vmem:[#allocation23_spill] sm:$0xff] %v8618_v48  ;;  %v6753_v17 = vpop.f32.mrb[72].mxu1  ;;  %v1755_v12 = vpop.f32.mrb[73].mxu0  ;;  %v2052_v5 = vrot.slane %v6827_v15, 2 }
 0x17b   : > { %v1406_v40 = vrot.slane %v6753_v17, 1  ;;  %v1117_v44 = vpop.f32.mrb[73].mxu1  ;;  %v2048_v38 = vrot.slane %v1755_v12, 2  ;;  %v6828_v27 = vpop.f32.mrb[74].mxu0 }
 0x17c   : > { %v1402_v10 = vrot.slane %v1117_v44, 1  ;;  %v2054_v29 = vrot.slane %v6828_v27, 2  ;;  %v1758_v26 = vpop.f32.mrb[75].mxu0  ;;  %v6754_v58 = vpop.f32.mrb[74].mxu1 }
 0x17d   : > { %v2049_v30 = vsel %vm1984_vm3, %v2046_v25, %v2048_v38  ;;  %v2050_v13 = vrot.slane %v1758_v26, 2  ;;  %v1408_v23 = vrot.slane %v6754_v58, 1  ;;  %v1120_v33 = vpop.f32.mrb[75].mxu1 }
 0x17e   : > { %v8627_v48 = vadd.f32 %v2049_v30, %v1395_v36  ;;  %v2055_v28 = vsel %vm1984_vm3, %v2052_v5, %v2054_v29  ;;  %6936 = vmatmul.mubr.msk.bf16.gmra.mrb[140].mxu0 %vm490_vm1, %v8070_v35  ;;  %v1404_v17 = vrot.slane %v1120_v33, 1  ;;  %v1403_v12 = vsel %vm1330_vm2, %v1400_v19, %v1402_v10 }
 0x17f   : > { %v8633_v15 = vadd.f32 %v2055_v28, %v1401_v21  ;;  %v2051_v44 = vsel %vm1984_vm3, %v2048_v38, %v2050_v13  ;;  %v2053_v27 = vsel %vm1984_vm3, %v2050_v13, %v2052_v5  ;;  %7018 = vmatmul.mubr.msk.bf16.gmra.mrb[180].mxu1 %vm490_vm1, %v8090_v39  ;;  %v1409_v25 = vsel %vm1330_vm2, %v1406_v40, %v1408_v23 }
 0x180   : > { %v8640_v36 = vadd.f32 %v2051_v44, %v1397_v31  ;;  %v8642_v26 = vadd.f32 %v2053_v27, %v1399_v46  ;;  %v1405_v35 = vsel %vm1330_vm2, %v1402_v10, %v1404_v17  ;;  %v1407_v58 = vsel %vm1330_vm2, %v1404_v17, %v1406_v40  ;;  %6939 = vmatprep.mubr.msk.bf16.mxu0 %vm490_vm1, %v8076_v37 }
 0x181   : > { %10112 = vst [vmem:[#allocation24_spill] sm:$0xff] %v8633_v15  ;;  %v6831_v19 = vpop.f32.mrb[76].mxu0  ;;  %7021 = vmatprep.mubr.msk.bf16.mxu1 %vm490_vm1, %v8096_v41 }
 0x182   : > { %10113 = vst [vmem:[#allocation25_spill] sm:$0xff] %v8640_v36  ;;  %10114 = vst [vmem:[#allocation26_spill] sm:$0xff] %v8642_v26  ;;  %v6757_v21 = vpop.f32.mrb[76].mxu1  ;;  %v1771_v28 = vpop.f32.mrb[77].mxu0  ;;  %v2060_v13 = vrot.slane %v6831_v19, 2 }
 0x183   : > { %v1414_v38 = vrot.slane %v6757_v21, 1  ;;  %v1133_v5 = vpop.f32.mrb[77].mxu1  ;;  %v2056_v30 = vrot.slane %v1771_v28, 2  ;;  %v6832_v31 = vpop.f32.mrb[78].mxu0 }
 0x184   : > { %v1410_v46 = vrot.slane %v1133_v5, 1  ;;  %v6758_v33 = vpop.f32.mrb[78].mxu1  ;;  %v2062_v44 = vrot.slane %v6832_v31, 2  ;;  %v1774_v10 = vpop.f32.mrb[79].mxu0 }
 0x185   : > { %v2057_v40 = vsel %vm1984_vm3, %v2054_v29, %v2056_v30  ;;  %v1416_v17 = vrot.slane %v6758_v33, 1  ;;  %v1136_v27 = vpop.f32.mrb[79].mxu1  ;;  %v2058_v37 = vrot.slane %v1774_v10, 2 }
 0x186   : > { %v8651_v26 = vadd.f32 %v2057_v40, %v1403_v12  ;;  %v2063_v36 = vsel %vm1984_vm3, %v2060_v13, %v2062_v44  ;;  %v1412_v15 = vrot.slane %v1136_v27, 1  ;;  %6940 = vmatmul.mubr.msk.bf16.gmra.mrb[144].mxu0 %vm490_vm1, %v8090_v39  ;;  %v1411_v19 = vsel %vm1330_vm2, %v1408_v23, %v1410_v46 }
 0x187   : > { %v1417_v21 = vsel %vm1330_vm2, %v1414_v38, %v1416_v17  ;;  %v8658_v28 = vadd.f32 %v2063_v36, %v1409_v25  ;;  %v2059_v29 = vsel %vm1984_vm3, %v2056_v30, %v2058_v37  ;;  %v2061_v5 = vsel %vm1984_vm3, %v2058_v37, %v2060_v13  ;;  %7022 = vmatmul.mubr.msk.bf16.gmra.mrb[184].mxu1 %vm490_vm1, %v8110_v43  ;;  %v8676_v13 = vld [vmem:[%s7918_s25] sm:$0xff]  }
 0x188   : > { %v1413_v12 = vsel %vm1330_vm2, %v1410_v46, %v1412_v15  ;;  %v1415_v31 = vsel %vm1330_vm2, %v1412_v15, %v1414_v38  ;;  %v8666_v33 = vadd.f32 %v2059_v29, %v1405_v35  ;;  %v8668_v39 = vadd.f32 %v2061_v5, %v1407_v58  ;;  %6943 = vmatprep.mubr.msk.bf16.mxu0 %vm490_vm1, %v8096_v41 }
 0x189   : > { %v6835_v23 = vpop.f32.mrb[80].mxu0  ;;  %v1566_v25 = vadd.f32 %v8288_v50, %v1417_v21  ;;  %v1564_v36 = vadd.f32 %v1413_v12, %v8290_v51  ;;  %v1565_v30 = vadd.f32 %v1415_v31, %v8294_v53  ;;  %7027 = vmatprep.mubr.msk.bf16.mxu1 %vm490_vm1, %v8676_v13  ;;  %v4339_v29 = vsel %vm605_vm0, %v8389_v16, 0 }
 0x18a   : > { %v6761_v43 = vpop.f32.mrb[80].mxu1  ;;  %v1787_v15 = vpop.f32.mrb[81].mxu0  ;;  %v2068_v41 = vrot.slane %v6835_v23, 2 }
 0x18b   : > { %v1422_v35 = vrot.slane %v6761_v43, 1  ;;  %v1149_v58 = vpop.f32.mrb[81].mxu1  ;;  %v2064_v38 = vrot.slane %v1787_v15, 2  ;;  %v6836_v46 = vpop.f32.mrb[82].mxu0  ;;  %v8688_v43 = vld [vmem:[%s7918_s25 + $0x128] sm:$0xff]  }
 0x18c   : > { %v1418_v10 = vrot.slane %v1149_v58, 1  ;;  %v6762_v40 = vpop.f32.mrb[82].mxu1  ;;  %v2070_v50 = vrot.slane %v6836_v46, 2  ;;  %v1790_v27 = vpop.f32.mrb[83].mxu0 }
 0x18d   : > { %v2065_v51 = vsel %vm1984_vm3, %v2062_v44, %v2064_v38  ;;  %v1424_v53 = vrot.slane %v6762_v40, 1  ;;  %v1152_v37 = vpop.f32.mrb[83].mxu1  ;;  %v2066_v21 = vrot.slane %v1790_v27, 2 }
 0x18e   : > { %v1419_v5 = vsel %vm1330_vm2, %v1416_v17, %v1418_v10  ;;  %v8684_v12 = vadd.f32 %v2065_v51, %v1411_v19  ;;  %v2071_v31 = vsel %vm1984_vm3, %v2068_v41, %v2070_v50  ;;  %v1420_v23 = vrot.slane %v1152_v37, 1  ;;  %6944 = vmatmul.mubr.msk.bf16.gmra.mrb[148].mxu0 %vm490_vm1, %v8688_v43  ;;  %v8698_v17 = vld [vmem:[%s7918_s25 + $0x8] sm:$0xff]  }
 0x18f   : > { %v1425_v44 = vsel %vm1330_vm2, %v1422_v35, %v1424_v53  ;;  %v8693_v15 = vadd.f32 %v2071_v31, %v1566_v25  ;;  %v2067_v58 = vsel %vm1984_vm3, %v2064_v38, %v2066_v21  ;;  %v2069_v16 = vsel %vm1984_vm3, %v2066_v21, %v2068_v41  ;;  %7028 = vmatmul.mubr.msk.bf16.vlgmr.msra.gmra.mrb[188].mxu1 %vm490_vm1, %v8698_v17  ;;  %v8713_v21 = vld [vmem:[%s7918_s25 + $0x10] sm:$0xff]  }
 0x190   : > { %v1421_v19 = vsel %vm1330_vm2, %v1418_v10, %v1420_v23  ;;  %v1423_v46 = vsel %vm1330_vm2, %v1420_v23, %v1422_v35  ;;  %v8704_v40 = vadd.f32 %v2067_v58, %v1564_v36  ;;  %v8706_v27 = vadd.f32 %v2069_v16, %v1565_v30  ;;  %7182 = vmatpush3.bf16.msra.mxu1 %v4339_v29 }
 0x191   : > { %v6839_v25 = vpop.f32.mrb[84].mxu0  ;;  %v1567_v51 = vadd.f32 %v8292_v52, %v1419_v5  ;;  %v1570_v38 = vadd.f32 %v8304_v54, %v1425_v44  ;;  %v1568_v41 = vadd.f32 %v1421_v19, %v8306_v55  ;;  %v1569_v37 = vadd.f32 %v1423_v46, %v8310_v57  ;;  %7031 = vmatprep.mubr.msk.bf16.mxu1 %vm490_vm1, %v8713_v21 }
 0x192   : > { %v6765_v35 = vpop.f32.mrb[84].mxu1  ;;  %v1803_v36 = vpop.f32.mrb[85].mxu0  ;;  %7105 = vmatprep.mubr.msk.bf16.mxu0 %vm490_vm1, %v8676_v13  ;;  %v2076_v5 = vrot.slane %v6839_v25, 2  ;;  %v4992_v19 = vsel %vm605_vm0, %v8398_v18, 0  ;;  %v8734_v18 = vld [vmem:[%s7918_s25 + $0x18] sm:$0xff]  }
 0x193   : > { %v1430_v30 = vrot.slane %v6765_v35, 1  ;;  %v1165_v10 = vpop.f32.mrb[85].mxu1  ;;  %v2072_v29 = vrot.slane %v1803_v36, 2  ;;  %v6840_v52 = vpop.f32.mrb[86].mxu0 }
 0x194   : > { %v1426_v54 = vrot.slane %v1165_v10, 1  ;;  %v6766_v31 = vpop.f32.mrb[86].mxu1  ;;  %v2078_v55 = vrot.slane %v6840_v52, 2  ;;  %v1806_v57 = vpop.f32.mrb[87].mxu0 }
 0x195   : > { %v2073_v23 = vsel %vm1984_vm3, %v2070_v50, %v2072_v29  ;;  %v1432_v44 = vrot.slane %v6766_v31, 1  ;;  %v1168_v58 = vpop.f32.mrb[87].mxu1  ;;  %v2074_v16 = vrot.slane %v1806_v57, 2 }
 0x196   : > { %v1427_v46 = vsel %vm1330_vm2, %v1424_v53, %v1426_v54  ;;  %v8723_v35 = vadd.f32 %v2073_v23, %v1567_v51  ;;  %v2079_v36 = vsel %vm1984_vm3, %v2076_v5, %v2078_v55  ;;  %v1428_v25 = vrot.slane %v1168_v58, 1  ;;  %7106 = vmatmul.mubr.msk.bf16.vlgmr.msra.gmra.mrb[152].mxu0 %vm490_vm1, %v8698_v17 }
 0x197   : > { %v1433_v10 = vsel %vm1330_vm2, %v1430_v30, %v1432_v44  ;;  %v8729_v50 = vadd.f32 %v2079_v36, %v1570_v38  ;;  %v2075_v52 = vsel %vm1984_vm3, %v2072_v29, %v2074_v16  ;;  %v2077_v31 = vsel %vm1984_vm3, %v2074_v16, %v2076_v5  ;;  %7032 = vmatmul.mubr.msk.bf16.gmra.mrb[192].mxu1 %vm490_vm1, %v8734_v18  ;;  %v8749_v36 = vld [vmem:[%s7918_s25 + $0x20] sm:$0xff]  }
 0x198   : > { %v1429_v53 = vsel %vm1330_vm2, %v1426_v54, %v1428_v25  ;;  %v1431_v51 = vsel %vm1330_vm2, %v1428_v25, %v1430_v30  ;;  %v8740_v57 = vadd.f32 %v2075_v52, %v1568_v41  ;;  %v8742_v23 = vadd.f32 %v2077_v31, %v1569_v37  ;;  %7260 = vmatpush3.bf16.msra.mxu0 %v4992_v19 }
 0x199   : > { %v6843_v38 = vpop.f32.mrb[88].mxu0  ;;  %v1571_v58 = vadd.f32 %v8308_v56, %v1427_v46  ;;  %v1574_v29 = vadd.f32 %v8322_v59, %v1433_v10  ;;  %v1572_v5 = vadd.f32 %v1429_v53, %v8324_v60  ;;  %v1573_v16 = vadd.f32 %v1431_v51, %v8330_v63  ;;  %7035 = vmatprep.mubr.msk.bf16.mxu1 %vm490_vm1, %v8749_v36 }
 0x19a   : > { %10115 = vst [vmem:[#allocation27_spill] sm:$0xff] %v8742_v23  ;;  %v6769_v30 = vpop.f32.mrb[88].mxu1  ;;  %v1819_v41 = vpop.f32.mrb[89].mxu0  ;;  %7109 = vmatprep.mubr.msk.bf16.mxu0 %vm490_vm1, %v8713_v21  ;;  %v2084_v46 = vrot.slane %v6843_v38, 2 }
 0x19b   : > { %v1438_v37 = vrot.slane %v6769_v30, 1  ;;  %v1181_v54 = vpop.f32.mrb[89].mxu1  ;;  %v2080_v19 = vrot.slane %v1819_v41, 2  ;;  %v6844_v56 = vpop.f32.mrb[90].mxu0 }
 0x19c   : > { %v1434_v59 = vrot.slane %v1181_v54, 1  ;;  %v6770_v25 = vpop.f32.mrb[90].mxu1  ;;  %v2086_v60 = vrot.slane %v6844_v56, 2  ;;  %v1822_v63 = vpop.f32.mrb[91].mxu0 }
 0x19d   : > { %v2081_v10 = vsel %vm1984_vm3, %v2078_v55, %v2080_v19  ;;  %v1440_v52 = vrot.slane %v6770_v25, 1  ;;  %v1184_v31 = vpop.f32.mrb[91].mxu1  ;;  %v2082_v53 = vrot.slane %v1822_v63, 2  ;;  %v8768_v25 = vld [vmem:[%s7918_s25 + $0x28] sm:$0xff]  }
 0x19e   : > { %v1435_v51 = vsel %vm1330_vm2, %v1432_v44, %v1434_v59  ;;  %v8757_v23 = vadd.f32 %v2081_v10, %v1571_v58  ;;  %v2087_v30 = vsel %vm1984_vm3, %v2084_v46, %v2086_v60  ;;  %v1436_v41 = vrot.slane %v1184_v31, 1  ;;  %7110 = vmatmul.mubr.msk.bf16.gmra.mrb[156].mxu0 %vm490_vm1, %v8734_v18  ;;  %v8779_v31 = vld [vmem:[%s7918_s25 + $0x30] sm:$0xff]  }
 0x19f   : > { %v1441_v38 = vsel %vm1330_vm2, %v1438_v37, %v1440_v52  ;;  %v8763_v54 = vadd.f32 %v2087_v30, %v1574_v29  ;;  %v2083_v55 = vsel %vm1984_vm3, %v2080_v19, %v2082_v53  ;;  %v2085_v56 = vsel %vm1984_vm3, %v2082_v53, %v2084_v46  ;;  %7036 = vmatmul.mubr.msk.bf16.gmra.mrb[196].mxu1 %vm490_vm1, %v8768_v25 }
 0x1a0   : > { %v1437_v44 = vsel %vm1330_vm2, %v1434_v59, %v1436_v41  ;;  %v1439_v58 = vsel %vm1330_vm2, %v1436_v41, %v1438_v37  ;;  %v8774_v63 = vadd.f32 %v2083_v55, %v1572_v5  ;;  %v8776_v10 = vadd.f32 %v2085_v56, %v1573_v16  ;;  %7039 = vmatprep.mubr.msk.bf16.mxu1 %vm490_vm1, %v8779_v31 }
 0x1a1   : > { %v6847_v29 = vpop.f32.mrb[92].mxu0  ;;  %v1575_v19 = vadd.f32 %v8326_v61, %v1435_v51  ;;  %v1578_v46 = vadd.f32 %v8340_v0, %v1441_v38  ;;  %v1576_v53 = vadd.f32 %v1437_v44, %v8342_v1  ;;  %v1577_v59 = vadd.f32 %v1439_v58, %v8346_v3  ;;  %7113 = vmatprep.mubr.msk.bf16.mxu0 %vm490_vm1, %v8749_v36 }
 0x1a2   : > { %10116 = vst [vmem:[#allocation28_spill] sm:$0xff] %v8774_v63  ;;  %10117 = vst [vmem:[#allocation29_spill] sm:$0xff] %v8776_v10  ;;  %v6773_v5 = vpop.f32.mrb[92].mxu1  ;;  %v1835_v16 = vpop.f32.mrb[93].mxu0  ;;  %v2092_v56 = vrot.slane %v6847_v29, 2 }
 0x1a3   : > { %v1446_v37 = vrot.slane %v6773_v5, 1  ;;  %v1197_v30 = vpop.f32.mrb[93].mxu1  ;;  %v2088_v41 = vrot.slane %v1835_v16, 2  ;;  %v6848_v55 = vpop.f32.mrb[94].mxu0 }
 0x1a4   : > { %v1442_v10 = vrot.slane %v1197_v30, 1  ;;  %v6774_v63 = vpop.f32.mrb[94].mxu1  ;;  %v2094_v61 = vrot.slane %v6848_v55, 2  ;;  %v1838_v51 = vpop.f32.mrb[95].mxu0  ;;  %v8802_v55 = vld [vmem:[%s7918_s25 + $0x38] sm:$0xff]  }
 0x1a5   : > { %v2089_v0 = vsel %vm1984_vm3, %v2086_v60, %v2088_v41  ;;  %v1448_v1 = vrot.slane %v6774_v63, 1  ;;  %v1200_v38 = vpop.f32.mrb[95].mxu1  ;;  %v2090_v3 = vrot.slane %v1838_v51, 2 }
 0x1a6   : > { %v1443_v44 = vsel %vm1330_vm2, %v1440_v52, %v1442_v10  ;;  %v8791_v58 = vadd.f32 %v2089_v0, %v1575_v19  ;;  %v2095_v5 = vsel %vm1984_vm3, %v2092_v56, %v2094_v61  ;;  %v1444_v16 = vrot.slane %v1200_v38, 1  ;;  %7114 = vmatmul.mubr.msk.bf16.gmra.mrb[0].mxu0 %vm490_vm1, %v8768_v25  ;;  %v8813_v38 = vld [vmem:[%s7918_s25 + $0x40] sm:$0xff]  }
 0x1a7   : > { %v1449_v29 = vsel %vm1330_vm2, %v1446_v37, %v1448_v1  ;;  %v8797_v30 = vadd.f32 %v2095_v5, %v1578_v46  ;;  %v2091_v60 = vsel %vm1984_vm3, %v2088_v41, %v2090_v3  ;;  %v2093_v63 = vsel %vm1984_vm3, %v2090_v3, %v2092_v56  ;;  %7040 = vmatmul.mubr.msk.bf16.gmra.mrb[200].mxu1 %vm490_vm1, %v8802_v55 }
 0x1a8   : > { %10118 = vst [vmem:[#allocation30_spill] sm:$0xff] %v8791_v58  ;;  %v1445_v52 = vsel %vm1330_vm2, %v1442_v10, %v1444_v16  ;;  %v1447_v19 = vsel %vm1330_vm2, %v1444_v16, %v1446_v37  ;;  %v8808_v51 = vadd.f32 %v2091_v60, %v1576_v53  ;;  %v8810_v0 = vadd.f32 %v2093_v63, %v1577_v59 }
 0x1a9   : > { %10119 = vst [vmem:[#allocation31_spill] sm:$0xff] %v8797_v30  ;;  %7043 = vmatprep.mubr.msk.bf16.mxu1 %vm490_vm1, %v8813_v38  ;;  %v6851_v46 = vpop.f32.mrb[96].mxu0  ;;  %v1579_v41 = vadd.f32 %v8344_v2, %v1443_v44  ;;  %v1582_v56 = vadd.f32 %v8356_v4, %v1449_v29  ;;  %v1580_v3 = vadd.f32 %v1445_v52, %v8358_v6  ;;  %v10129_v30 = vld [vmem:[#allocation6_spill] sm:$0xff] }
 0x1aa   : > { %10120 = vst [vmem:[#allocation32_spill] sm:$0xff] %v8808_v51  ;;  %10121 = vst [vmem:[#allocation33_spill] sm:$0xff] %v8810_v0  ;;  %v1581_v10 = vadd.f32 %v1447_v19, %v8362_v8  ;;  %7117 = vmatprep.mubr.msk.bf16.mxu0 %vm490_vm1, %v8779_v31  ;;  %v6777_v53 = vpop.f32.mrb[96].mxu1  ;;  %v1851_v59 = vpop.f32.mrb[97].mxu0  ;;  %v2100_v63 = vrot.slane %v6851_v46, 2 }
 0x1ab   : > { %v1454_v37 = vrot.slane %v6777_v53, 1  ;;  %v1213_v5 = vpop.f32.mrb[97].mxu1  ;;  %v2096_v16 = vrot.slane %v1851_v59, 2  ;;  %v6852_v60 = vpop.f32.mrb[98].mxu0 }
 0x1ac   : > { %v1450_v0 = vrot.slane %v1213_v5, 1  ;;  %v6778_v51 = vpop.f32.mrb[98].mxu1  ;;  %v2102_v2 = vrot.slane %v6852_v60, 2  ;;  %v1854_v44 = vpop.f32.mrb[99].mxu0  ;;  %v8836_v60 = vld [vmem:[%s7918_s25 + $0x48] sm:$0xff]  }
 0x1ad   : > { %v2097_v4 = vsel %vm1984_vm3, %v2094_v61, %v2096_v16  ;;  %v1456_v6 = vrot.slane %v6778_v51, 1  ;;  %v1216_v29 = vpop.f32.mrb[99].mxu1  ;;  %v2098_v8 = vrot.slane %v1854_v44, 2 }
 0x1ae   : > { %v1451_v52 = vsel %vm1330_vm2, %v1448_v1, %v1450_v0  ;;  %v8825_v19 = vadd.f32 %v2097_v4, %v1579_v41  ;;  %v2103_v53 = vsel %vm1984_vm3, %v2100_v63, %v2102_v2  ;;  %v1452_v59 = vrot.slane %v1216_v29, 1  ;;  %7118 = vmatmul.mubr.msk.bf16.gmra.mrb[4].mxu0 %vm490_vm1, %v8802_v55  ;;  %v8847_v29 = vld [vmem:[%s7918_s25 + $0x50] sm:$0xff]  }
 0x1af   : > { %v1457_v46 = vsel %vm1330_vm2, %v1454_v37, %v1456_v6  ;;  %v8831_v5 = vadd.f32 %v2103_v53, %v1582_v56  ;;  %v2099_v61 = vsel %vm1984_vm3, %v2096_v16, %v2098_v8  ;;  %v2101_v51 = vsel %vm1984_vm3, %v2098_v8, %v2100_v63  ;;  %7044 = vmatmul.mubr.msk.bf16.gmra.mrb[204].mxu1 %vm490_vm1, %v8836_v60  ;;  %v10126_v16 = vld [vmem:[#allocation2_spill] sm:$0xff]  ;;  %v10127_v8 = vld [vmem:[#allocation3_spill] sm:$0xff] }
 0x1b0   : > { %10122 = vst [vmem:[#allocation34_spill] sm:$0xff] %v8825_v19  ;;  %v1453_v1 = vsel %vm1330_vm2, %v1450_v0, %v1452_v59  ;;  %v1455_v41 = vsel %vm1330_vm2, %v1452_v59, %v1454_v37  ;;  %v8842_v44 = vadd.f32 %v2099_v61, %v1580_v3  ;;  %v8844_v4 = vadd.f32 %v2101_v51, %v1581_v10 }
 0x1b1   : > { %10123 = vst [vmem:[#allocation35_spill] sm:$0xff] %v8831_v5  ;;  %7047 = vmatprep.mubr.msk.bf16.mxu1 %vm490_vm1, %v8847_v29  ;;  %v6855_v56 = vpop.f32.mrb[100].mxu0  ;;  %v1583_v63 = vadd.f32 %v10126_v16, %v1451_v52  ;;  %v1586_v53 = vadd.f32 %v10127_v8, %v1457_v46  ;;  %v10128_v5 = vld [vmem:[#allocation4_spill] sm:$0xff]  ;;  %v1585_v0 = vadd.f32 %v1455_v41, %v10129_v30 }
 0x1b2   : > { %10124 = vst [vmem:[#allocation36_spill] sm:$0xff] %v8842_v44  ;;  %10125 = vst [vmem:[#allocation37_spill] sm:$0xff] %v8844_v4  ;;  %v1584_v19 = vadd.f32 %v1453_v1, %v10128_v5  ;;  %7121 = vmatprep.mubr.msk.bf16.mxu0 %vm490_vm1, %v8813_v38  ;;  %v6781_v3 = vpop.f32.mrb[100].mxu1  ;;  %v1867_v10 = vpop.f32.mrb[101].mxu0  ;;  %v2108_v51 = vrot.slane %v6855_v56, 2 }
 0x1b3   : > { %v1229_v37 = vpop.f32.mrb[101].mxu1  ;;  %v2104_v59 = vrot.slane %v1867_v10, 2  ;;  %v6856_v61 = vpop.f32.mrb[102].mxu0  ;;  %v8869_v10 = vld [vmem:[%s7918_s25 + $0x58] sm:$0xff]  }
 0x1b4   : > { %v1458_v4 = vrot.slane %v1229_v37, 1  ;;  %v2110_v44 = vrot.slane %v6856_v61, 2  ;;  %v1870_v58 = vpop.f32.mrb[103].mxu0  ;;  %v6782_v52 = vpop.f32.mrb[102].mxu1 }
 0x1b5   : > { %v2105_v46 = vsel %vm1984_vm3, %v2102_v2, %v2104_v59  ;;  %v2106_v5 = vrot.slane %v1870_v58, 2  ;;  %v1232_v1 = vpop.f32.mrb[103].mxu1  ;;  %v10131_v58 = vld [vmem:[#allocation5_spill] sm:$0xff] }
 0x1b6   : > { %v1459_v30 = vsel %vm1330_vm2, %v1456_v6, %v1458_v4  ;;  %v8859_v41 = vadd.f32 %v2105_v46, %v1583_v63  ;;  %v2111_v16 = vsel %vm1984_vm3, %v2108_v51, %v2110_v44  ;;  %7122 = vmatmul.mubr.msk.bf16.gmra.mrb[8].mxu0 %vm490_vm1, %v8836_v60  ;;  %v8879_v63 = vld [vmem:[%s7918_s25 + $0x60] sm:$0xff]  }
 0x1b7   : > { %v8864_v8 = vadd.f32 %v2111_v16, %v1586_v53  ;;  %v2107_v56 = vsel %vm1984_vm3, %v2104_v59, %v2106_v5  ;;  %v2109_v3 = vsel %vm1984_vm3, %v2106_v5, %v2108_v51  ;;  %7048 = vmatmul.mubr.msk.bf16.gmra.mrb[208].mxu1 %vm490_vm1, %v8869_v10  ;;  %v1587_v2 = vadd.f32 %v10131_v58, %v1459_v30  ;;  %v8891_v30 = vld [vmem:[%s7918_s25 + $0x68] sm:$0xff]   ;;  %v8898_v16 = vld [vmem:[%s7918_s25 + $0x70] sm:$0xff]  }
 0x1b8   : > { %v8874_v6 = vadd.f32 %v2107_v56, %v1584_v19  ;;  %v8876_v4 = vadd.f32 %v2109_v3, %v1585_v0  ;;  %7051 = vmatprep.mubr.msk.bf16.mxu1 %vm490_vm1, %v8879_v63  ;;  %7125 = vmatprep.mubr.msk.bf16.mxu0 %vm490_vm1, %v8847_v29  ;;  %10135 = vst [vmem:[#allocation5_spill] sm:$0xff] %v8891_v30  ;;  %10136 = vst [vmem:[#allocation38_spill] sm:$0xff] %v8898_v16 }
 0x1b9   : > { %10130 = vst [vmem:[#allocation2_spill] sm:$0xff] %v8864_v8  ;;  %v6859_v53 = vpop.f32.mrb[104].mxu0 }
 0x1ba   : > { %10132 = vst [vmem:[#allocation3_spill] sm:$0xff] %v8874_v6  ;;  %10133 = vst [vmem:[#allocation4_spill] sm:$0xff] %v8876_v4  ;;  %v1883_v37 = vpop.f32.mrb[105].mxu0  ;;  %v6785_v59 = vpop.f32.mrb[104].mxu1 }
 0x1bb   : > { %v2112_v61 = vrot.slane %v1883_v37, 2  ;;  %v6860_v51 = vpop.f32.mrb[106].mxu0  ;;  %v1242_v52 = vpop.f32.mrb[105].mxu1 }
 0x1bc   : > { %v1886_v19 = vpop.f32.mrb[107].mxu0  ;;  %v6786_v46 = vpop.f32.mrb[106].mxu1  ;;  %v8912_v51 = vld [vmem:[%s7918_s25 + $0x80] sm:$0xff]  }
 0x1bd   : > { %v2113_v0 = vsel %vm1984_vm3, %v2110_v44, %v2112_v61  ;;  %v1244_v5 = vpop.f32.mrb[107].mxu1  ;;  %v8905_v61 = vld [vmem:[%s7918_s25 + $0x78] sm:$0xff]   ;;  %10138 = vst [vmem:[#allocation40_spill] sm:$0xff] %v8912_v51 }
 0x1be   : > { %v8886_v1 = vadd.f32 %v2113_v0, %v1587_v2  ;;  %7126 = vmatmul.mubr.msk.bf16.gmra.mrb[12].mxu0 %vm490_vm1, %v8869_v10  ;;  %10137 = vst [vmem:[#allocation39_spill] sm:$0xff] %v8905_v61 }
 0x1bf   : > { %7052 = vmatmul.mubr.msk.bf16.gmra.mrb[212].mxu1 %vm490_vm1, %v8891_v30  ;;  %7129 = vmatprep.mubr.msk.bf16.mxu0 %vm490_vm1, %v8879_v63 }
 0x1c0   : > { %10134 = vst [vmem:[#allocation6_spill] sm:$0xff] %v8886_v1  ;;  %7055 = vmatprep.mubr.msk.bf16.mxu1 %vm490_vm1, %v8898_v16 }
 0x1c1   : > { %v6863_v44 = vpop.f32.mrb[108].mxu0 }
 0x1c2   : > { %v1896_v56 = vpop.f32.mrb[109].mxu0  ;;  %v6789_v3 = vpop.f32.mrb[108].mxu1 }
 0x1c3   : > { %v6864_v58 = vpop.f32.mrb[110].mxu0  ;;  %v1254_v2 = vpop.f32.mrb[109].mxu1 }
 0x1c4   : > { %v1898_v53 = vpop.f32.mrb[111].mxu0  ;;  %v6790_v37 = vpop.f32.mrb[110].mxu1  ;;  %v8919_v58 = vld [vmem:[%s7918_s25 + $0x88] sm:$0xff]   ;;  %v8926_v2 = vld [vmem:[%s7918_s25 + $0x90] sm:$0xff]  }
 0x1c5   : > { %v1256_v59 = vpop.f32.mrb[111].mxu1  ;;  %10139 = vst [vmem:[#allocation41_spill] sm:$0xff] %v8919_v58  ;;  %10140 = vst [vmem:[#allocation42_spill] sm:$0xff] %v8926_v2 }
 0x1c6   : > { %7130 = vmatmul.mubr.msk.bf16.gmra.mrb[16].mxu0 %vm490_vm1, %v8891_v30 }
 0x1c7   : > { %7056 = vmatmul.mubr.msk.bf16.gmra.mrb[216].mxu1 %vm490_vm1, %v8905_v61  ;;  %7133 = vmatprep.mubr.msk.bf16.mxu0 %vm490_vm1, %v8898_v16  ;;  %v8934_v16 = vld [vmem:[%s7918_s25 + $0x98] sm:$0xff]  }
 0x1c8   : > { %7059 = vmatprep.mubr.msk.bf16.mxu1 %vm490_vm1, %v8912_v51 }
 0x1c9   : > { %v6867_v52 = vpop.f32.mrb[112].mxu0 }
 0x1ca   : > { %v1908_v19 = vpop.f32.mrb[113].mxu0  ;;  %v6951_v46 = vpop.f32.mrb[112].mxu1 }
 0x1cb   : > { %v6868_v0 = vpop.f32.mrb[114].mxu0  ;;  %v2675_v5 = vpop.f32.mrb[113].mxu1 }
 0x1cc   : > { %v1910_v44 = vpop.f32.mrb[115].mxu0  ;;  %v6952_v56 = vpop.f32.mrb[114].mxu1 }
 0x1cd   : > { %v2677_v3 = vpop.f32.mrb[115].mxu1 }
 0x1ce   : > { %7134 = vmatmul.mubr.msk.bf16.gmra.mrb[20].mxu0 %vm490_vm1, %v8905_v61 }
 0x1cf   : > { %7060 = vmatmul.mubr.msk.bf16.gmra.mrb[220].mxu1 %vm490_vm1, %v8919_v58  ;;  %7137 = vmatprep.mubr.msk.bf16.mxu0 %vm490_vm1, %v8912_v51 }
 0x1d0   : > { %7063 = vmatprep.mubr.msk.bf16.mxu1 %vm490_vm1, %v8926_v2 }
 0x1d1   : > { %v6873_v53 = vpop.f32.mrb[116].mxu0 }
 0x1d2   : > { %v6955_v37 = vpop.f32.mrb[116].mxu1  ;;  %v2281_v59 = vpop.f32.mrb[117].mxu0 }
 0x1d3   : > { %v3035_v52 = vrot.slane %v6955_v37, 1  ;;  %v2687_v19 = vpop.f32.mrb[117].mxu1  ;;  %v6874_v46 = vpop.f32.mrb[118].mxu0  ;;  %v8943_v59 = vld [vmem:[%s7918_s25 + $0xa0] sm:$0xff]  }
 0x1d4   : > { %v3032_v0 = vrot.slane %v2687_v19, 1  ;;  %v6956_v5 = vpop.f32.mrb[118].mxu1  ;;  %v2283_v44 = vpop.f32.mrb[119].mxu0  ;;  %v10141_v19 = vld [vmem:[#allocation7_spill] sm:$0xff] }
 0x1d5   : > { %v3037_v56 = vrot.slane %v6956_v5, 1  ;;  %v2690_v3 = vpop.f32.mrb[119].mxu1  ;;  %v10143_v5 = vld [vmem:[#allocation8_spill] sm:$0xff] }
 0x1d6   : > { %v3033_v61 = vrot.slane %v2690_v3, 1  ;;  %7138 = vmatmul.mubr.msk.bf16.gmra.mrb[24].mxu0 %vm490_vm1, %v8919_v58  ;;  %v10145_v3 = vld [vmem:[#allocation9_spill] sm:$0xff] }
 0x1d7   : > { %v3038_v51 = vsel %vm1330_vm2, %v3035_v52, %v3037_v56  ;;  %7064 = vmatmul.mubr.msk.bf16.gmra.mrb[224].mxu1 %vm490_vm1, %v8934_v16  ;;  %7141 = vmatprep.mubr.msk.bf16.mxu0 %vm490_vm1, %v8926_v2 }
 0x1d8   : > { %v3034_v53 = vsel %vm1330_vm2, %v3032_v0, %v3033_v61  ;;  %v3036_v37 = vsel %vm1330_vm2, %v3033_v61, %v3035_v52  ;;  %7067 = vmatprep.mubr.msk.bf16.mxu1 %vm490_vm1, %v8943_v59  ;;  %v8948_v46 = vadd.f32 %v10141_v19, %v3038_v51 }
 0x1d9   : > { %v8951_v44 = vadd.f32 %v10143_v5, %v3034_v53  ;;  %v8954_v58 = vadd.f32 %v10145_v3, %v3036_v37  ;;  %v8961_v53 = vld [vmem:[%s7918_s25 + $0xa8] sm:$0xff]   ;;  %v10149_v5 = vld [vmem:[#allocation10_spill] sm:$0xff] }
 0x1da   : > { %10142 = vst [vmem:[#allocation7_spill] sm:$0xff] %v8948_v46  ;;  %v6959_v2 = vpop.f32.mrb[120].mxu1 }
 0x1db   : > { %10144 = vst [vmem:[#allocation8_spill] sm:$0xff] %v8951_v44  ;;  %10146 = vst [vmem:[#allocation9_spill] sm:$0xff] %v8954_v58  ;;  %v3043_v1 = vrot.slane %v6959_v2, 1  ;;  %v2703_v0 = vpop.f32.mrb[121].mxu1 }
 0x1dc   : > { %v3039_v61 = vrot.slane %v2703_v0, 1  ;;  %v6960_v52 = vpop.f32.mrb[122].mxu1  ;;  %v10151_v0 = vld [vmem:[#allocation11_spill] sm:$0xff] }
 0x1dd   : > { %v3045_v30 = vrot.slane %v6960_v52, 1  ;;  %v2706_v4 = vpop.f32.mrb[123].mxu1 }
 0x1de   : > { %v3040_v6 = vsel %vm1330_vm2, %v3037_v56, %v3039_v61  ;;  %v3041_v8 = vrot.slane %v2706_v4, 1  ;;  %7142 = vmatmul.mubr.msk.bf16.gmra.mrb[28].mxu0 %vm490_vm1, %v8934_v16  ;;  %v8973_v56 = vld [vmem:[%s7918_s25 + $0xb0] sm:$0xff]  }
 0x1df   : > { %v3046_v51 = vsel %vm1330_vm2, %v3043_v1, %v3045_v30  ;;  %7068 = vmatmul.mubr.msk.bf16.gmra.mrb[228].mxu1 %vm490_vm1, %v8961_v53  ;;  %7145 = vmatprep.mubr.msk.bf16.mxu0 %vm490_vm1, %v8943_v59  ;;  %v8968_v2 = vadd.f32 %v8459_v14, %v3040_v6 }
 0x1e0   : > { %v3042_v37 = vsel %vm1330_vm2, %v3039_v61, %v3041_v8  ;;  %v3044_v4 = vsel %vm1330_vm2, %v3041_v8, %v3043_v1  ;;  %7071 = vmatprep.mubr.msk.bf16.mxu1 %vm490_vm1, %v8973_v56  ;;  %v8978_v19 = vadd.f32 %v8465_v47, %v3046_v51  ;;  %v8991_v51 = vld [vmem:[%s7918_s25 + $0xb8] sm:$0xff]  }
 0x1e1   : > { %10147 = vst [vmem:[#allocation43_spill] sm:$0xff] %v8968_v2  ;;  %v8981_v3 = vadd.f32 %v10149_v5, %v3042_v37  ;;  %v8984_v52 = vadd.f32 %v10151_v0, %v3044_v4  ;;  %v10155_v0 = vld [vmem:[#allocation12_spill] sm:$0xff] }
 0x1e2   : > { %10148 = vst [vmem:[#allocation44_spill] sm:$0xff] %v8978_v19  ;;  %v6963_v14 = vpop.f32.mrb[124].mxu1 }
 0x1e3   : > { %10150 = vst [vmem:[#allocation10_spill] sm:$0xff] %v8981_v3  ;;  %10152 = vst [vmem:[#allocation11_spill] sm:$0xff] %v8984_v52  ;;  %v3051_v6 = vrot.slane %v6963_v14, 1  ;;  %v2719_v61 = vpop.f32.mrb[125].mxu1 }
 0x1e4   : > { %v3047_v8 = vrot.slane %v2719_v61, 1  ;;  %v6964_v1 = vpop.f32.mrb[126].mxu1  ;;  %v10157_v61 = vld [vmem:[#allocation13_spill] sm:$0xff] }
 0x1e5   : > { %v3053_v2 = vrot.slane %v6964_v1, 1  ;;  %v2722_v58 = vpop.f32.mrb[127].mxu1 }
 0x1e6   : > { %v3048_v44 = vsel %vm1330_vm2, %v3045_v30, %v3047_v8  ;;  %v3049_v46 = vrot.slane %v2722_v58, 1  ;;  %7146 = vmatmul.mubr.msk.bf16.gmra.mrb[32].mxu0 %vm490_vm1, %v8961_v53  ;;  %v9003_v58 = vld [vmem:[%s7918_s25 + $0xc0] sm:$0xff]  }
 0x1e7   : > { %v3054_v47 = vsel %vm1330_vm2, %v3051_v6, %v3053_v2  ;;  %7072 = vmatmul.mubr.msk.bf16.gmra.mrb[232].mxu1 %vm490_vm1, %v8991_v51  ;;  %7149 = vmatprep.mubr.msk.bf16.mxu0 %vm490_vm1, %v8973_v56  ;;  %v8998_v37 = vadd.f32 %v8483_v20, %v3048_v44 }
 0x1e8   : > { %v3050_v4 = vsel %vm1330_vm2, %v3047_v8, %v3049_v46  ;;  %v3052_v30 = vsel %vm1330_vm2, %v3049_v46, %v3051_v6  ;;  %7075 = vmatprep.mubr.msk.bf16.mxu1 %vm490_vm1, %v9003_v58  ;;  %v9008_v5 = vadd.f32 %v8489_v7, %v3054_v47  ;;  %v9021_v47 = vld [vmem:[%s7918_s25 + $0xc8] sm:$0xff]  }
 0x1e9   : > { %10153 = vst [vmem:[#allocation45_spill] sm:$0xff] %v8998_v37  ;;  %v9011_v14 = vadd.f32 %v10155_v0, %v3050_v4  ;;  %v9014_v1 = vadd.f32 %v10157_v61, %v3052_v30  ;;  %v10161_v61 = vld [vmem:[#allocation14_spill] sm:$0xff] }
 0x1ea   : > { %10154 = vst [vmem:[#allocation46_spill] sm:$0xff] %v9008_v5  ;;  %v6967_v20 = vpop.f32.mrb[128].mxu1 }
 0x1eb   : > { %10156 = vst [vmem:[#allocation12_spill] sm:$0xff] %v9011_v14  ;;  %10158 = vst [vmem:[#allocation13_spill] sm:$0xff] %v9014_v1  ;;  %v3059_v44 = vrot.slane %v6967_v20, 1  ;;  %v2735_v8 = vpop.f32.mrb[129].mxu1 }
 0x1ec   : > { %v3055_v46 = vrot.slane %v2735_v8, 1  ;;  %v6968_v6 = vpop.f32.mrb[130].mxu1  ;;  %v10163_v8 = vld [vmem:[#allocation15_spill] sm:$0xff] }
 0x1ed   : > { %v3061_v37 = vrot.slane %v6968_v6, 1  ;;  %v2738_v52 = vpop.f32.mrb[131].mxu1 }
 0x1ee   : > { %v3056_v3 = vsel %vm1330_vm2, %v3053_v2, %v3055_v46  ;;  %v3057_v19 = vrot.slane %v2738_v52, 1  ;;  %7150 = vmatmul.mubr.msk.bf16.gmra.mrb[36].mxu0 %vm490_vm1, %v8991_v51  ;;  %v9033_v52 = vld [vmem:[%s7918_s25 + $0xd0] sm:$0xff]  }
 0x1ef   : > { %v3062_v7 = vsel %vm1330_vm2, %v3059_v44, %v3061_v37  ;;  %7076 = vmatmul.mubr.msk.bf16.gmra.mrb[236].mxu1 %vm490_vm1, %v9021_v47  ;;  %7153 = vmatprep.mubr.msk.bf16.mxu0 %vm490_vm1, %v9003_v58  ;;  %v9028_v4 = vadd.f32 %v8507_v22, %v3056_v3 }
 0x1f0   : > { %v3058_v30 = vsel %vm1330_vm2, %v3055_v46, %v3057_v19  ;;  %v3060_v2 = vsel %vm1330_vm2, %v3057_v19, %v3059_v44  ;;  %7079 = vmatprep.mubr.msk.bf16.mxu1 %vm490_vm1, %v9033_v52  ;;  %v9038_v0 = vadd.f32 %v8513_v62, %v3062_v7  ;;  %v9051_v7 = vld [vmem:[%s7918_s25 + $0xd8] sm:$0xff]  }
 0x1f1   : > { %10159 = vst [vmem:[#allocation47_spill] sm:$0xff] %v9028_v4  ;;  %v9041_v20 = vadd.f32 %v10161_v61, %v3058_v30  ;;  %v9044_v6 = vadd.f32 %v10163_v8, %v3060_v2  ;;  %v10167_v8 = vld [vmem:[#allocation16_spill] sm:$0xff] }
 0x1f2   : > { %10160 = vst [vmem:[#allocation48_spill] sm:$0xff] %v9038_v0  ;;  %v6971_v22 = vpop.f32.mrb[132].mxu1 }
 0x1f3   : > { %10162 = vst [vmem:[#allocation14_spill] sm:$0xff] %v9041_v20  ;;  %10164 = vst [vmem:[#allocation15_spill] sm:$0xff] %v9044_v6  ;;  %v3067_v3 = vrot.slane %v6971_v22, 1  ;;  %v2751_v46 = vpop.f32.mrb[133].mxu1 }
 0x1f4   : > { %v3063_v19 = vrot.slane %v2751_v46, 1  ;;  %v6972_v44 = vpop.f32.mrb[134].mxu1  ;;  %v10169_v46 = vld [vmem:[#allocation17_spill] sm:$0xff] }
 0x1f5   : > { %v3069_v4 = vrot.slane %v6972_v44, 1  ;;  %v2754_v1 = vpop.f32.mrb[135].mxu1 }
 0x1f6   : > { %v3064_v14 = vsel %vm1330_vm2, %v3061_v37, %v3063_v19  ;;  %v3065_v5 = vrot.slane %v2754_v1, 1  ;;  %7154 = vmatmul.mubr.msk.bf16.gmra.mrb[120].mxu0 %vm490_vm1, %v9021_v47  ;;  %v9063_v1 = vld [vmem:[%s7918_s25 + $0xe0] sm:$0xff]  }
 0x1f7   : > { %v3070_v62 = vsel %vm1330_vm2, %v3067_v3, %v3069_v4  ;;  %7080 = vmatmul.mubr.msk.bf16.gmra.mrb[240].mxu1 %vm490_vm1, %v9051_v7  ;;  %7157 = vmatprep.mubr.msk.bf16.mxu0 %vm490_vm1, %v9033_v52  ;;  %v9058_v30 = vadd.f32 %v8531_v32, %v3064_v14 }
 0x1f8   : > { %v3066_v2 = vsel %vm1330_vm2, %v3063_v19, %v3065_v5  ;;  %v3068_v37 = vsel %vm1330_vm2, %v3065_v5, %v3067_v3  ;;  %7083 = vmatprep.mubr.msk.bf16.mxu1 %vm490_vm1, %v9063_v1  ;;  %v9068_v61 = vadd.f32 %v8537_v49, %v3070_v62  ;;  %v9081_v62 = vld [vmem:[%s7918_s25 + $0xe8] sm:$0xff]  }
 0x1f9   : > { %10165 = vst [vmem:[#allocation49_spill] sm:$0xff] %v9058_v30  ;;  %v9071_v22 = vadd.f32 %v10167_v8, %v3066_v2  ;;  %v9074_v44 = vadd.f32 %v10169_v46, %v3068_v37  ;;  %v10173_v46 = vld [vmem:[#allocation18_spill] sm:$0xff] }
 0x1fa   : > { %10166 = vst [vmem:[#allocation50_spill] sm:$0xff] %v9068_v61  ;;  %v6975_v32 = vpop.f32.mrb[136].mxu1 }
 0x1fb   : > { %10168 = vst [vmem:[#allocation16_spill] sm:$0xff] %v9071_v22  ;;  %10170 = vst [vmem:[#allocation17_spill] sm:$0xff] %v9074_v44  ;;  %v3075_v14 = vrot.slane %v6975_v32, 1  ;;  %v2767_v19 = vpop.f32.mrb[137].mxu1 }
 0x1fc   : > { %v3071_v5 = vrot.slane %v2767_v19, 1  ;;  %v6976_v3 = vpop.f32.mrb[138].mxu1  ;;  %v10175_v19 = vld [vmem:[#allocation19_spill] sm:$0xff] }
 0x1fd   : > { %v3077_v30 = vrot.slane %v6976_v3, 1  ;;  %v2770_v6 = vpop.f32.mrb[139].mxu1 }
 0x1fe   : > { %v3072_v20 = vsel %vm1330_vm2, %v3069_v4, %v3071_v5  ;;  %v3073_v0 = vrot.slane %v2770_v6, 1  ;;  %7158 = vmatmul.mubr.msk.bf16.gmra.mrb[124].mxu0 %vm490_vm1, %v9051_v7  ;;  %v9093_v6 = vld [vmem:[%s7918_s25 + $0xf0] sm:$0xff]  }
 0x1ff   : > { %v3078_v49 = vsel %vm1330_vm2, %v3075_v14, %v3077_v30  ;;  %7084 = vmatmul.mubr.msk.bf16.gmra.mrb[244].mxu1 %vm490_vm1, %v9081_v62  ;;  %7161 = vmatprep.mubr.msk.bf16.mxu0 %vm490_vm1, %v9063_v1  ;;  %v9088_v2 = vadd.f32 %v8555_v34, %v3072_v20 }
 0x200   : > { %v3074_v37 = vsel %vm1330_vm2, %v3071_v5, %v3073_v0  ;;  %v3076_v4 = vsel %vm1330_vm2, %v3073_v0, %v3075_v14  ;;  %7087 = vmatprep.mubr.msk.bf16.mxu1 %vm490_vm1, %v9093_v6  ;;  %v9098_v8 = vadd.f32 %v8561_v42, %v3078_v49  ;;  %v9111_v49 = vld [vmem:[%s7918_s25 + $0xf8] sm:$0xff]  }
 0x201   : > { %10171 = vst [vmem:[#allocation51_spill] sm:$0xff] %v9088_v2  ;;  %v9101_v32 = vadd.f32 %v10173_v46, %v3074_v37  ;;  %v9104_v3 = vadd.f32 %v10175_v19, %v3076_v4  ;;  %v10179_v19 = vld [vmem:[#allocation20_spill] sm:$0xff] }
 0x202   : > { %10172 = vst [vmem:[#allocation52_spill] sm:$0xff] %v9098_v8  ;;  %v6979_v34 = vpop.f32.mrb[140].mxu1 }
 0x203   : > { %10174 = vst [vmem:[#allocation18_spill] sm:$0xff] %v9101_v32  ;;  %10176 = vst [vmem:[#allocation19_spill] sm:$0xff] %v9104_v3  ;;  %v3083_v20 = vrot.slane %v6979_v34, 1  ;;  %v2783_v5 = vpop.f32.mrb[141].mxu1 }
 0x204   : > { %v3079_v0 = vrot.slane %v2783_v5, 1  ;;  %v6980_v14 = vpop.f32.mrb[142].mxu1  ;;  %v10181_v5 = vld [vmem:[#allocation21_spill] sm:$0xff] }
 0x205   : > { %v3085_v2 = vrot.slane %v6980_v14, 1  ;;  %v2786_v44 = vpop.f32.mrb[143].mxu1 }
 0x206   : > { %v3080_v22 = vsel %vm1330_vm2, %v3077_v30, %v3079_v0  ;;  %v3081_v61 = vrot.slane %v2786_v44, 1  ;;  %7162 = vmatmul.mubr.msk.bf16.gmra.mrb[128].mxu0 %vm490_vm1, %v9081_v62  ;;  %v9123_v44 = vld [vmem:[%s7918_s25 + $0x100] sm:$0xff]  }
 0x207   : > { %v3086_v42 = vsel %vm1330_vm2, %v3083_v20, %v3085_v2  ;;  %7088 = vmatmul.mubr.msk.bf16.gmra.mrb[248].mxu1 %vm490_vm1, %v9111_v49  ;;  %7165 = vmatprep.mubr.msk.bf16.mxu0 %vm490_vm1, %v9093_v6  ;;  %v9118_v37 = vadd.f32 %v8579_v11, %v3080_v22 }
 0x208   : > { %v3082_v4 = vsel %vm1330_vm2, %v3079_v0, %v3081_v61  ;;  %v3084_v30 = vsel %vm1330_vm2, %v3081_v61, %v3083_v20  ;;  %7091 = vmatprep.mubr.msk.bf16.mxu1 %vm490_vm1, %v9123_v44  ;;  %v9128_v46 = vadd.f32 %v8585_v45, %v3086_v42  ;;  %v9141_v42 = vld [vmem:[%s7918_s25 + $0x108] sm:$0xff]  }
 0x209   : > { %10177 = vst [vmem:[#allocation53_spill] sm:$0xff] %v9118_v37  ;;  %v9131_v34 = vadd.f32 %v10179_v19, %v3082_v4  ;;  %v9134_v14 = vadd.f32 %v10181_v5, %v3084_v30  ;;  %v10186_v5 = vld [vmem:[#allocation22_spill] sm:$0xff] }
 0x20a   : > { %10178 = vst [vmem:[#allocation54_spill] sm:$0xff] %v9128_v46  ;;  %v6983_v11 = vpop.f32.mrb[144].mxu1 }
 0x20b   : > { %10180 = vst [vmem:[#allocation20_spill] sm:$0xff] %v9131_v34  ;;  %10182 = vst [vmem:[#allocation21_spill] sm:$0xff] %v9134_v14  ;;  %v3091_v22 = vrot.slane %v6983_v11, 1  ;;  %v2799_v0 = vpop.f32.mrb[145].mxu1 }
 0x20c   : > { %v3087_v61 = vrot.slane %v2799_v0, 1  ;;  %v6984_v20 = vpop.f32.mrb[146].mxu1  ;;  %v10188_v0 = vld [vmem:[#allocation23_spill] sm:$0xff] }
 0x20d   : > { %v3093_v37 = vrot.slane %v6984_v20, 1  ;;  %v2802_v3 = vpop.f32.mrb[147].mxu1 }
 0x20e   : > { %v3088_v32 = vsel %vm1330_vm2, %v3085_v2, %v3087_v61  ;;  %v3089_v8 = vrot.slane %v2802_v3, 1  ;;  %7166 = vmatmul.mubr.msk.bf16.gmra.mrb[132].mxu0 %vm490_vm1, %v9111_v49  ;;  %v9153_v3 = vld [vmem:[%s7918_s25 + $0x110] sm:$0xff]  }
 0x20f   : > { %v3094_v45 = vsel %vm1330_vm2, %v3091_v22, %v3093_v37  ;;  %7092 = vmatmul.mubr.msk.bf16.gmra.mrb[252].mxu1 %vm490_vm1, %v9141_v42  ;;  %7169 = vmatprep.mubr.msk.bf16.mxu0 %vm490_vm1, %v9123_v44  ;;  %v9148_v4 = vadd.f32 %v8603_v24, %v3088_v32  ;;  %10184 = vst [vmem:[#allocation56_spill] sm:$0xff] %v9153_v3 }
 0x210   : > { %v3090_v30 = vsel %vm1330_vm2, %v3087_v61, %v3089_v8  ;;  %v3092_v2 = vsel %vm1330_vm2, %v3089_v8, %v3091_v22  ;;  %7095 = vmatprep.mubr.msk.bf16.mxu1 %vm490_vm1, %v9153_v3  ;;  %v9158_v19 = vadd.f32 %v8609_v9, %v3094_v45  ;;  %v9171_v45 = vld [vmem:[%s7918_s25 + $0x118] sm:$0xff]  }
 0x211   : > { %10183 = vst [vmem:[#allocation55_spill] sm:$0xff] %v9148_v4  ;;  %v9161_v11 = vadd.f32 %v10186_v5, %v3090_v30  ;;  %v9164_v20 = vadd.f32 %v10188_v0, %v3092_v2  ;;  %v10191_v5 = vld [vmem:[#allocation24_spill] sm:$0xff] }
 0x212   : > { %10185 = vst [vmem:[#allocation57_spill] sm:$0xff] %v9158_v19  ;;  %v6987_v24 = vpop.f32.mrb[148].mxu1 }
 0x213   : > { %10187 = vst [vmem:[#allocation22_spill] sm:$0xff] %v9161_v11  ;;  %10189 = vst [vmem:[#allocation23_spill] sm:$0xff] %v9164_v20  ;;  %v3099_v32 = vrot.slane %v6987_v24, 1  ;;  %v2815_v61 = vpop.f32.mrb[149].mxu1  ;;  %v10192_v24 = vld [vmem:[#allocation25_spill] sm:$0xff] }
 0x214   : > { %v3095_v8 = vrot.slane %v2815_v61, 1  ;;  %v6988_v22 = vpop.f32.mrb[150].mxu1 }
 0x215   : > { %v3101_v4 = vrot.slane %v6988_v22, 1  ;;  %v2818_v14 = vpop.f32.mrb[151].mxu1  ;;  %v10193_v22 = vld [vmem:[#allocation26_spill] sm:$0xff] }
 0x216   : > { %v3096_v34 = vsel %vm1330_vm2, %v3093_v37, %v3095_v8  ;;  %v3097_v46 = vrot.slane %v2818_v14, 1  ;;  %7170 = vmatmul.mubr.msk.bf16.gmra.mrb[136].mxu0 %vm490_vm1, %v9141_v42  ;;  %v9183_v14 = vld [vmem:[%s7918_s25 + $0x120] sm:$0xff]  }
 0x217   : > { %v3102_v9 = vsel %vm1330_vm2, %v3099_v32, %v3101_v4  ;;  %7096 = vmatmul.mubr.msk.bf16.gmra.mrb[24].mxu1 %vm490_vm1, %v9171_v45  ;;  %7173 = vmatprep.mubr.msk.bf16.mxu0 %vm490_vm1, %v9153_v3  ;;  %v9178_v30 = vadd.f32 %v8627_v48, %v3096_v34 }
 0x218   : > { %v3098_v2 = vsel %vm1330_vm2, %v3095_v8, %v3097_v46  ;;  %v3100_v37 = vsel %vm1330_vm2, %v3097_v46, %v3099_v32  ;;  %7099 = vmatprep.mubr.msk.bf16.mxu1 %vm490_vm1, %v9183_v14  ;;  %v9188_v0 = vadd.f32 %v10191_v5, %v3102_v9 }
 0x219   : > { %10190 = vst [vmem:[#allocation58_spill] sm:$0xff] %v9178_v30  ;;  %v9191_v61 = vadd.f32 %v10192_v24, %v3098_v2  ;;  %v9194_v20 = vadd.f32 %v10193_v22, %v3100_v37 }
 0x21a   : > { %v6991_v48 = vpop.f32.mrb[152].mxu1 }
 0x21b   : > { %v3107_v34 = vrot.slane %v6991_v48, 1  ;;  %v2831_v30 = vpop.f32.mrb[153].mxu1 }
 0x21c   : > { %v3103_v8 = vrot.slane %v2831_v30, 1  ;;  %v6992_v11 = vpop.f32.mrb[154].mxu1 }
 0x21d   : > { %v3109_v46 = vrot.slane %v6992_v11, 1  ;;  %v2834_v32 = vpop.f32.mrb[155].mxu1 }
 0x21e   : > { %v3104_v19 = vsel %vm1330_vm2, %v3101_v4, %v3103_v8  ;;  %v3105_v3 = vrot.slane %v2834_v32, 1  ;;  %7174 = vmatmul.mubr.msk.bf16.gmra.mrb[140].mxu0 %vm490_vm1, %v9171_v45 }
 0x21f   : > { %v3110_v9 = vsel %vm1330_vm2, %v3107_v34, %v3109_v46  ;;  %7100 = vmatmul.mubr.msk.bf16.gmra.mrb[28].mxu1 %vm490_vm1, %v8688_v43  ;;  %7177 = vmatprep.mubr.msk.bf16.mxu0 %vm490_vm1, %v9183_v14  ;;  %v9205_v2 = vadd.f32 %v8651_v26, %v3104_v19 }
 0x220   : > { %v3106_v11 = vsel %vm1330_vm2, %v3103_v8, %v3105_v3  ;;  %v3108_v30 = vsel %vm1330_vm2, %v3105_v3, %v3107_v34  ;;  %7183 = vmatprep.mubr.msk.bf16.mxu1 %vm490_vm1, %v8676_v13  ;;  %v9212_v4 = vadd.f32 %v8658_v28, %v3110_v9 }
 0x221   : > { %v9215_v37 = vadd.f32 %v8666_v33, %v3106_v11  ;;  %v9218_v5 = vadd.f32 %v8668_v39, %v3108_v30 }
 0x222   : > { %v6995_v24 = vpop.f32.mrb[156].mxu1 }
 0x223   : > { %v3115_v22 = vrot.slane %v6995_v24, 1  ;;  %v2847_v26 = vpop.f32.mrb[157].mxu1 }
 0x224   : > { %v3111_v19 = vrot.slane %v2847_v26, 1  ;;  %v6996_v48 = vpop.f32.mrb[158].mxu1 }
 0x225   : > { %v3117_v8 = vrot.slane %v6996_v48, 1  ;;  %v2850_v32 = vpop.f32.mrb[159].mxu1 }
 0x226   : > { %v3112_v3 = vsel %vm1330_vm2, %v3109_v46, %v3111_v19  ;;  %v3113_v34 = vrot.slane %v2850_v32, 1  ;;  %7178 = vmatmul.mubr.msk.bf16.gmra.mrb[160].mxu0 %vm490_vm1, %v8688_v43 }
 0x227   : > { %v3118_v28 = vsel %vm1330_vm2, %v3115_v22, %v3117_v8  ;;  %7184 = vmatmul.mubr.msk.bf16.vlgmr.msra.gmra.mrb[32].mxu1 %vm490_vm1, %v8698_v17  ;;  %7261 = vmatprep.mubr.msk.bf16.mxu0 %vm490_vm1, %v8676_v13  ;;  %v9229_v33 = vadd.f32 %v8684_v12, %v3112_v3 }
 0x228   : > { %v3114_v39 = vsel %vm1330_vm2, %v3111_v19, %v3113_v34  ;;  %v3116_v9 = vsel %vm1330_vm2, %v3113_v34, %v3115_v22  ;;  %7187 = vmatprep.mubr.msk.bf16.mxu1 %vm490_vm1, %v8713_v21  ;;  %v9236_v43 = vadd.f32 %v3118_v28, %v8693_v15  ;;  %v10194_v34 = vld [vmem:[#allocation27_spill] sm:$0xff] }
 0x229   : > { %v9239_v46 = vadd.f32 %v3114_v39, %v8704_v40  ;;  %v9242_v11 = vadd.f32 %v3116_v9, %v8706_v27 }
 0x22a   : > { %v6999_v13 = vpop.f32.mrb[160].mxu1 }
 0x22b   : > { %v3123_v30 = vrot.slane %v6999_v13, 1  ;;  %v2863_v12 = vpop.f32.mrb[161].mxu1 }
 0x22c   : > { %v3119_v24 = vrot.slane %v2863_v12, 1  ;;  %v7000_v26 = vpop.f32.mrb[162].mxu1 }
 0x22d   : > { %v3125_v19 = vrot.slane %v7000_v26, 1  ;;  %v2866_v48 = vpop.f32.mrb[163].mxu1 }
 0x22e   : > { %v3120_v22 = vsel %vm1330_vm2, %v3117_v8, %v3119_v24  ;;  %v3121_v32 = vrot.slane %v2866_v48, 1  ;;  %7262 = vmatmul.mubr.msk.bf16.vlgmr.msra.gmra.mrb[164].mxu0 %vm490_vm1, %v8698_v17 }
 0x22f   : > { %v3126_v15 = vsel %vm1330_vm2, %v3123_v30, %v3125_v19  ;;  %7188 = vmatmul.mubr.msk.bf16.gmra.mrb[36].mxu1 %vm490_vm1, %v8734_v18  ;;  %7265 = vmatprep.mubr.msk.bf16.mxu0 %vm490_vm1, %v8713_v21  ;;  %v9253_v40 = vadd.f32 %v3120_v22, %v8723_v35 }
 0x230   : > { %v3122_v27 = vsel %vm1330_vm2, %v3119_v24, %v3121_v32  ;;  %v3124_v3 = vsel %vm1330_vm2, %v3121_v32, %v3123_v30  ;;  %7191 = vmatprep.mubr.msk.bf16.mxu1 %vm490_vm1, %v8749_v36  ;;  %v9260_v17 = vadd.f32 %v3126_v15, %v8729_v50  ;;  %v10196_v15 = vld [vmem:[#allocation29_spill] sm:$0xff] }
 0x231   : > { %v9263_v8 = vadd.f32 %v3122_v27, %v8740_v57  ;;  %v9266_v28 = vadd.f32 %v3124_v3, %v10194_v34 }
 0x232   : > { %v7003_v21 = vpop.f32.mrb[164].mxu1 }
 0x233   : > { %v3131_v39 = vrot.slane %v7003_v21, 1  ;;  %v2879_v35 = vpop.f32.mrb[165].mxu1 }
 0x234   : > { %v3127_v9 = vrot.slane %v2879_v35, 1  ;;  %v7004_v13 = vpop.f32.mrb[166].mxu1 }
 0x235   : > { %v3133_v12 = vrot.slane %v7004_v13, 1  ;;  %v2882_v24 = vpop.f32.mrb[167].mxu1 }
 0x236   : > { %v3128_v30 = vsel %vm1330_vm2, %v3125_v19, %v3127_v9  ;;  %v3129_v26 = vrot.slane %v2882_v24, 1  ;;  %7266 = vmatmul.mubr.msk.bf16.gmra.mrb[168].mxu0 %vm490_vm1, %v8734_v18  ;;  %v10195_v19 = vld [vmem:[#allocation28_spill] sm:$0xff]  ;;  %v10197_v24 = vld [vmem:[#allocation30_spill] sm:$0xff] }
 0x237   : > { %v3134_v50 = vsel %vm1330_vm2, %v3131_v39, %v3133_v12  ;;  %7192 = vmatmul.mubr.msk.bf16.gmra.mrb[40].mxu1 %vm490_vm1, %v8768_v25  ;;  %7269 = vmatprep.mubr.msk.bf16.mxu0 %vm490_vm1, %v8749_v36  ;;  %v9277_v57 = vadd.f32 %v3128_v30, %v8757_v23 }
 0x238   : > { %v3130_v48 = vsel %vm1330_vm2, %v3127_v9, %v3129_v26  ;;  %v3132_v22 = vsel %vm1330_vm2, %v3129_v26, %v3131_v39  ;;  %7195 = vmatprep.mubr.msk.bf16.mxu1 %vm490_vm1, %v8779_v31  ;;  %v9284_v18 = vadd.f32 %v3134_v50, %v8763_v54 }
 0x239   : > { %v9287_v32 = vadd.f32 %v3130_v48, %v10195_v19  ;;  %v9290_v27 = vadd.f32 %v3132_v22, %v10196_v15  ;;  %v10199_v48 = vld [vmem:[#allocation32_spill] sm:$0xff]  ;;  %v10200_v19 = vld [vmem:[#allocation33_spill] sm:$0xff] }
 0x23a   : > { %v7007_v36 = vpop.f32.mrb[168].mxu1 }
 0x23b   : > { %v3139_v3 = vrot.slane %v7007_v36, 1  ;;  %v2895_v23 = vpop.f32.mrb[169].mxu1 }
 0x23c   : > { %v3135_v34 = vrot.slane %v2895_v23, 1  ;;  %v7008_v21 = vpop.f32.mrb[170].mxu1 }
 0x23d   : > { %v3141_v35 = vrot.slane %v7008_v21, 1  ;;  %v2898_v9 = vpop.f32.mrb[171].mxu1 }
 0x23e   : > { %v3136_v39 = vsel %vm1330_vm2, %v3133_v12, %v3135_v34  ;;  %v3137_v13 = vrot.slane %v2898_v9, 1  ;;  %7270 = vmatmul.mubr.msk.bf16.gmra.mrb[172].mxu0 %vm490_vm1, %v8768_v25  ;;  %v10198_v12 = vld [vmem:[#allocation31_spill] sm:$0xff] }
 0x23f   : > { %v3142_v54 = vsel %vm1330_vm2, %v3139_v3, %v3141_v35  ;;  %7196 = vmatmul.mubr.msk.bf16.gmra.mrb[44].mxu1 %vm490_vm1, %v8802_v55  ;;  %7273 = vmatprep.mubr.msk.bf16.mxu0 %vm490_vm1, %v8779_v31  ;;  %v9301_v30 = vadd.f32 %v3136_v39, %v10197_v24  ;;  %v10202_v24 = vld [vmem:[#allocation34_spill] sm:$0xff] }
 0x240   : > { %v3138_v26 = vsel %vm1330_vm2, %v3135_v34, %v3137_v13  ;;  %v3140_v50 = vsel %vm1330_vm2, %v3137_v13, %v3139_v3  ;;  %7199 = vmatprep.mubr.msk.bf16.mxu1 %vm490_vm1, %v8813_v38  ;;  %v9308_v25 = vadd.f32 %v3142_v54, %v10198_v12 }
 0x241   : > { %v9311_v22 = vadd.f32 %v3138_v26, %v10199_v48  ;;  %v9314_v15 = vadd.f32 %v3140_v50, %v10200_v19  ;;  %v10206_v48 = vld [vmem:[#allocation36_spill] sm:$0xff] }
 0x242   : > { %v7011_v31 = vpop.f32.mrb[172].mxu1 }
 0x243   : > { %10201 = vst [vmem:[#allocation24_spill] sm:$0xff] %v9314_v15  ;;  %v3147_v36 = vrot.slane %v7011_v31, 1  ;;  %v2911_v23 = vpop.f32.mrb[173].mxu1  ;;  %v10208_v31 = vld [vmem:[#allocation37_spill] sm:$0xff] }
 0x244   : > { %v3143_v21 = vrot.slane %v2911_v23, 1  ;;  %v7012_v9 = vpop.f32.mrb[174].mxu1 }
 0x245   : > { %v3149_v34 = vrot.slane %v7012_v9, 1  ;;  %v2914_v39 = vpop.f32.mrb[175].mxu1 }
 0x246   : > { %v3144_v3 = vsel %vm1330_vm2, %v3141_v35, %v3143_v21  ;;  %v3145_v13 = vrot.slane %v2914_v39, 1  ;;  %7274 = vmatmul.mubr.msk.bf16.gmra.mrb[176].mxu0 %vm490_vm1, %v8802_v55  ;;  %v10204_v35 = vld [vmem:[#allocation35_spill] sm:$0xff] }
 0x247   : > { %v3150_v54 = vsel %vm1330_vm2, %v3147_v36, %v3149_v34  ;;  %7200 = vmatmul.mubr.msk.bf16.gmra.mrb[48].mxu1 %vm490_vm1, %v8836_v60  ;;  %7277 = vmatprep.mubr.msk.bf16.mxu0 %vm490_vm1, %v8813_v38  ;;  %v9325_v26 = vadd.f32 %v3144_v3, %v10202_v24 }
 0x248   : > { %v3146_v50 = vsel %vm1330_vm2, %v3143_v21, %v3145_v13  ;;  %v3148_v12 = vsel %vm1330_vm2, %v3145_v13, %v3147_v36  ;;  %7203 = vmatprep.mubr.msk.bf16.mxu1 %vm490_vm1, %v8847_v29  ;;  %v9332_v55 = vadd.f32 %v3150_v54, %v10204_v35 }
 0x249   : > { %10203 = vst [vmem:[#allocation25_spill] sm:$0xff] %v9325_v26  ;;  %v9335_v19 = vadd.f32 %v3146_v50, %v10206_v48  ;;  %v9338_v23 = vadd.f32 %v3148_v12, %v10208_v31  ;;  %v10215_v31 = vld [vmem:[#allocation4_spill] sm:$0xff] }
 0x24a   : > { %10205 = vst [vmem:[#allocation26_spill] sm:$0xff] %v9332_v55  ;;  %v7015_v38 = vpop.f32.mrb[176].mxu1 }
 0x24b   : > { %10207 = vst [vmem:[#allocation27_spill] sm:$0xff] %v9335_v19  ;;  %10209 = vst [vmem:[#allocation28_spill] sm:$0xff] %v9338_v23  ;;  %v3155_v9 = vrot.slane %v7015_v38, 1  ;;  %v2927_v39 = vpop.f32.mrb[177].mxu1 }
 0x24c   : > { %v3151_v3 = vrot.slane %v2927_v39, 1  ;;  %v7016_v24 = vpop.f32.mrb[178].mxu1 }
 0x24d   : > { %v3157_v21 = vrot.slane %v7016_v24, 1  ;;  %v2930_v26 = vpop.f32.mrb[179].mxu1 }
 0x24e   : > { %v3152_v36 = vsel %vm1330_vm2, %v3149_v34, %v3151_v3  ;;  %v3153_v13 = vrot.slane %v2930_v26, 1  ;;  %7278 = vmatmul.mubr.msk.bf16.gmra.mrb[180].mxu0 %vm490_vm1, %v8836_v60  ;;  %v10211_v34 = vld [vmem:[#allocation2_spill] sm:$0xff]  ;;  %v10213_v26 = vld [vmem:[#allocation3_spill] sm:$0xff] }
 0x24f   : > { %v3158_v54 = vsel %vm1330_vm2, %v3155_v9, %v3157_v21  ;;  %7204 = vmatmul.mubr.msk.bf16.gmra.mrb[52].mxu1 %vm490_vm1, %v8869_v10  ;;  %7281 = vmatprep.mubr.msk.bf16.mxu0 %vm490_vm1, %v8847_v29  ;;  %v9349_v50 = vadd.f32 %v3152_v36, %v8859_v41 }
 0x250   : > { %v3154_v12 = vsel %vm1330_vm2, %v3151_v3, %v3153_v13  ;;  %v3156_v35 = vsel %vm1330_vm2, %v3153_v13, %v3155_v9  ;;  %7207 = vmatprep.mubr.msk.bf16.mxu1 %vm490_vm1, %v8879_v63  ;;  %v9356_v60 = vadd.f32 %v3158_v54, %v10211_v34  ;;  %v10217_v9 = vld [vmem:[#allocation5_spill] sm:$0xff]  ;;  %v10218_v13 = vld [vmem:[#allocation6_spill] sm:$0xff] }
 0x251   : > { %10210 = vst [vmem:[#allocation29_spill] sm:$0xff] %v9349_v50  ;;  %v9359_v48 = vadd.f32 %v3154_v12, %v10213_v26  ;;  %v9362_v38 = vadd.f32 %v3156_v35, %v10215_v31  ;;  %v10220_v12 = vld [vmem:[#allocation38_spill] sm:$0xff] }
 0x252   : > { %10212 = vst [vmem:[#allocation30_spill] sm:$0xff] %v9356_v60  ;;  %v7019_v29 = vpop.f32.mrb[180].mxu1 }
 0x253   : > { %10214 = vst [vmem:[#allocation31_spill] sm:$0xff] %v9359_v48  ;;  %10216 = vst [vmem:[#allocation32_spill] sm:$0xff] %v9362_v38  ;;  %v2943_v39 = vpop.f32.mrb[181].mxu1 }
 0x254   : > { %v3159_v41 = vrot.slane %v2943_v39, 1  ;;  %v7020_v24 = vpop.f32.mrb[182].mxu1 }
 0x255   : > { %v2946_v36 = vpop.f32.mrb[183].mxu1 }
 0x256   : > { %v3160_v3 = vsel %vm1330_vm2, %v3157_v21, %v3159_v41  ;;  %7282 = vmatmul.mubr.msk.bf16.gmra.mrb[184].mxu0 %vm490_vm1, %v8869_v10  ;;  %v10221_v41 = vld [vmem:[#allocation39_spill] sm:$0xff] }
 0x257   : > { %7208 = vmatmul.mubr.msk.bf16.gmra.mrb[56].mxu1 %vm490_vm1, %v10217_v9  ;;  %7285 = vmatprep.mubr.msk.bf16.mxu0 %vm490_vm1, %v8879_v63  ;;  %v9372_v54 = vadd.f32 %v3160_v3, %v10218_v13  ;;  %v10222_v63 = vld [vmem:[#allocation40_spill] sm:$0xff] }
 0x258   : > { %7211 = vmatprep.mubr.msk.bf16.mxu1 %vm490_vm1, %v10220_v12 }
 0x259   : > { %10219 = vst [vmem:[#allocation33_spill] sm:$0xff] %v9372_v54  ;;  %v6941_v35 = vpop.f32.mrb[144].mxu0 }
 0x25a   : > { %v2549_v34 = vpop.f32.mrb[145].mxu0  ;;  %v7023_v26 = vpop.f32.mrb[184].mxu1 }
 0x25b   : > { %v6942_v31 = vpop.f32.mrb[146].mxu0  ;;  %v2956_v21 = vpop.f32.mrb[185].mxu1 }
 0x25c   : > { %v2551_v29 = vpop.f32.mrb[147].mxu0  ;;  %v7024_v39 = vpop.f32.mrb[186].mxu1 }
 0x25d   : > { %v2958_v10 = vpop.f32.mrb[187].mxu1 }
 0x25e   : > { %7286 = vmatmul.mubr.msk.bf16.gmra.mrb[188].mxu0 %vm490_vm1, %v10217_v9  ;;  %v10223_v9 = vld [vmem:[#allocation41_spill] sm:$0xff] }
 0x25f   : > { %7212 = vmatmul.mubr.msk.bf16.gmra.mrb[60].mxu1 %vm490_vm1, %v10221_v41  ;;  %7289 = vmatprep.mubr.msk.bf16.mxu0 %vm490_vm1, %v10220_v12  ;;  %v10224_v12 = vld [vmem:[#allocation42_spill] sm:$0xff] }
 0x260   : > { %7215 = vmatprep.mubr.msk.bf16.mxu1 %vm490_vm1, %v10222_v63 }
 0x261   : > { %v6945_v24 = vpop.f32.mrb[148].mxu0 }
 0x262   : > { %v2561_v36 = vpop.f32.mrb[149].mxu0  ;;  %v7029_v3 = vpop.f32.mrb[188].mxu1 }
 0x263   : > { %v6946_v13 = vpop.f32.mrb[150].mxu0  ;;  %v3328_v35 = vpop.f32.mrb[189].mxu1 }
 0x264   : > { %v2563_v34 = vpop.f32.mrb[151].mxu0  ;;  %v7030_v26 = vpop.f32.mrb[190].mxu1 }
 0x265   : > { %v3330_v31 = vpop.f32.mrb[191].mxu1 }
 0x266   : > { %7290 = vmatmul.mubr.msk.bf16.gmra.mrb[192].mxu0 %vm490_vm1, %v10221_v41  ;;  %v10225_v31 = vld [vmem:[#allocation7_spill] sm:$0xff] }
 0x267   : > { %7216 = vmatmul.mubr.msk.bf16.gmra.mrb[64].mxu1 %vm490_vm1, %v10223_v9  ;;  %7293 = vmatprep.mubr.msk.bf16.mxu0 %vm490_vm1, %v10222_v63 }
 0x268   : > { %7219 = vmatprep.mubr.msk.bf16.mxu1 %vm490_vm1, %v10224_v12 }
 0x269   : > { %v7107_v21 = vpop.f32.mrb[152].mxu0 }
 0x26a   : > { %v7033_v29 = vpop.f32.mrb[192].mxu1  ;;  %v3981_v39 = vpop.f32.mrb[153].mxu0 }
 0x26b   : > { %v3688_v10 = vrot.slane %v7033_v29, 2  ;;  %v3340_v24 = vpop.f32.mrb[193].mxu1  ;;  %v7108_v36 = vpop.f32.mrb[154].mxu0 }
 0x26c   : > { %v3685_v3 = vrot.slane %v3340_v24, 2  ;;  %v7034_v13 = vpop.f32.mrb[194].mxu1  ;;  %v3983_v35 = vpop.f32.mrb[155].mxu0  ;;  %v10226_v36 = vld [vmem:[#allocation8_spill] sm:$0xff] }
 0x26d   : > { %v3690_v34 = vrot.slane %v7034_v13, 2  ;;  %v3343_v41 = vpop.f32.mrb[195].mxu1  ;;  %v10227_v13 = vld [vmem:[#allocation9_spill] sm:$0xff] }
 0x26e   : > { %v3686_v26 = vrot.slane %v3343_v41, 2  ;;  %7294 = vmatmul.mubr.msk.bf16.gmra.mrb[196].mxu0 %vm490_vm1, %v10223_v9 }
 0x26f   : > { %7220 = vmatmul.mubr.msk.bf16.gmra.mrb[68].mxu1 %vm490_vm1, %v8934_v16  ;;  %7297 = vmatprep.mubr.msk.bf16.mxu0 %vm490_vm1, %v10224_v12  ;;  %v3691_v63 = vsel %vm1984_vm3, %v3688_v10, %v3690_v34 }
 0x270   : > { %7223 = vmatprep.mubr.msk.bf16.mxu1 %vm490_vm1, %v8943_v59  ;;  %v7341_v21 = vadd.f32 %v10225_v31, %v3691_v63  ;;  %v3687_v29 = vsel %vm1984_vm3, %v3685_v3, %v3686_v26  ;;  %v3689_v39 = vsel %vm1984_vm3, %v3686_v26, %v3688_v10  ;;  %v10228_v3 = vld [vmem:[#allocation43_spill] sm:$0xff] }
 0x271   : > { %v7111_v24 = vpop.f32.mrb[156].mxu0  ;;  %v7345_v9 = vadd.f32 %v10226_v36, %v3687_v29  ;;  %v7353_v35 = vadd.f32 %v10227_v13, %v3689_v39  ;;  %v10231_v29 = vld [vmem:[#allocation11_spill] sm:$0xff] }
 0x272   : > { %v7037_v41 = vpop.f32.mrb[196].mxu1  ;;  %v3993_v54 = vpop.f32.mrb[157].mxu0 }
 0x273   : > { %v3696_v38 = vrot.slane %v7037_v41, 2  ;;  %v3356_v12 = vpop.f32.mrb[197].mxu1  ;;  %v7112_v48 = vpop.f32.mrb[158].mxu0 }
 0x274   : > { %v3692_v60 = vrot.slane %v3356_v12, 2  ;;  %v7038_v50 = vpop.f32.mrb[198].mxu1  ;;  %v3995_v23 = vpop.f32.mrb[159].mxu0 }
 0x275   : > { %v3698_v19 = vrot.slane %v7038_v50, 2  ;;  %v3359_v55 = vpop.f32.mrb[199].mxu1  ;;  %v10229_v23 = vld [vmem:[#allocation44_spill] sm:$0xff] }
 0x276   : > { %v3694_v63 = vrot.slane %v3359_v55, 2  ;;  %7298 = vmatmul.mubr.msk.bf16.gmra.mrb[200].mxu0 %vm490_vm1, %v8934_v16  ;;  %v3693_v10 = vsel %vm1984_vm3, %v3690_v34, %v3692_v60  ;;  %v10230_v34 = vld [vmem:[#allocation10_spill] sm:$0xff] }
 0x277   : > { %7224 = vmatmul.mubr.msk.bf16.gmra.mrb[72].mxu1 %vm490_vm1, %v8961_v53  ;;  %v7349_v26 = vadd.f32 %v10228_v3, %v3693_v10  ;;  %7301 = vmatprep.mubr.msk.bf16.mxu0 %vm490_vm1, %v8943_v59  ;;  %v3699_v48 = vsel %vm1984_vm3, %v3696_v38, %v3698_v19 }
 0x278   : > { %7227 = vmatprep.mubr.msk.bf16.mxu1 %vm490_vm1, %v8973_v56  ;;  %v7357_v55 = vadd.f32 %v10229_v23, %v3699_v48  ;;  %v3695_v50 = vsel %vm1984_vm3, %v3692_v60, %v3694_v63  ;;  %v3697_v16 = vsel %vm1984_vm3, %v3694_v63, %v3696_v38 }
 0x279   : > { %v7115_v54 = vpop.f32.mrb[0].mxu0  ;;  %v7361_v31 = vadd.f32 %v10230_v34, %v3695_v50  ;;  %v7369_v39 = vadd.f32 %v10231_v29, %v3697_v16  ;;  %v10236_v29 = vld [vmem:[#allocation12_spill] sm:$0xff] }
 0x27a   : > { %v7041_v24 = vpop.f32.mrb[200].mxu1  ;;  %v9422_v36 = vadd.f32 %v7341_v21, %v7115_v54  ;;  %v4005_v59 = vpop.f32.mrb[1].mxu0 }
 0x27b   : > { %v3704_v13 = vrot.slane %v7041_v24, 2  ;;  %v3372_v41 = vpop.f32.mrb[201].mxu1  ;;  %v9424_v12 = vadd.f32 %v7345_v9, %v4005_v59  ;;  %v7116_v10 = vpop.f32.mrb[2].mxu0  ;;  %v10234_v9 = vld [vmem:[#allocation45_spill] sm:$0xff] }
 0x27c   : > { %v3700_v3 = vrot.slane %v3372_v41, 2  ;;  %v7042_v48 = vpop.f32.mrb[202].mxu1  ;;  %v9426_v23 = vadd.f32 %v7349_v26, %v7116_v10  ;;  %v4008_v60 = vpop.f32.mrb[3].mxu0  ;;  %v10237_v59 = vld [vmem:[#allocation13_spill] sm:$0xff] }
 0x27d   : > { %v3706_v38 = vrot.slane %v7042_v48, 2  ;;  %v3375_v63 = vpop.f32.mrb[203].mxu1  ;;  %v9428_v15 = vadd.f32 %v7353_v35, %v4008_v60  ;;  %v10235_v35 = vld [vmem:[#allocation46_spill] sm:$0xff] }
 0x27e   : > { %10232 = vst [vmem:[#allocation34_spill] sm:$0xff] %v9426_v23  ;;  %v3702_v50 = vrot.slane %v3375_v63, 2  ;;  %7302 = vmatmul.mubr.msk.bf16.gmra.mrb[204].mxu0 %vm490_vm1, %v8961_v53  ;;  %v3701_v21 = vsel %vm1984_vm3, %v3698_v19, %v3700_v3 }
 0x27f   : > { %10233 = vst [vmem:[#allocation35_spill] sm:$0xff] %v9428_v15  ;;  %7228 = vmatmul.mubr.msk.bf16.gmra.mrb[76].mxu1 %vm490_vm1, %v8991_v51  ;;  %v7365_v16 = vadd.f32 %v10234_v9, %v3701_v21  ;;  %7305 = vmatprep.mubr.msk.bf16.mxu0 %vm490_vm1, %v8973_v56  ;;  %v3707_v26 = vsel %vm1984_vm3, %v3704_v13, %v3706_v38 }
 0x280   : > { %7231 = vmatprep.mubr.msk.bf16.mxu1 %vm490_vm1, %v9003_v58  ;;  %v7373_v54 = vadd.f32 %v10235_v35, %v3707_v26  ;;  %v3703_v34 = vsel %vm1984_vm3, %v3700_v3, %v3702_v50  ;;  %v3705_v53 = vsel %vm1984_vm3, %v3702_v50, %v3704_v13 }
 0x281   : > { %v7119_v19 = vpop.f32.mrb[4].mxu0  ;;  %v7377_v24 = vadd.f32 %v10236_v29, %v3703_v34  ;;  %v7385_v41 = vadd.f32 %v10237_v59, %v3705_v53  ;;  %v10242_v59 = vld [vmem:[#allocation14_spill] sm:$0xff] }
 0x282   : > { %v7045_v10 = vpop.f32.mrb[204].mxu1  ;;  %v9446_v48 = vadd.f32 %v7357_v55, %v7119_v19  ;;  %v4021_v56 = vpop.f32.mrb[5].mxu0 }
 0x283   : > { %v3712_v60 = vrot.slane %v7045_v10, 2  ;;  %v3388_v63 = vpop.f32.mrb[205].mxu1  ;;  %v9448_v21 = vadd.f32 %v7361_v31, %v4021_v56  ;;  %v7120_v9 = vpop.f32.mrb[6].mxu0  ;;  %v10240_v31 = vld [vmem:[#allocation47_spill] sm:$0xff] }
 0x284   : > { %v3708_v23 = vrot.slane %v3388_v63, 2  ;;  %v7046_v26 = vpop.f32.mrb[206].mxu1  ;;  %v9450_v35 = vadd.f32 %v7365_v16, %v7120_v9  ;;  %v4024_v3 = vpop.f32.mrb[7].mxu0  ;;  %v10243_v56 = vld [vmem:[#allocation15_spill] sm:$0xff] }
 0x285   : > { %v3714_v13 = vrot.slane %v7046_v26, 2  ;;  %v3391_v50 = vpop.f32.mrb[207].mxu1  ;;  %v9452_v15 = vadd.f32 %v7369_v39, %v4024_v3  ;;  %v10241_v39 = vld [vmem:[#allocation48_spill] sm:$0xff] }
 0x286   : > { %10238 = vst [vmem:[#allocation36_spill] sm:$0xff] %v9450_v35  ;;  %v3710_v34 = vrot.slane %v3391_v50, 2  ;;  %7306 = vmatmul.mubr.msk.bf16.gmra.mrb[208].mxu0 %vm490_vm1, %v8991_v51  ;;  %v3709_v55 = vsel %vm1984_vm3, %v3706_v38, %v3708_v23 }
 0x287   : > { %10239 = vst [vmem:[#allocation37_spill] sm:$0xff] %v9452_v15  ;;  %7232 = vmatmul.mubr.msk.bf16.gmra.mrb[80].mxu1 %vm490_vm1, %v9021_v47  ;;  %v7381_v53 = vadd.f32 %v10240_v31, %v3709_v55  ;;  %7309 = vmatprep.mubr.msk.bf16.mxu0 %vm490_vm1, %v9003_v58  ;;  %v3715_v16 = vsel %vm1984_vm3, %v3712_v60, %v3714_v13 }
 0x288   : > { %7235 = vmatprep.mubr.msk.bf16.mxu1 %vm490_vm1, %v9033_v52  ;;  %v7389_v19 = vadd.f32 %v10241_v39, %v3715_v16  ;;  %v3711_v29 = vsel %vm1984_vm3, %v3708_v23, %v3710_v34  ;;  %v3713_v51 = vsel %vm1984_vm3, %v3710_v34, %v3712_v60 }
 0x289   : > { %v7123_v38 = vpop.f32.mrb[8].mxu0  ;;  %v7393_v10 = vadd.f32 %v10242_v59, %v3711_v29  ;;  %v7401_v63 = vadd.f32 %v10243_v56, %v3713_v51  ;;  %v10248_v56 = vld [vmem:[#allocation16_spill] sm:$0xff] }
 0x28a   : > { %v7049_v9 = vpop.f32.mrb[208].mxu1  ;;  %v9470_v26 = vadd.f32 %v7373_v54, %v7123_v38  ;;  %v4037_v58 = vpop.f32.mrb[9].mxu0 }
 0x28b   : > { %v3720_v3 = vrot.slane %v7049_v9, 2  ;;  %v3404_v50 = vpop.f32.mrb[209].mxu1  ;;  %v9472_v55 = vadd.f32 %v7377_v24, %v4037_v58  ;;  %v7124_v31 = vpop.f32.mrb[10].mxu0  ;;  %v10246_v24 = vld [vmem:[#allocation49_spill] sm:$0xff] }
 0x28c   : > { %v3716_v35 = vrot.slane %v3404_v50, 2  ;;  %v7050_v16 = vpop.f32.mrb[210].mxu1  ;;  %v9474_v39 = vadd.f32 %v7381_v53, %v7124_v31  ;;  %v4040_v23 = vpop.f32.mrb[11].mxu0  ;;  %v10249_v58 = vld [vmem:[#allocation17_spill] sm:$0xff] }
 0x28d   : > { %v3722_v60 = vrot.slane %v7050_v16, 2  ;;  %v3407_v34 = vpop.f32.mrb[211].mxu1  ;;  %v9476_v15 = vadd.f32 %v7385_v41, %v4040_v23  ;;  %v10247_v41 = vld [vmem:[#allocation50_spill] sm:$0xff] }
 0x28e   : > { %10244 = vst [vmem:[#allocation2_spill] sm:$0xff] %v9474_v39  ;;  %v3718_v29 = vrot.slane %v3407_v34, 2  ;;  %7310 = vmatmul.mubr.msk.bf16.gmra.mrb[212].mxu0 %vm490_vm1, %v9021_v47  ;;  %v3717_v54 = vsel %vm1984_vm3, %v3714_v13, %v3716_v35 }
 0x28f   : > { %10245 = vst [vmem:[#allocation3_spill] sm:$0xff] %v9476_v15  ;;  %7236 = vmatmul.mubr.msk.bf16.gmra.mrb[84].mxu1 %vm490_vm1, %v9051_v7  ;;  %v7397_v51 = vadd.f32 %v10246_v24, %v3717_v54  ;;  %7313 = vmatprep.mubr.msk.bf16.mxu0 %vm490_vm1, %v9033_v52  ;;  %v3723_v53 = vsel %vm1984_vm3, %v3720_v3, %v3722_v60 }
 0x290   : > { %7239 = vmatprep.mubr.msk.bf16.mxu1 %vm490_vm1, %v9063_v1  ;;  %v7405_v38 = vadd.f32 %v10247_v41, %v3723_v53  ;;  %v3719_v59 = vsel %vm1984_vm3, %v3716_v35, %v3718_v29  ;;  %v3721_v47 = vsel %vm1984_vm3, %v3718_v29, %v3720_v3 }
 0x291   : > { %v7127_v13 = vpop.f32.mrb[12].mxu0  ;;  %v7409_v9 = vadd.f32 %v10248_v56, %v3719_v59  ;;  %v7417_v50 = vadd.f32 %v10249_v58, %v3721_v47  ;;  %v10254_v58 = vld [vmem:[#allocation18_spill] sm:$0xff] }
 0x292   : > { %v7053_v31 = vpop.f32.mrb[212].mxu1  ;;  %v9494_v16 = vadd.f32 %v7389_v19, %v7127_v13  ;;  %v4053_v52 = vpop.f32.mrb[13].mxu0 }
 0x293   : > { %v3728_v23 = vrot.slane %v7053_v31, 2  ;;  %v3420_v34 = vpop.f32.mrb[213].mxu1  ;;  %v9496_v54 = vadd.f32 %v7393_v10, %v4053_v52  ;;  %v7128_v24 = vpop.f32.mrb[14].mxu0  ;;  %v10252_v10 = vld [vmem:[#allocation51_spill] sm:$0xff] }
 0x294   : > { %v3724_v39 = vrot.slane %v3420_v34, 2  ;;  %v7054_v53 = vpop.f32.mrb[214].mxu1  ;;  %v9498_v41 = vadd.f32 %v7397_v51, %v7128_v24  ;;  %v4056_v35 = vpop.f32.mrb[15].mxu0  ;;  %v10255_v52 = vld [vmem:[#allocation19_spill] sm:$0xff] }
 0x295   : > { %v3730_v3 = vrot.slane %v7054_v53, 2  ;;  %v3423_v29 = vpop.f32.mrb[215].mxu1  ;;  %v9500_v15 = vadd.f32 %v7401_v63, %v4056_v35  ;;  %v10253_v63 = vld [vmem:[#allocation52_spill] sm:$0xff] }
 0x296   : > { %10250 = vst [vmem:[#allocation4_spill] sm:$0xff] %v9498_v41  ;;  %v3726_v59 = vrot.slane %v3423_v29, 2  ;;  %7314 = vmatmul.mubr.msk.bf16.gmra.mrb[216].mxu0 %vm490_vm1, %v9051_v7  ;;  %v3725_v19 = vsel %vm1984_vm3, %v3722_v60, %v3724_v39 }
 0x297   : > { %10251 = vst [vmem:[#allocation5_spill] sm:$0xff] %v9500_v15  ;;  %7240 = vmatmul.mubr.msk.bf16.gmra.mrb[88].mxu1 %vm490_vm1, %v9081_v62  ;;  %v7413_v47 = vadd.f32 %v10252_v10, %v3725_v19  ;;  %7317 = vmatprep.mubr.msk.bf16.mxu0 %vm490_vm1, %v9063_v1  ;;  %v3731_v51 = vsel %vm1984_vm3, %v3728_v23, %v3730_v3 }
 0x298   : > { %7243 = vmatprep.mubr.msk.bf16.mxu1 %vm490_vm1, %v9093_v6  ;;  %v7421_v13 = vadd.f32 %v10253_v63, %v3731_v51  ;;  %v3727_v56 = vsel %vm1984_vm3, %v3724_v39, %v3726_v59  ;;  %v3729_v7 = vsel %vm1984_vm3, %v3726_v59, %v3728_v23 }
 0x299   : > { %v7131_v60 = vpop.f32.mrb[16].mxu0  ;;  %v7425_v31 = vadd.f32 %v10254_v58, %v3727_v56  ;;  %v7433_v34 = vadd.f32 %v10255_v52, %v3729_v7  ;;  %v10260_v52 = vld [vmem:[#allocation20_spill] sm:$0xff] }
 0x29a   : > { %v7057_v24 = vpop.f32.mrb[216].mxu1  ;;  %v9518_v53 = vadd.f32 %v7405_v38, %v7131_v60  ;;  %v4069_v1 = vpop.f32.mrb[17].mxu0 }
 0x29b   : > { %v3736_v35 = vrot.slane %v7057_v24, 2  ;;  %v3436_v29 = vpop.f32.mrb[217].mxu1  ;;  %v9520_v19 = vadd.f32 %v7409_v9, %v4069_v1  ;;  %v7132_v10 = vpop.f32.mrb[18].mxu0  ;;  %v10258_v9 = vld [vmem:[#allocation53_spill] sm:$0xff] }
 0x29c   : > { %v3732_v41 = vrot.slane %v3436_v29, 2  ;;  %v7058_v51 = vpop.f32.mrb[218].mxu1  ;;  %v9522_v63 = vadd.f32 %v7413_v47, %v7132_v10  ;;  %v4072_v39 = vpop.f32.mrb[19].mxu0  ;;  %v10261_v1 = vld [vmem:[#allocation21_spill] sm:$0xff] }
 0x29d   : > { %v3738_v23 = vrot.slane %v7058_v51, 2  ;;  %v3439_v59 = vpop.f32.mrb[219].mxu1  ;;  %v9524_v15 = vadd.f32 %v7417_v50, %v4072_v39  ;;  %v10259_v50 = vld [vmem:[#allocation54_spill] sm:$0xff] }
 0x29e   : > { %10256 = vst [vmem:[#allocation6_spill] sm:$0xff] %v9522_v63  ;;  %v3734_v56 = vrot.slane %v3439_v59, 2  ;;  %7318 = vmatmul.mubr.msk.bf16.gmra.mrb[220].mxu0 %vm490_vm1, %v9081_v62  ;;  %v3733_v38 = vsel %vm1984_vm3, %v3730_v3, %v3732_v41 }
 0x29f   : > { %10257 = vst [vmem:[#allocation38_spill] sm:$0xff] %v9524_v15  ;;  %7244 = vmatmul.mubr.msk.bf16.gmra.mrb[92].mxu1 %vm490_vm1, %v9111_v49  ;;  %v7429_v7 = vadd.f32 %v10258_v9, %v3733_v38  ;;  %7321 = vmatprep.mubr.msk.bf16.mxu0 %vm490_vm1, %v9093_v6  ;;  %v3739_v47 = vsel %vm1984_vm3, %v3736_v35, %v3738_v23 }
 0x2a0   : > { %7247 = vmatprep.mubr.msk.bf16.mxu1 %vm490_vm1, %v9123_v44  ;;  %v7437_v60 = vadd.f32 %v10259_v50, %v3739_v47  ;;  %v3735_v58 = vsel %vm1984_vm3, %v3732_v41, %v3734_v56  ;;  %v3737_v62 = vsel %vm1984_vm3, %v3734_v56, %v3736_v35 }
 0x2a1   : > { %v7135_v3 = vpop.f32.mrb[20].mxu0  ;;  %v7441_v24 = vadd.f32 %v10260_v52, %v3735_v58  ;;  %v7449_v29 = vadd.f32 %v10261_v1, %v3737_v62 }
 0x2a2   : > { %v7061_v10 = vpop.f32.mrb[220].mxu1  ;;  %v9542_v51 = vadd.f32 %v7421_v13, %v7135_v3  ;;  %v4085_v6 = vpop.f32.mrb[21].mxu0  ;;  %v10266_v3 = vld [vmem:[#allocation56_spill] sm:$0xff] }
 0x2a3   : > { %v3744_v39 = vrot.slane %v7061_v10, 2  ;;  %v3452_v59 = vpop.f32.mrb[221].mxu1  ;;  %v9544_v38 = vadd.f32 %v7425_v31, %v4085_v6  ;;  %v7136_v9 = vpop.f32.mrb[22].mxu0  ;;  %v10265_v31 = vld [vmem:[#allocation55_spill] sm:$0xff]  ;;  %v10268_v10 = vld [vmem:[#allocation22_spill] sm:$0xff] }
 0x2a4   : > { %v3740_v63 = vrot.slane %v3452_v59, 2  ;;  %v7062_v47 = vpop.f32.mrb[222].mxu1  ;;  %v9546_v50 = vadd.f32 %v7429_v7, %v7136_v9  ;;  %v4088_v41 = vpop.f32.mrb[23].mxu0  ;;  %v10269_v59 = vld [vmem:[#allocation23_spill] sm:$0xff] }
 0x2a5   : > { %10262 = vst [vmem:[#allocation39_spill] sm:$0xff] %v9544_v38  ;;  %v3746_v35 = vrot.slane %v7062_v47, 2  ;;  %v3455_v56 = vpop.f32.mrb[223].mxu1  ;;  %v9548_v15 = vadd.f32 %v7433_v34, %v4088_v41  ;;  %v10267_v34 = vld [vmem:[#allocation57_spill] sm:$0xff] }
 0x2a6   : > { %10263 = vst [vmem:[#allocation40_spill] sm:$0xff] %v9546_v50  ;;  %v3742_v58 = vrot.slane %v3455_v56, 2  ;;  %7322 = vmatmul.mubr.msk.bf16.gmra.mrb[224].mxu0 %vm490_vm1, %v9111_v49  ;;  %v3741_v13 = vsel %vm1984_vm3, %v3738_v23, %v3740_v63 }
 0x2a7   : > { %10264 = vst [vmem:[#allocation41_spill] sm:$0xff] %v9548_v15  ;;  %7248 = vmatmul.mubr.msk.bf16.gmra.mrb[96].mxu1 %vm490_vm1, %v9141_v42  ;;  %v7445_v62 = vadd.f32 %v10265_v31, %v3741_v13  ;;  %7325 = vmatprep.mubr.msk.bf16.mxu0 %vm490_vm1, %v9123_v44  ;;  %v3747_v7 = vsel %vm1984_vm3, %v3744_v39, %v3746_v35 }
 0x2a8   : > { %7251 = vmatprep.mubr.msk.bf16.mxu1 %vm490_vm1, %v10266_v3  ;;  %v7453_v52 = vadd.f32 %v10267_v34, %v3747_v7  ;;  %v3743_v1 = vsel %vm1984_vm3, %v3740_v63, %v3742_v58  ;;  %v3745_v49 = vsel %vm1984_vm3, %v3742_v58, %v3744_v39 }
 0x2a9   : > { %v7139_v23 = vpop.f32.mrb[24].mxu0  ;;  %v7457_v6 = vadd.f32 %v10268_v10, %v3743_v1  ;;  %v7465_v9 = vadd.f32 %v10269_v59, %v3745_v49 }
 0x2aa   : > { %v7065_v47 = vpop.f32.mrb[224].mxu1  ;;  %v9566_v41 = vadd.f32 %v7437_v60, %v7139_v23  ;;  %v4101_v44 = vpop.f32.mrb[25].mxu0 }
 0x2ab   : > { %v3752_v56 = vrot.slane %v7065_v47, 2  ;;  %v3468_v13 = vpop.f32.mrb[225].mxu1  ;;  %v9568_v31 = vadd.f32 %v7441_v24, %v4101_v44  ;;  %v7140_v50 = vpop.f32.mrb[26].mxu0  ;;  %v10270_v24 = vld [vmem:[#allocation58_spill] sm:$0xff] }
 0x2ac   : > { %v3748_v15 = vrot.slane %v3468_v13, 2  ;;  %v7066_v7 = vpop.f32.mrb[226].mxu1  ;;  %v9570_v34 = vadd.f32 %v7445_v62, %v7140_v50  ;;  %v4104_v63 = vpop.f32.mrb[27].mxu0 }
 0x2ad   : > { %v3754_v39 = vrot.slane %v7066_v7, 2  ;;  %v3471_v58 = vpop.f32.mrb[227].mxu1  ;;  %v9572_v38 = vadd.f32 %v7449_v29, %v4104_v63 }
 0x2ae   : > { %v3750_v1 = vrot.slane %v3471_v58, 2  ;;  %7326 = vmatmul.mubr.msk.bf16.gmra.mrb[228].mxu0 %vm490_vm1, %v9141_v42  ;;  %v3749_v60 = vsel %vm1984_vm3, %v3746_v35, %v3748_v15 }
 0x2af   : > { %7252 = vmatmul.mubr.msk.bf16.gmra.mrb[100].mxu1 %vm490_vm1, %v9171_v45  ;;  %v7461_v49 = vadd.f32 %v10270_v24, %v3749_v60  ;;  %7329 = vmatprep.mubr.msk.bf16.mxu0 %vm490_vm1, %v10266_v3  ;;  %v3755_v50 = vsel %vm1984_vm3, %v3752_v56, %v3754_v39  ;;  %v7834_v24 = vld [vmem:[%s7918_s25 + $0x128] sm:$0xff]  }
 0x2b0   : > { %7255 = vmatprep.mubr.msk.bf16.mxu1 %vm490_vm1, %v9183_v14  ;;  %v7469_v29 = vadd.f32 %v9188_v0, %v3755_v50  ;;  %v3751_v62 = vsel %vm1984_vm3, %v3748_v15, %v3750_v1  ;;  %v3753_v42 = vsel %vm1984_vm3, %v3750_v1, %v3752_v56 }
 0x2b1   : > { %v7143_v35 = vpop.f32.mrb[28].mxu0  ;;  %v7473_v23 = vadd.f32 %v9191_v61, %v3751_v62  ;;  %v7481_v10 = vadd.f32 %v9194_v20, %v3753_v42 }
 0x2b2   : > { %v7069_v59 = vpop.f32.mrb[228].mxu1  ;;  %v9590_v47 = vadd.f32 %v7453_v52, %v7143_v35  ;;  %v4117_v3 = vpop.f32.mrb[29].mxu0 }
 0x2b3   : > { %v3760_v44 = vrot.slane %v7069_v59, 2  ;;  %v3484_v13 = vpop.f32.mrb[229].mxu1  ;;  %v9592_v7 = vadd.f32 %v7457_v6, %v4117_v3  ;;  %v7144_v63 = vpop.f32.mrb[30].mxu0 }
 0x2b4   : > { %v3756_v0 = vrot.slane %v3484_v13, 2  ;;  %v7070_v58 = vpop.f32.mrb[230].mxu1  ;;  %v9594_v15 = vadd.f32 %v7461_v49, %v7144_v63  ;;  %v4120_v56 = vpop.f32.mrb[31].mxu0 }
 0x2b5   : > { %v3762_v1 = vrot.slane %v7070_v58, 2  ;;  %v3487_v60 = vpop.f32.mrb[231].mxu1  ;;  %v9596_v61 = vadd.f32 %v7465_v9, %v4120_v56 }
 0x2b6   : > { %v3758_v20 = vrot.slane %v3487_v60, 2  ;;  %7330 = vmatmul.mubr.msk.bf16.gmra.mrb[232].mxu0 %vm490_vm1, %v9171_v45  ;;  %v3757_v52 = vsel %vm1984_vm3, %v3754_v39, %v3756_v0 }
 0x2b7   : > { %7256 = vmatmul.mubr.msk.bf16.gmra.mrb[104].mxu1 %vm490_vm1, %v7834_v24  ;;  %v7477_v6 = vadd.f32 %v9205_v2, %v3757_v52  ;;  %7333 = vmatprep.mubr.msk.bf16.mxu0 %vm490_vm1, %v9183_v14  ;;  %v3763_v49 = vsel %vm1984_vm3, %v3760_v44, %v3762_v1 }
 0x2b8   : > { %v7485_v50 = vadd.f32 %v9212_v4, %v3763_v49  ;;  %v3759_v9 = vsel %vm1984_vm3, %v3756_v0, %v3758_v20  ;;  %v3761_v62 = vsel %vm1984_vm3, %v3758_v20, %v3760_v44 }
 0x2b9   : > { %v7147_v42 = vpop.f32.mrb[32].mxu0  ;;  %v7489_v45 = vadd.f32 %v9215_v37, %v3759_v9  ;;  %v7497_v39 = vadd.f32 %v9218_v5, %v3761_v62 }
 0x2ba   : > { %v7073_v35 = vpop.f32.mrb[232].mxu1  ;;  %v9612_v59 = vadd.f32 %v7469_v29, %v7147_v42  ;;  %v4133_v2 = vpop.f32.mrb[33].mxu0 }
 0x2bb   : > { %v3768_v3 = vrot.slane %v7073_v35, 2  ;;  %v3500_v13 = vpop.f32.mrb[233].mxu1  ;;  %v9614_v14 = vadd.f32 %v7473_v23, %v4133_v2  ;;  %v7148_v63 = vpop.f32.mrb[34].mxu0 }
 0x2bc   : > { %v3764_v58 = vrot.slane %v3500_v13, 2  ;;  %v7074_v4 = vpop.f32.mrb[234].mxu1  ;;  %v9616_v56 = vadd.f32 %v7477_v6, %v7148_v63  ;;  %v4136_v0 = vpop.f32.mrb[35].mxu0 }
 0x2bd   : > { %v3770_v44 = vrot.slane %v7074_v4, 2  ;;  %v3503_v60 = vpop.f32.mrb[235].mxu1  ;;  %v9618_v20 = vadd.f32 %v7481_v10, %v4136_v0 }
 0x2be   : > { %v3766_v37 = vrot.slane %v3503_v60, 2  ;;  %7334 = vmatmul.mubr.msk.bf16.gmra.mrb[236].mxu0 %vm490_vm1, %v7834_v24  ;;  %v3765_v5 = vsel %vm1984_vm3, %v3762_v1, %v3764_v58 }
 0x2bf   : > { %v7493_v29 = vadd.f32 %v9229_v33, %v3765_v5  ;;  %v3771_v23 = vsel %vm1984_vm3, %v3768_v3, %v3770_v44 }
 0x2c0   : > { %v7502_v52 = vadd.f32 %v9236_v43, %v3771_v23  ;;  %v3767_v49 = vsel %vm1984_vm3, %v3764_v58, %v3766_v37  ;;  %v3769_v6 = vsel %vm1984_vm3, %v3766_v37, %v3768_v3 }
 0x2c1   : > { %v7151_v9 = vpop.f32.mrb[36].mxu0  ;;  %v7507_v62 = vadd.f32 %v9239_v46, %v3767_v49  ;;  %v7517_v10 = vadd.f32 %v9242_v11, %v3769_v6 }
 0x2c2   : > { %v7077_v42 = vpop.f32.mrb[236].mxu1  ;;  %v9629_v35 = vadd.f32 %v7485_v50, %v7151_v9  ;;  %v4149_v24 = vpop.f32.mrb[37].mxu0 }
 0x2c3   : > { %v3776_v1 = vrot.slane %v7077_v42, 2  ;;  %v3516_v2 = vpop.f32.mrb[237].mxu1  ;;  %v9631_v33 = vadd.f32 %v7489_v45, %v4149_v24  ;;  %v7152_v13 = vpop.f32.mrb[38].mxu0 }
 0x2c4   : > { %v3772_v63 = vrot.slane %v3516_v2, 2  ;;  %v7078_v43 = vpop.f32.mrb[238].mxu1  ;;  %v9633_v4 = vadd.f32 %v7493_v29, %v7152_v13  ;;  %v4152_v58 = vpop.f32.mrb[39].mxu0 }
 0x2c5   : > { %v3778_v3 = vrot.slane %v7078_v43, 2  ;;  %v3519_v0 = vpop.f32.mrb[239].mxu1  ;;  %v9635_v60 = vadd.f32 %v7497_v39, %v4152_v58 }
 0x2c6   : > { %v3774_v46 = vrot.slane %v3519_v0, 2  ;;  %v3773_v11 = vsel %vm1984_vm3, %v3770_v44, %v3772_v63 }
 0x2c7   : > { %v7512_v50 = vadd.f32 %v9253_v40, %v3773_v11  ;;  %v3779_v37 = vsel %vm1984_vm3, %v3776_v1, %v3778_v3 }
 0x2c8   : > { %v7522_v45 = vadd.f32 %v9260_v17, %v3779_v37  ;;  %v3775_v5 = vsel %vm1984_vm3, %v3772_v63, %v3774_v46  ;;  %v3777_v23 = vsel %vm1984_vm3, %v3774_v46, %v3776_v1 }
 0x2c9   : > { %v7155_v29 = vpop.f32.mrb[120].mxu0  ;;  %v7527_v49 = vadd.f32 %v9263_v8, %v3775_v5  ;;  %v7537_v6 = vadd.f32 %v9266_v28, %v3777_v23 }
 0x2ca   : > { %v7081_v39 = vpop.f32.mrb[240].mxu1  ;;  %v9645_v9 = vadd.f32 %v7502_v52, %v7155_v29  ;;  %v4165_v42 = vpop.f32.mrb[121].mxu0 }
 0x2cb   : > { %v3784_v44 = vrot.slane %v7081_v39, 2  ;;  %v3532_v24 = vpop.f32.mrb[241].mxu1  ;;  %v9647_v40 = vadd.f32 %v7507_v62, %v4165_v42  ;;  %v7156_v2 = vpop.f32.mrb[122].mxu0 }
 0x2cc   : > { %v3780_v13 = vrot.slane %v3532_v24, 2  ;;  %v7082_v17 = vpop.f32.mrb[242].mxu1  ;;  %v9649_v43 = vadd.f32 %v7512_v50, %v7156_v2  ;;  %v4168_v63 = vpop.f32.mrb[123].mxu0 }
 0x2cd   : > { %v3786_v1 = vrot.slane %v7082_v17, 2  ;;  %v3535_v58 = vpop.f32.mrb[243].mxu1  ;;  %v9651_v0 = vadd.f32 %v7517_v10, %v4168_v63 }
 0x2ce   : > { %v3782_v8 = vrot.slane %v3535_v58, 2  ;;  %v3781_v28 = vsel %vm1984_vm3, %v3778_v3, %v3780_v13 }
 0x2cf   : > { %v7532_v52 = vadd.f32 %v9277_v57, %v3781_v28  ;;  %v3787_v46 = vsel %vm1984_vm3, %v3784_v44, %v3786_v1 }
 0x2d0   : > { %v7542_v62 = vadd.f32 %v9284_v18, %v3787_v46  ;;  %v3783_v11 = vsel %vm1984_vm3, %v3780_v13, %v3782_v8  ;;  %v3785_v37 = vsel %vm1984_vm3, %v3782_v8, %v3784_v44 }
 0x2d1   : > { %v7159_v50 = vpop.f32.mrb[124].mxu0  ;;  %v7547_v5 = vadd.f32 %v9287_v32, %v3783_v11  ;;  %v7557_v23 = vadd.f32 %v9290_v27, %v3785_v37  ;;  %v10271_v37 = vld [vmem:[#allocation24_spill] sm:$0xff] }
 0x2d2   : > { %v7085_v10 = vpop.f32.mrb[244].mxu1  ;;  %v9661_v29 = vadd.f32 %v7522_v45, %v7159_v50  ;;  %v4181_v39 = vpop.f32.mrb[125].mxu0 }
 0x2d3   : > { %v3792_v3 = vrot.slane %v7085_v10, 2  ;;  %v3548_v42 = vpop.f32.mrb[245].mxu1  ;;  %v9663_v57 = vadd.f32 %v7527_v49, %v4181_v39  ;;  %v7160_v24 = vpop.f32.mrb[126].mxu0 }
 0x2d4   : > { %v3788_v2 = vrot.slane %v3548_v42, 2  ;;  %v7086_v18 = vpop.f32.mrb[246].mxu1  ;;  %v9665_v17 = vadd.f32 %v7532_v52, %v7160_v24  ;;  %v4184_v13 = vpop.f32.mrb[127].mxu0 }
 0x2d5   : > { %v3794_v44 = vrot.slane %v7086_v18, 2  ;;  %v3551_v63 = vpop.f32.mrb[247].mxu1  ;;  %v9667_v58 = vadd.f32 %v7537_v6, %v4184_v13 }
 0x2d6   : > { %v3790_v32 = vrot.slane %v3551_v63, 2  ;;  %v3789_v27 = vsel %vm1984_vm3, %v3786_v1, %v3788_v2 }
 0x2d7   : > { %v7552_v45 = vadd.f32 %v9301_v30, %v3789_v27  ;;  %v3795_v8 = vsel %vm1984_vm3, %v3792_v3, %v3794_v44 }
 0x2d8   : > { %v7562_v49 = vadd.f32 %v9308_v25, %v3795_v8  ;;  %v3791_v28 = vsel %vm1984_vm3, %v3788_v2, %v3790_v32  ;;  %v3793_v46 = vsel %vm1984_vm3, %v3790_v32, %v3792_v3 }
 0x2d9   : > { %v7163_v52 = vpop.f32.mrb[128].mxu0  ;;  %v7567_v11 = vadd.f32 %v9311_v22, %v3791_v28  ;;  %v7577_v50 = vadd.f32 %v10271_v37, %v3793_v46  ;;  %v10275_v46 = vld [vmem:[#allocation26_spill] sm:$0xff] }
 0x2da   : > { %v7089_v6 = vpop.f32.mrb[248].mxu1  ;;  %v9677_v10 = vadd.f32 %v7542_v62, %v7163_v52  ;;  %v4197_v39 = vpop.f32.mrb[129].mxu0  ;;  %v10274_v62 = vld [vmem:[#allocation25_spill] sm:$0xff] }
 0x2db   : > { %v3800_v1 = vrot.slane %v7089_v6, 2  ;;  %v3564_v42 = vpop.f32.mrb[249].mxu1  ;;  %v9679_v30 = vadd.f32 %v7547_v5, %v4197_v39  ;;  %v7164_v24 = vpop.f32.mrb[130].mxu0  ;;  %v10276_v6 = vld [vmem:[#allocation27_spill] sm:$0xff] }
 0x2dc   : > { %v3796_v18 = vrot.slane %v3564_v42, 2  ;;  %v7090_v25 = vpop.f32.mrb[250].mxu1  ;;  %v9681_v13 = vadd.f32 %v7552_v45, %v7164_v24  ;;  %v4200_v2 = vpop.f32.mrb[131].mxu0  ;;  %v10277_v42 = vld [vmem:[#allocation28_spill] sm:$0xff] }
 0x2dd   : > { %v3802_v3 = vrot.slane %v7090_v25, 2  ;;  %v3567_v63 = vpop.f32.mrb[251].mxu1  ;;  %v9683_v32 = vadd.f32 %v7557_v23, %v4200_v2 }
 0x2de   : > { %10272 = vst [vmem:[#allocation42_spill] sm:$0xff] %v9681_v13  ;;  %v3798_v22 = vrot.slane %v3567_v63, 2  ;;  %v3797_v27 = vsel %vm1984_vm3, %v3794_v44, %v3796_v18 }
 0x2df   : > { %10273 = vst [vmem:[#allocation7_spill] sm:$0xff] %v9683_v32  ;;  %v7572_v8 = vadd.f32 %v10274_v62, %v3797_v27  ;;  %v3803_v28 = vsel %vm1984_vm3, %v3800_v1, %v3802_v3 }
 0x2e0   : > { %v7582_v5 = vadd.f32 %v10275_v46, %v3803_v28  ;;  %v3799_v52 = vsel %vm1984_vm3, %v3796_v18, %v3798_v22  ;;  %v3801_v37 = vsel %vm1984_vm3, %v3798_v22, %v3800_v1 }
 0x2e1   : > { %v7167_v45 = vpop.f32.mrb[132].mxu0  ;;  %v7587_v39 = vadd.f32 %v10276_v6, %v3799_v52  ;;  %v7597_v24 = vadd.f32 %v10277_v42, %v3801_v37  ;;  %v10282_v42 = vld [vmem:[#allocation30_spill] sm:$0xff] }
 0x2e2   : > { %v7093_v23 = vpop.f32.mrb[252].mxu1  ;;  %v9693_v25 = vadd.f32 %v7562_v49, %v7167_v45  ;;  %v4213_v2 = vpop.f32.mrb[133].mxu0  ;;  %v10281_v49 = vld [vmem:[#allocation29_spill] sm:$0xff] }
 0x2e3   : > { %v3808_v44 = vrot.slane %v7093_v23, 2  ;;  %v3580_v63 = vpop.f32.mrb[253].mxu1  ;;  %v9695_v27 = vadd.f32 %v7567_v11, %v4213_v2  ;;  %v7168_v62 = vpop.f32.mrb[134].mxu0 }
 0x2e4   : > { %v3804_v13 = vrot.slane %v3580_v63, 2  ;;  %v7094_v28 = vpop.f32.mrb[254].mxu1  ;;  %v9697_v46 = vadd.f32 %v7572_v8, %v7168_v62  ;;  %v4216_v18 = vpop.f32.mrb[135].mxu0  ;;  %v10283_v63 = vld [vmem:[#allocation31_spill] sm:$0xff] }
 0x2e5   : > { %10278 = vst [vmem:[#allocation8_spill] sm:$0xff] %v9695_v27  ;;  %v3810_v1 = vrot.slane %v7094_v28, 2  ;;  %v3583_v22 = vpop.f32.mrb[255].mxu1  ;;  %v9699_v32 = vadd.f32 %v7577_v50, %v4216_v18  ;;  %v10284_v28 = vld [vmem:[#allocation32_spill] sm:$0xff] }
 0x2e6   : > { %10279 = vst [vmem:[#allocation9_spill] sm:$0xff] %v9697_v46  ;;  %v3806_v52 = vrot.slane %v3583_v22, 2  ;;  %v3805_v37 = vsel %vm1984_vm3, %v3802_v3, %v3804_v13 }
 0x2e7   : > { %10280 = vst [vmem:[#allocation43_spill] sm:$0xff] %v9699_v32  ;;  %v7592_v45 = vadd.f32 %v10281_v49, %v3805_v37  ;;  %v3811_v6 = vsel %vm1984_vm3, %v3808_v44, %v3810_v1 }
 0x2e8   : > { %v7602_v11 = vadd.f32 %v10282_v42, %v3811_v6  ;;  %v3807_v23 = vsel %vm1984_vm3, %v3804_v13, %v3806_v52  ;;  %v3809_v2 = vsel %vm1984_vm3, %v3806_v52, %v3808_v44 }
 0x2e9   : > { %v7171_v8 = vpop.f32.mrb[136].mxu0  ;;  %v7607_v62 = vadd.f32 %v10283_v63, %v3807_v23  ;;  %v7617_v46 = vadd.f32 %v10284_v28, %v3809_v2  ;;  %v10287_v23 = vld [vmem:[#allocation33_spill] sm:$0xff] }
 0x2ea   : > { %v7097_v50 = vpop.f32.mrb[24].mxu1  ;;  %v9709_v18 = vadd.f32 %v7582_v5, %v7171_v8  ;;  %v4229_v22 = vpop.f32.mrb[137].mxu0 }
 0x2eb   : > { %v3596_v3 = vpop.f32.mrb[25].mxu1  ;;  %v9711_v32 = vadd.f32 %v7587_v39, %v4229_v22  ;;  %v7172_v37 = vpop.f32.mrb[138].mxu0 }
 0x2ec   : > { %v3812_v49 = vrot.slane %v3596_v3, 2  ;;  %v9713_v27 = vadd.f32 %v7592_v45, %v7172_v37  ;;  %v4232_v6 = vpop.f32.mrb[139].mxu0  ;;  %v7098_v13 = vpop.f32.mrb[26].mxu1 }
 0x2ed   : > { %v9715_v42 = vadd.f32 %v7597_v24, %v4232_v6  ;;  %v3599_v44 = vpop.f32.mrb[27].mxu1 }
 0x2ee   : > { %10285 = vst [vmem:[#allocation44_spill] sm:$0xff] %v9713_v27  ;;  %v3813_v52 = vsel %vm1984_vm3, %v3810_v1, %v3812_v49 }
 0x2ef   : > { %10286 = vst [vmem:[#allocation10_spill] sm:$0xff] %v9715_v42  ;;  %v7612_v2 = vadd.f32 %v10287_v23, %v3813_v52 }
 0x2f1   : > { %v7175_v63 = vpop.f32.mrb[140].mxu0 }
 0x2f2   : > { %v9719_v5 = vadd.f32 %v7602_v11, %v7175_v63  ;;  %v4245_v8 = vpop.f32.mrb[141].mxu0  ;;  %v7101_v28 = vpop.f32.mrb[28].mxu1 }
 0x2f3   : > { %v9721_v39 = vadd.f32 %v7607_v62, %v4245_v8  ;;  %v7176_v50 = vpop.f32.mrb[142].mxu0  ;;  %v3609_v22 = vpop.f32.mrb[29].mxu1 }
 0x2f4   : > { %10288 = vst [vmem:[#allocation11_spill] sm:$0xff] %v9719_v5  ;;  %v9723_v45 = vadd.f32 %v7612_v2, %v7176_v50  ;;  %v4248_v3 = vpop.f32.mrb[143].mxu0  ;;  %v7102_v37 = vpop.f32.mrb[30].mxu1 }
 0x2f5   : > { %10289 = vst [vmem:[#allocation45_spill] sm:$0xff] %v9721_v39  ;;  %v9725_v24 = vadd.f32 %v7617_v46, %v4248_v3  ;;  %v3611_v6 = vpop.f32.mrb[31].mxu1 }
 0x2f6   : > { %10290 = vst [vmem:[#allocation46_spill] sm:$0xff] %v9723_v45 }
 0x2f7   : > { %10291 = vst [vmem:[#allocation12_spill] sm:$0xff] %v9725_v24 }
 0x2f9   : > { %v7179_v13 = vpop.f32.mrb[160].mxu0 }
 0x2fa   : > { %v4261_v1 = vpop.f32.mrb[161].mxu0  ;;  %v7185_v49 = vpop.f32.mrb[32].mxu1 }
 0x2fb   : > { %v7180_v44 = vpop.f32.mrb[162].mxu0  ;;  %v4375_v52 = vpop.f32.mrb[33].mxu1 }
 0x2fc   : > { %v4263_v11 = vpop.f32.mrb[163].mxu0  ;;  %v7186_v23 = vpop.f32.mrb[34].mxu1 }
 0x2fd   : > { %v4377_v63 = vpop.f32.mrb[35].mxu1 }
 0x301   : > { %v7263_v28 = vpop.f32.mrb[164].mxu0 }
 0x302   : > { %v5028_v62 = vpop.f32.mrb[165].mxu0  ;;  %v7189_v8 = vpop.f32.mrb[36].mxu1 }
 0x303   : > { %v7264_v39 = vpop.f32.mrb[166].mxu0  ;;  %v4387_v22 = vpop.f32.mrb[37].mxu1 }
 0x304   : > { %v5030_v2 = vpop.f32.mrb[167].mxu0  ;;  %v7190_v50 = vpop.f32.mrb[38].mxu1  ;;  %v10292_v22 = vld [vmem:[#allocation35_spill] sm:$0xff] }
 0x305   : > { %v4389_v45 = vpop.f32.mrb[39].mxu1 }
 0x309   : > { %v7267_v37 = vpop.f32.mrb[168].mxu0 }
 0x30a   : > { %v7193_v46 = vpop.f32.mrb[40].mxu1  ;;  %v5040_v3 = vpop.f32.mrb[169].mxu0 }
 0x30b   : > { %v4735_v6 = vrot.slane %v7193_v46, 1  ;;  %v4399_v13 = vpop.f32.mrb[41].mxu1  ;;  %v7268_v1 = vpop.f32.mrb[170].mxu0 }
 0x30c   : > { %v4732_v49 = vrot.slane %v4399_v13, 1  ;;  %v7194_v44 = vpop.f32.mrb[42].mxu1  ;;  %v5042_v52 = vpop.f32.mrb[171].mxu0 }
 0x30d   : > { %v4737_v11 = vrot.slane %v7194_v44, 1  ;;  %v4402_v23 = vpop.f32.mrb[43].mxu1 }
 0x30e   : > { %v4733_v63 = vrot.slane %v4402_v23, 1 }
 0x30f   : > { %v4738_v28 = vsel %vm1330_vm2, %v4735_v6, %v4737_v11 }
 0x310   : > { %v4927_v39 = vadd.f32 %v9422_v36, %v4738_v28  ;;  %v4734_v62 = vsel %vm1330_vm2, %v4732_v49, %v4733_v63  ;;  %v4736_v45 = vsel %vm1330_vm2, %v4733_v63, %v4735_v6 }
 0x311   : > { %v4925_v8 = vadd.f32 %v9424_v12, %v4734_v62  ;;  %v4926_v2 = vadd.f32 %v10292_v22, %v4736_v45  ;;  %v7271_v50 = vpop.f32.mrb[172].mxu0  ;;  %v9739_v45 = vld [vmem:[%s10074_s2] ss:$0 sm:$0xff] }
 0x312   : > { %v7197_v37 = vpop.f32.mrb[44].mxu1  ;;  %v5052_v46 = vpop.f32.mrb[173].mxu0  ;;  %v5388_v44 = vrot.slane %v7271_v50, 2  ;;  %v10293_v50 = vld [vmem:[#allocation34_spill] sm:$0xff] }
 0x313   : > { %v4743_v3 = vrot.slane %v7197_v37, 1  ;;  %v4415_v13 = vpop.f32.mrb[45].mxu1  ;;  %v7272_v1 = vpop.f32.mrb[174].mxu0  ;;  %v5385_v28 = vrot.slane %v5052_v46, 2 }
 0x314   : > { %v4739_v52 = vrot.slane %v4415_v13, 1  ;;  %v7198_v23 = vpop.f32.mrb[46].mxu1  ;;  %v5390_v24 = vrot.slane %v7272_v1, 2  ;;  %v5055_v36 = vpop.f32.mrb[175].mxu0 }
 0x315   : > { %v4745_v49 = vrot.slane %v7198_v23, 1  ;;  %v4418_v6 = vpop.f32.mrb[47].mxu1  ;;  %v5386_v63 = vrot.slane %v5055_v36, 2 }
 0x316   : > { %v4740_v12 = vsel %vm1330_vm2, %v4737_v11, %v4739_v52  ;;  %v5391_v62 = vsel %vm1984_vm3, %v5388_v44, %v5390_v24  ;;  %v4741_v22 = vrot.slane %v4418_v6, 1 }
 0x317   : > { %v4928_v37 = vadd.f32 %v10293_v50, %v4740_v12  ;;  %v4746_v13 = vsel %vm1330_vm2, %v4743_v3, %v4745_v49  ;;  %v5580_v1 = vadd.f32 %v5391_v62, %v4927_v39  ;;  %v5387_v46 = vsel %vm1984_vm3, %v5385_v28, %v5386_v63  ;;  %v10294_v62 = vld [vmem:[#allocation37_spill] sm:$0xff] }
 0x318   : > { %v4931_v23 = vadd.f32 %v9446_v48, %v4746_v13  ;;  %v4742_v11 = vsel %vm1330_vm2, %v4739_v52, %v4741_v22  ;;  %v4744_v36 = vsel %vm1330_vm2, %v4741_v22, %v4743_v3  ;;  %v5389_v6 = vsel %vm1984_vm3, %v5386_v63, %v5388_v44 }
 0x319   : > { %v5651_v12 = vadd.f32 %v9739_v45, %v5580_v1  ;;  %v4929_v39 = vadd.f32 %v9448_v21, %v4742_v11  ;;  %v4930_v28 = vadd.f32 %v10294_v62, %v4744_v36  ;;  %v5578_v50 = vadd.f32 %v5387_v46, %v4925_v8  ;;  %v7275_v48 = vpop.f32.mrb[176].mxu0 }
 0x31a   : > { %v5579_v13 = vadd.f32 %v5389_v6, %v4926_v2  ;;  %v7201_v5 = vpop.f32.mrb[48].mxu1  ;;  %v5068_v27 = vpop.f32.mrb[177].mxu0  ;;  %v5396_v1 = vrot.slane %v7275_v48, 2 }
 0x31b   : > { %5715 = vst [vmem:[%s9748_s19 + $0x10] sm:$0xff] %v5651_v12  ;;  %v5649_v42 = vadd.f32 %v9739_v45, %v5578_v50  ;;  %v4751_v52 = vrot.slane %v7201_v5, 1  ;;  %v4431_v3 = vpop.f32.mrb[49].mxu1  ;;  %v5392_v22 = vrot.slane %v5068_v27, 2  ;;  %v7276_v44 = vpop.f32.mrb[178].mxu0 }
 0x31c   : > { %v5650_v63 = vadd.f32 %v9739_v45, %v5579_v13  ;;  %v4747_v21 = vrot.slane %v4431_v3, 1  ;;  %v7202_v11 = vpop.f32.mrb[50].mxu1  ;;  %v5398_v36 = vrot.slane %v7276_v44, 2  ;;  %v5071_v8 = vpop.f32.mrb[179].mxu0  ;;  %v10295_v13 = vld [vmem:[#allocation36_spill] sm:$0xff] }
 0x31d   : > { %5713 = vst [vmem:[%s9748_s19] sm:$0xff] %v5649_v42  ;;  %v5393_v2 = vsel %vm1984_vm3, %v5390_v24, %v5392_v22  ;;  %v4753_v46 = vrot.slane %v7202_v11, 1  ;;  %v4434_v6 = vpop.f32.mrb[51].mxu1  ;;  %v5394_v12 = vrot.slane %v5071_v8, 2 }
 0x31e   : > { %5714 = vst [vmem:[%s9748_s19 + $0x8] sm:$0xff] %v5650_v63  ;;  %v4748_v62 = vsel %vm1330_vm2, %v4745_v49, %v4747_v21  ;;  %v5581_v5 = vadd.f32 %v5393_v2, %v4928_v37  ;;  %v5399_v27 = vsel %vm1984_vm3, %v5396_v1, %v5398_v36  ;;  %v4749_v50 = vrot.slane %v4434_v6, 1  ;;  %v10296_v2 = vld [vmem:[#allocation3_spill] sm:$0xff] }
 0x31f   : > { %v4932_v48 = vadd.f32 %v10295_v13, %v4748_v62  ;;  %v4754_v3 = vsel %vm1330_vm2, %v4751_v52, %v4753_v46  ;;  %v5584_v44 = vadd.f32 %v5399_v27, %v4931_v23  ;;  %v5395_v42 = vsel %vm1984_vm3, %v5392_v22, %v5394_v12 }
 0x320   : > { %v5652_v24 = vadd.f32 %v9739_v45, %v5581_v5  ;;  %v4935_v11 = vadd.f32 %v9470_v26, %v4754_v3  ;;  %v4750_v63 = vsel %vm1330_vm2, %v4747_v21, %v4749_v50  ;;  %v4752_v49 = vsel %vm1330_vm2, %v4749_v50, %v4751_v52 }
 0x321   : > { %v5655_v37 = vadd.f32 %v9739_v45, %v5584_v44  ;;  %v4933_v8 = vadd.f32 %v9472_v55, %v4750_v63  ;;  %v4934_v6 = vadd.f32 %v10296_v2, %v4752_v49  ;;  %v5397_v62 = vsel %vm1984_vm3, %v5394_v12, %v5396_v1  ;;  %v7279_v23 = vpop.f32.mrb[180].mxu0 }
 0x322   : > { %5716 = vst [vmem:[%s9748_s19 + $0x18] sm:$0xff] %v5652_v24  ;;  %v5582_v27 = vadd.f32 %v5395_v42, %v4929_v39  ;;  %v5583_v22 = vadd.f32 %v5397_v62, %v4930_v28  ;;  %v7205_v13 = vpop.f32.mrb[52].mxu1  ;;  %v5084_v5 = vpop.f32.mrb[181].mxu0  ;;  %v5404_v21 = vrot.slane %v7279_v23, 2 }
 0x323   : > { %5719 = vst [vmem:[%s9748_s19 + $0x30] sm:$0xff] %v5655_v37  ;;  %v4759_v26 = vrot.slane %v7205_v13, 1  ;;  %v4447_v52 = vpop.f32.mrb[53].mxu1  ;;  %v5400_v50 = vrot.slane %v5084_v5, 2  ;;  %v7280_v3 = vpop.f32.mrb[182].mxu0 }
 0x324   : > { %v5653_v55 = vadd.f32 %v9739_v45, %v5582_v27  ;;  %v5654_v44 = vadd.f32 %v9739_v45, %v5583_v22  ;;  %v4755_v63 = vrot.slane %v4447_v52, 1  ;;  %v7206_v1 = vpop.f32.mrb[54].mxu1  ;;  %v5406_v12 = vrot.slane %v7280_v3, 2  ;;  %v5087_v24 = vpop.f32.mrb[183].mxu0  ;;  %v10297_v27 = vld [vmem:[#allocation2_spill] sm:$0xff] }
 0x325   : > { %v5401_v39 = vsel %vm1984_vm3, %v5398_v36, %v5400_v50  ;;  %v4761_v28 = vrot.slane %v7206_v1, 1  ;;  %v4450_v42 = vpop.f32.mrb[55].mxu1  ;;  %v5402_v49 = vrot.slane %v5087_v24, 2  ;;  %v10298_v1 = vld [vmem:[#allocation5_spill] sm:$0xff] }
 0x326   : > { %5717 = vst [vmem:[%s9748_s19 + $0x20] sm:$0xff] %v5653_v55  ;;  %5718 = vst [vmem:[%s9748_s19 + $0x28] sm:$0xff] %v5654_v44  ;;  %v4756_v37 = vsel %vm1330_vm2, %v4753_v46, %v4755_v63  ;;  %v5585_v2 = vadd.f32 %v5401_v39, %v4932_v48  ;;  %v5407_v62 = vsel %vm1984_vm3, %v5404_v21, %v5406_v12  ;;  %v4757_v23 = vrot.slane %v4450_v42, 1 }
 0x327   : > { %v4936_v22 = vadd.f32 %v10297_v27, %v4756_v37  ;;  %v4762_v13 = vsel %vm1330_vm2, %v4759_v26, %v4761_v28  ;;  %v5588_v5 = vadd.f32 %v5407_v62, %v4935_v11  ;;  %v5403_v36 = vsel %vm1984_vm3, %v5400_v50, %v5402_v49 }
 0x328   : > { %v5656_v52 = vadd.f32 %v9739_v45, %v5585_v2  ;;  %v4939_v3 = vadd.f32 %v9494_v16, %v4762_v13  ;;  %v4758_v55 = vsel %vm1330_vm2, %v4755_v63, %v4757_v23  ;;  %v4760_v46 = vsel %vm1330_vm2, %v4757_v23, %v4759_v26 }
 0x329   : > { %v5659_v48 = vadd.f32 %v9739_v45, %v5588_v5  ;;  %v4937_v44 = vadd.f32 %v9496_v54, %v4758_v55  ;;  %v4938_v24 = vadd.f32 %v10298_v1, %v4760_v46  ;;  %v5405_v39 = vsel %vm1984_vm3, %v5402_v49, %v5404_v21  ;;  %v7283_v11 = vpop.f32.mrb[184].mxu0 }
 0x32a   : > { %5720 = vst [vmem:[%s9748_s19 + $0x38] sm:$0xff] %v5656_v52  ;;  %v5586_v42 = vadd.f32 %v5403_v36, %v4933_v8  ;;  %v5587_v50 = vadd.f32 %v5405_v39, %v4934_v6  ;;  %v7209_v37 = vpop.f32.mrb[56].mxu1  ;;  %v5100_v2 = vpop.f32.mrb[185].mxu0  ;;  %v5412_v63 = vrot.slane %v7283_v11, 2  ;;  %v10299_v39 = vld [vmem:[#allocation4_spill] sm:$0xff] }
 0x32b   : > { %5723 = vst [vmem:[%s9748_s19 + $0x50] sm:$0xff] %v5659_v48  ;;  %v4767_v16 = vrot.slane %v7209_v37, 1  ;;  %v4463_v26 = vpop.f32.mrb[57].mxu1  ;;  %v5408_v62 = vrot.slane %v5100_v2, 2  ;;  %v7284_v23 = vpop.f32.mrb[186].mxu0 }
 0x32c   : > { %v5657_v54 = vadd.f32 %v9739_v45, %v5586_v42  ;;  %v5658_v27 = vadd.f32 %v9739_v45, %v5587_v50  ;;  %v4763_v13 = vrot.slane %v4463_v26, 1  ;;  %v7210_v21 = vpop.f32.mrb[58].mxu1  ;;  %v5414_v49 = vrot.slane %v7284_v23, 2  ;;  %v5103_v5 = vpop.f32.mrb[187].mxu0 }
 0x32d   : > { %v5409_v8 = vsel %vm1984_vm3, %v5406_v12, %v5408_v62  ;;  %v4769_v6 = vrot.slane %v7210_v21, 1  ;;  %v4466_v36 = vpop.f32.mrb[59].mxu1  ;;  %v5410_v52 = vrot.slane %v5103_v5, 2 }
 0x32e   : > { %5721 = vst [vmem:[%s9748_s19 + $0x40] sm:$0xff] %v5657_v54  ;;  %5722 = vst [vmem:[%s9748_s19 + $0x48] sm:$0xff] %v5658_v27  ;;  %v4764_v55 = vsel %vm1330_vm2, %v4761_v28, %v4763_v13  ;;  %v5589_v46 = vadd.f32 %v5409_v8, %v4936_v22  ;;  %v5415_v48 = vsel %vm1984_vm3, %v5412_v63, %v5414_v49  ;;  %v4765_v1 = vrot.slane %v4466_v36, 1  ;;  %v10300_v54 = vld [vmem:[#allocation38_spill] sm:$0xff] }
 0x32f   : > { %v4940_v11 = vadd.f32 %v10299_v39, %v4764_v55  ;;  %v4770_v42 = vsel %vm1330_vm2, %v4767_v16, %v4769_v6  ;;  %v5592_v50 = vadd.f32 %v5415_v48, %v4939_v3  ;;  %v5411_v12 = vsel %vm1984_vm3, %v5408_v62, %v5410_v52 }
 0x330   : > { %v5660_v37 = vadd.f32 %v9739_v45, %v5589_v46  ;;  %v4943_v2 = vadd.f32 %v9518_v53, %v4770_v42  ;;  %v4766_v26 = vsel %vm1330_vm2, %v4763_v13, %v4765_v1  ;;  %v4768_v28 = vsel %vm1330_vm2, %v4765_v1, %v4767_v16 }
 0x331   : > { %v5663_v22 = vadd.f32 %v9739_v45, %v5592_v50  ;;  %v4941_v23 = vadd.f32 %v9520_v19, %v4766_v26  ;;  %v4942_v27 = vadd.f32 %v10300_v54, %v4768_v28  ;;  %v5413_v21 = vsel %vm1984_vm3, %v5410_v52, %v5412_v63  ;;  %v7287_v3 = vpop.f32.mrb[188].mxu0 }
 0x332   : > { %5724 = vst [vmem:[%s9748_s19 + $0x58] sm:$0xff] %v5660_v37  ;;  %v5590_v5 = vadd.f32 %v5411_v12, %v4937_v44  ;;  %v5591_v62 = vadd.f32 %v5413_v21, %v4938_v24  ;;  %v7213_v8 = vpop.f32.mrb[60].mxu1  ;;  %v5116_v36 = vpop.f32.mrb[189].mxu0  ;;  %v5420_v13 = vrot.slane %v7287_v3, 2 }
 0x333   : > { %5727 = vst [vmem:[%s9748_s19 + $0x70] sm:$0xff] %v5663_v22  ;;  %v4775_v53 = vrot.slane %v7213_v8, 1  ;;  %v4479_v16 = vpop.f32.mrb[61].mxu1  ;;  %v5416_v55 = vrot.slane %v5116_v36, 2  ;;  %v7288_v46 = vpop.f32.mrb[190].mxu0  ;;  %v10301_v22 = vld [vmem:[#allocation6_spill] sm:$0xff] }
 0x334   : > { %v5661_v19 = vadd.f32 %v9739_v45, %v5590_v5  ;;  %v5662_v48 = vadd.f32 %v9739_v45, %v5591_v62  ;;  %v4771_v1 = vrot.slane %v4479_v16, 1  ;;  %v7214_v63 = vpop.f32.mrb[62].mxu1  ;;  %v5422_v52 = vrot.slane %v7288_v46, 2  ;;  %v5119_v39 = vpop.f32.mrb[191].mxu0  ;;  %v10302_v36 = vld [vmem:[#allocation39_spill] sm:$0xff]  ;;  %v10303_v46 = vld [vmem:[#allocation41_spill] sm:$0xff] }
 0x335   : > { %v5417_v44 = vsel %vm1984_vm3, %v5414_v49, %v5416_v55  ;;  %v4777_v24 = vrot.slane %v7214_v63, 1  ;;  %v4482_v42 = vpop.f32.mrb[63].mxu1  ;;  %v5418_v50 = vrot.slane %v5119_v39, 2 }
 0x336   : > { %5725 = vst [vmem:[%s9748_s19 + $0x60] sm:$0xff] %v5661_v19  ;;  %5726 = vst [vmem:[%s9748_s19 + $0x68] sm:$0xff] %v5662_v48  ;;  %v4772_v12 = vsel %vm1330_vm2, %v4769_v6, %v4771_v1  ;;  %v5593_v37 = vadd.f32 %v5417_v44, %v4940_v11  ;;  %v5423_v26 = vsel %vm1984_vm3, %v5420_v13, %v5422_v52  ;;  %v4773_v28 = vrot.slane %v4482_v42, 1 }
 0x337   : > { %v4944_v54 = vadd.f32 %v10301_v22, %v4772_v12  ;;  %v4778_v21 = vsel %vm1330_vm2, %v4775_v53, %v4777_v24  ;;  %v5596_v3 = vadd.f32 %v5423_v26, %v4943_v2  ;;  %v5419_v49 = vsel %vm1984_vm3, %v5416_v55, %v5418_v50 }
 0x338   : > { %v5664_v5 = vadd.f32 %v9739_v45, %v5593_v37  ;;  %v4947_v62 = vadd.f32 %v9542_v51, %v4778_v21  ;;  %v4774_v8 = vsel %vm1330_vm2, %v4771_v1, %v4773_v28  ;;  %v4776_v6 = vsel %vm1330_vm2, %v4773_v28, %v4775_v53 }
 0x339   : > { %v5667_v11 = vadd.f32 %v9739_v45, %v5596_v3  ;;  %v4945_v16 = vadd.f32 %v10302_v36, %v4774_v8  ;;  %v4946_v19 = vadd.f32 %v10303_v46, %v4776_v6  ;;  %v5421_v48 = vsel %vm1984_vm3, %v5418_v50, %v5420_v13  ;;  %v7291_v2 = vpop.f32.mrb[192].mxu0 }
 0x33a   : > { %5728 = vst [vmem:[%s9748_s19 + $0x78] sm:$0xff] %v5664_v5  ;;  %v5594_v63 = vadd.f32 %v5419_v49, %v4941_v23  ;;  %v5595_v55 = vadd.f32 %v5421_v48, %v4942_v27  ;;  %v7217_v39 = vpop.f32.mrb[64].mxu1  ;;  %v5132_v44 = vpop.f32.mrb[193].mxu0  ;;  %v5428_v1 = vrot.slane %v7291_v2, 2 }
 0x33b   : > { %5731 = vst [vmem:[%s9748_s19 + $0x90] sm:$0xff] %v5667_v11  ;;  %v4783_v51 = vrot.slane %v7217_v39, 1  ;;  %v4495_v53 = vpop.f32.mrb[65].mxu1  ;;  %v5424_v42 = vrot.slane %v5132_v44, 2  ;;  %v7292_v12 = vpop.f32.mrb[194].mxu0  ;;  %v10304_v11 = vld [vmem:[#allocation40_spill] sm:$0xff] }
 0x33c   : > { %v5665_v37 = vadd.f32 %v9739_v45, %v5594_v63  ;;  %v5666_v26 = vadd.f32 %v9739_v45, %v5595_v55  ;;  %v4779_v28 = vrot.slane %v4495_v53, 1  ;;  %v7218_v13 = vpop.f32.mrb[66].mxu1  ;;  %v5430_v50 = vrot.slane %v7292_v12, 2  ;;  %v5135_v22 = vpop.f32.mrb[195].mxu0 }
 0x33d   : > { %v5425_v23 = vsel %vm1984_vm3, %v5422_v52, %v5424_v42  ;;  %v4785_v27 = vrot.slane %v7218_v13, 1  ;;  %v4498_v21 = vpop.f32.mrb[67].mxu1  ;;  %v5426_v3 = vrot.slane %v5135_v22, 2 }
 0x33e   : > { %5729 = vst [vmem:[%s9748_s19 + $0x80] sm:$0xff] %v5665_v37  ;;  %5730 = vst [vmem:[%s9748_s19 + $0x88] sm:$0xff] %v5666_v26  ;;  %v4780_v49 = vsel %vm1330_vm2, %v4777_v24, %v4779_v28  ;;  %v5597_v5 = vadd.f32 %v5425_v23, %v4944_v54  ;;  %v5431_v8 = vsel %vm1984_vm3, %v5428_v1, %v5430_v50  ;;  %v4781_v6 = vrot.slane %v4498_v21, 1 }
 0x33f   : > { %v4948_v36 = vadd.f32 %v10304_v11, %v4780_v49  ;;  %v4786_v46 = vsel %vm1330_vm2, %v4783_v51, %v4785_v27  ;;  %v5600_v48 = vadd.f32 %v5431_v8, %v4947_v62  ;;  %v5427_v52 = vsel %vm1984_vm3, %v5424_v42, %v5426_v3 }
 0x340   : > { %v5668_v2 = vadd.f32 %v9739_v45, %v5597_v5  ;;  %v4951_v63 = vadd.f32 %v9566_v41, %v4786_v46  ;;  %v4782_v55 = vsel %vm1330_vm2, %v4779_v28, %v4781_v6  ;;  %v4784_v24 = vsel %vm1330_vm2, %v4781_v6, %v4783_v51 }
 0x341   : > { %v5671_v54 = vadd.f32 %v9739_v45, %v5600_v48  ;;  %v4949_v39 = vadd.f32 %v9568_v31, %v4782_v55  ;;  %v4950_v44 = vadd.f32 %v9572_v38, %v4784_v24  ;;  %v5429_v53 = vsel %vm1984_vm3, %v5426_v3, %v5428_v1  ;;  %v7295_v62 = vpop.f32.mrb[196].mxu0 }
 0x342   : > { %5732 = vst [vmem:[%s9748_s19 + $0x98] sm:$0xff] %v5668_v2  ;;  %v5598_v12 = vadd.f32 %v5427_v52, %v4945_v16  ;;  %v5599_v42 = vadd.f32 %v5429_v53, %v4946_v19  ;;  %v7221_v37 = vpop.f32.mrb[68].mxu1  ;;  %v5148_v26 = vpop.f32.mrb[197].mxu0  ;;  %v5436_v28 = vrot.slane %v7295_v62, 2 }
 0x343   : > { %5735 = vst [vmem:[%s9748_s19 + $0xb0] sm:$0xff] %v5671_v54  ;;  %v4791_v41 = vrot.slane %v7221_v37, 1  ;;  %v4511_v51 = vpop.f32.mrb[69].mxu1  ;;  %v5432_v13 = vrot.slane %v5148_v26, 2  ;;  %v7296_v22 = vpop.f32.mrb[198].mxu0 }
 0x344   : > { %v5669_v31 = vadd.f32 %v9739_v45, %v5598_v12  ;;  %v5670_v38 = vadd.f32 %v9739_v45, %v5599_v42  ;;  %v4787_v23 = vrot.slane %v4511_v51, 1  ;;  %v7222_v1 = vpop.f32.mrb[70].mxu1  ;;  %v5438_v21 = vrot.slane %v7296_v22, 2  ;;  %v5151_v3 = vpop.f32.mrb[199].mxu0 }
 0x345   : > { %v5433_v16 = vsel %vm1984_vm3, %v5430_v50, %v5432_v13  ;;  %v4793_v19 = vrot.slane %v7222_v1, 1  ;;  %v4514_v49 = vpop.f32.mrb[71].mxu1  ;;  %v5434_v5 = vrot.slane %v5151_v3, 2 }
 0x346   : > { %5733 = vst [vmem:[%s9748_s19 + $0xa0] sm:$0xff] %v5669_v31  ;;  %5734 = vst [vmem:[%s9748_s19 + $0xa8] sm:$0xff] %v5670_v38  ;;  %v4788_v8 = vsel %vm1330_vm2, %v4785_v27, %v4787_v23  ;;  %v5601_v6 = vadd.f32 %v5433_v16, %v4948_v36  ;;  %v5439_v11 = vsel %vm1984_vm3, %v5436_v28, %v5438_v21  ;;  %v4789_v46 = vrot.slane %v4514_v49, 1 }
 0x347   : > { %v4952_v48 = vadd.f32 %v9570_v34, %v4788_v8  ;;  %v4794_v52 = vsel %vm1330_vm2, %v4791_v41, %v4793_v19  ;;  %v5604_v2 = vadd.f32 %v5439_v11, %v4951_v63  ;;  %v5435_v50 = vsel %vm1984_vm3, %v5432_v13, %v5434_v5 }
 0x348   : > { %v5672_v55 = vadd.f32 %v9739_v45, %v5601_v6  ;;  %v4955_v24 = vadd.f32 %v9590_v47, %v4794_v52  ;;  %v4790_v54 = vsel %vm1330_vm2, %v4787_v23, %v4789_v46  ;;  %v4792_v27 = vsel %vm1330_vm2, %v4789_v46, %v4791_v41 }
 0x349   : > { %v5675_v36 = vadd.f32 %v9739_v45, %v5604_v2  ;;  %v4953_v53 = vadd.f32 %v9592_v7, %v4790_v54  ;;  %v4954_v34 = vadd.f32 %v9596_v61, %v4792_v27  ;;  %v5437_v62 = vsel %vm1984_vm3, %v5434_v5, %v5436_v28  ;;  %v7299_v63 = vpop.f32.mrb[200].mxu0 }
 0x34a   : > { %5736 = vst [vmem:[%s9748_s19 + $0xb8] sm:$0xff] %v5672_v55  ;;  %v5602_v12 = vadd.f32 %v5435_v50, %v4949_v39  ;;  %v5603_v42 = vadd.f32 %v5437_v62, %v4950_v44  ;;  %v7225_v37 = vpop.f32.mrb[72].mxu1  ;;  %v5164_v26 = vpop.f32.mrb[201].mxu0  ;;  %v5444_v51 = vrot.slane %v7299_v63, 2 }
 0x34b   : > { %5739 = vst [vmem:[%s9748_s19 + $0xd0] sm:$0xff] %v5675_v36  ;;  %v4799_v47 = vrot.slane %v7225_v37, 1  ;;  %v4527_v41 = vpop.f32.mrb[73].mxu1  ;;  %v5440_v13 = vrot.slane %v5164_v26, 2  ;;  %v7300_v22 = vpop.f32.mrb[202].mxu0 }
 0x34c   : > { %v5673_v7 = vadd.f32 %v9739_v45, %v5602_v12  ;;  %v5674_v61 = vadd.f32 %v9739_v45, %v5603_v42  ;;  %v4795_v31 = vrot.slane %v4527_v41, 1  ;;  %v7226_v28 = vpop.f32.mrb[74].mxu1  ;;  %v5446_v38 = vrot.slane %v7300_v22, 2  ;;  %v5167_v23 = vpop.f32.mrb[203].mxu0 }
 0x34d   : > { %v5441_v39 = vsel %vm1984_vm3, %v5438_v21, %v5440_v13  ;;  %v4801_v44 = vrot.slane %v7226_v28, 1  ;;  %v4530_v1 = vpop.f32.mrb[75].mxu1  ;;  %v5442_v3 = vrot.slane %v5167_v23, 2 }
 0x34e   : > { %5737 = vst [vmem:[%s9748_s19 + $0xc0] sm:$0xff] %v5673_v7  ;;  %5738 = vst [vmem:[%s9748_s19 + $0xc8] sm:$0xff] %v5674_v61  ;;  %v4796_v16 = vsel %vm1330_vm2, %v4793_v19, %v4795_v31  ;;  %v5605_v49 = vadd.f32 %v5441_v39, %v4952_v48  ;;  %v5447_v5 = vsel %vm1984_vm3, %v5444_v51, %v5446_v38  ;;  %v4797_v8 = vrot.slane %v4530_v1, 1 }
 0x34f   : > { %v4956_v6 = vadd.f32 %v9594_v15, %v4796_v16  ;;  %v4802_v11 = vsel %vm1330_vm2, %v4799_v47, %v4801_v44  ;;  %v5608_v46 = vadd.f32 %v5447_v5, %v4955_v24  ;;  %v5443_v21 = vsel %vm1984_vm3, %v5440_v13, %v5442_v3 }
 0x350   : > { %v5676_v52 = vadd.f32 %v9739_v45, %v5605_v49  ;;  %v4959_v2 = vadd.f32 %v9612_v59, %v4802_v11  ;;  %v4798_v50 = vsel %vm1330_vm2, %v4795_v31, %v4797_v8  ;;  %v4800_v19 = vsel %vm1330_vm2, %v4797_v8, %v4799_v47 }
 0x351   : > { %v5679_v48 = vadd.f32 %v9739_v45, %v5608_v46  ;;  %v4957_v55 = vadd.f32 %v9614_v14, %v4798_v50  ;;  %v4958_v15 = vadd.f32 %v9618_v20, %v4800_v19  ;;  %v5445_v54 = vsel %vm1984_vm3, %v5442_v3, %v5444_v51  ;;  %v7303_v24 = vpop.f32.mrb[204].mxu0 }
 0x352   : > { %5740 = vst [vmem:[%s9748_s19 + $0xd8] sm:$0xff] %v5676_v52  ;;  %v5606_v27 = vadd.f32 %v5443_v21, %v4953_v53  ;;  %v5607_v36 = vadd.f32 %v5445_v54, %v4954_v34  ;;  %v7229_v62 = vpop.f32.mrb[76].mxu1  ;;  %v5180_v63 = vpop.f32.mrb[205].mxu0  ;;  %v5452_v12 = vrot.slane %v7303_v24, 2 }
 0x353   : > { %5743 = vst [vmem:[%s9748_s19 + $0xf0] sm:$0xff] %v5679_v48  ;;  %v4807_v59 = vrot.slane %v7229_v62, 1  ;;  %v4543_v42 = vpop.f32.mrb[77].mxu1  ;;  %v5448_v37 = vrot.slane %v5180_v63, 2  ;;  %v7304_v26 = vpop.f32.mrb[206].mxu0 }
 0x354   : > { %v5677_v14 = vadd.f32 %v9739_v45, %v5606_v27  ;;  %v5678_v20 = vadd.f32 %v9739_v45, %v5607_v36  ;;  %v4803_v47 = vrot.slane %v4543_v42, 1  ;;  %v7230_v51 = vpop.f32.mrb[78].mxu1  ;;  %v5454_v41 = vrot.slane %v7304_v26, 2  ;;  %v5183_v13 = vpop.f32.mrb[207].mxu0 }
 0x355   : > { %v5449_v53 = vsel %vm1984_vm3, %v5446_v38, %v5448_v37  ;;  %v4809_v34 = vrot.slane %v7230_v51, 1  ;;  %v4546_v22 = vpop.f32.mrb[79].mxu1  ;;  %v5450_v7 = vrot.slane %v5183_v13, 2 }
 0x356   : > { %5741 = vst [vmem:[%s9748_s19 + $0xe0] sm:$0xff] %v5677_v14  ;;  %5742 = vst [vmem:[%s9748_s19 + $0xe8] sm:$0xff] %v5678_v20  ;;  %v4804_v61 = vsel %vm1330_vm2, %v4801_v44, %v4803_v47  ;;  %v5609_v31 = vadd.f32 %v5449_v53, %v4956_v6  ;;  %v5455_v28 = vsel %vm1984_vm3, %v5452_v12, %v5454_v41  ;;  %v4805_v23 = vrot.slane %v4546_v22, 1 }
 0x357   : > { %v4960_v39 = vadd.f32 %v9616_v56, %v4804_v61  ;;  %v4810_v1 = vsel %vm1330_vm2, %v4807_v59, %v4809_v34  ;;  %v5612_v3 = vadd.f32 %v5455_v28, %v4959_v2  ;;  %v5451_v38 = vsel %vm1984_vm3, %v5448_v37, %v5450_v7 }
 0x358   : > { %v5680_v16 = vadd.f32 %v9739_v45, %v5609_v31  ;;  %v4963_v49 = vadd.f32 %v9629_v35, %v4810_v1  ;;  %v4806_v5 = vsel %vm1330_vm2, %v4803_v47, %v4805_v23  ;;  %v4808_v44 = vsel %vm1330_vm2, %v4805_v23, %v4807_v59 }
 0x359   : > { %v5683_v8 = vadd.f32 %v9739_v45, %v5612_v3  ;;  %v4961_v6 = vadd.f32 %v9631_v33, %v4806_v5  ;;  %v4962_v56 = vadd.f32 %v9635_v60, %v4808_v44  ;;  %v5453_v11 = vsel %vm1984_vm3, %v5450_v7, %v5452_v12  ;;  %v7307_v46 = vpop.f32.mrb[208].mxu0 }
 0x35a   : > { %5744 = vst [vmem:[%s9748_s19 + $0xf8] sm:$0xff] %v5680_v16  ;;  %v5610_v21 = vadd.f32 %v5451_v38, %v4957_v55  ;;  %v5611_v52 = vadd.f32 %v5453_v11, %v4958_v15  ;;  %v7233_v2 = vpop.f32.mrb[80].mxu1  ;;  %v5196_v50 = vpop.f32.mrb[209].mxu0  ;;  %v5460_v19 = vrot.slane %v7307_v46, 2 }
 0x35b   : > { %5747 = vst [vmem:[%s9748_s19 + $0x110] sm:$0xff] %v5683_v8  ;;  %v4815_v35 = vrot.slane %v7233_v2, 1  ;;  %v4559_v48 = vpop.f32.mrb[81].mxu1  ;;  %v5456_v54 = vrot.slane %v5196_v50, 2  ;;  %v7308_v24 = vpop.f32.mrb[210].mxu0 }
 0x35c   : > { %v5681_v33 = vadd.f32 %v9739_v45, %v5610_v21  ;;  %v5682_v60 = vadd.f32 %v9739_v45, %v5611_v52  ;;  %v4811_v27 = vrot.slane %v4559_v48, 1  ;;  %v7234_v36 = vpop.f32.mrb[82].mxu1  ;;  %v5462_v62 = vrot.slane %v7308_v24, 2  ;;  %v5199_v63 = vpop.f32.mrb[211].mxu0 }
 0x35d   : > { %v5457_v55 = vsel %vm1984_vm3, %v5454_v41, %v5456_v54  ;;  %v4817_v15 = vrot.slane %v7234_v36, 1  ;;  %v4562_v59 = vpop.f32.mrb[83].mxu1  ;;  %v5458_v12 = vrot.slane %v5199_v63, 2 }
 0x35e   : > { %5745 = vst [vmem:[%s9748_s19 + $0x100] sm:$0xff] %v5681_v33  ;;  %5746 = vst [vmem:[%s9748_s19 + $0x108] sm:$0xff] %v5682_v60  ;;  %v4812_v42 = vsel %vm1330_vm2, %v4809_v34, %v4811_v27  ;;  %v5613_v37 = vadd.f32 %v5457_v55, %v4960_v39  ;;  %v5463_v26 = vsel %vm1984_vm3, %v5460_v19, %v5462_v62  ;;  %v4813_v14 = vrot.slane %v4562_v59, 1 }
 0x35f   : > { %v4964_v20 = vadd.f32 %v9633_v4, %v4812_v42  ;;  %v4818_v47 = vsel %vm1330_vm2, %v4815_v35, %v4817_v15  ;;  %v5616_v51 = vadd.f32 %v5463_v26, %v4963_v49  ;;  %v5459_v41 = vsel %vm1984_vm3, %v5456_v54, %v5458_v12 }
 0x360   : > { %v5684_v13 = vadd.f32 %v9739_v45, %v5613_v37  ;;  %v4967_v53 = vadd.f32 %v9645_v9, %v4818_v47  ;;  %v4814_v22 = vsel %vm1330_vm2, %v4811_v27, %v4813_v14  ;;  %v4816_v34 = vsel %vm1330_vm2, %v4813_v14, %v4815_v35 }
 0x361   : > { %v5687_v7 = vadd.f32 %v9739_v45, %v5616_v51  ;;  %v4965_v61 = vadd.f32 %v9647_v40, %v4814_v22  ;;  %v4966_v4 = vadd.f32 %v9651_v0, %v4816_v34  ;;  %v5461_v31 = vsel %vm1984_vm3, %v5458_v12, %v5460_v19  ;;  %v7311_v28 = vpop.f32.mrb[212].mxu0 }
 0x362   : > { %5748 = vst [vmem:[%s9748_s19 + $0x118] sm:$0xff] %v5684_v13  ;;  %v5614_v23 = vadd.f32 %v5459_v41, %v4961_v6  ;;  %v5615_v39 = vadd.f32 %v5461_v31, %v4962_v56  ;;  %v7237_v1 = vpop.f32.mrb[84].mxu1  ;;  %v5212_v3 = vpop.f32.mrb[213].mxu0  ;;  %v5468_v38 = vrot.slane %v7311_v28, 2 }
 0x363   : > { %5751 = vst [vmem:[%s9748_s19 + $0x130] sm:$0xff] %v5687_v7  ;;  %v4823_v9 = vrot.slane %v7237_v1, 1  ;;  %v4575_v16 = vpop.f32.mrb[85].mxu1  ;;  %v5464_v49 = vrot.slane %v5212_v3, 2  ;;  %v7312_v5 = vpop.f32.mrb[214].mxu0 }
 0x364   : > { %v5685_v40 = vadd.f32 %v9739_v45, %v5614_v23  ;;  %v5686_v0 = vadd.f32 %v9739_v45, %v5615_v39  ;;  %v4819_v44 = vrot.slane %v4575_v16, 1  ;;  %v7238_v8 = vpop.f32.mrb[86].mxu1  ;;  %v5470_v11 = vrot.slane %v7312_v5, 2  ;;  %v5215_v46 = vpop.f32.mrb[215].mxu0 }
 0x365   : > { %v5465_v6 = vsel %vm1984_vm3, %v5462_v62, %v5464_v49  ;;  %v4825_v56 = vrot.slane %v7238_v8, 1  ;;  %v4578_v21 = vpop.f32.mrb[87].mxu1  ;;  %v5466_v52 = vrot.slane %v5215_v46, 2  ;;  %v10305_v8 = vld [vmem:[#allocation7_spill] sm:$0xff] }
 0x366   : > { %5749 = vst [vmem:[%s9748_s19 + $0x120] sm:$0xff] %v5685_v40  ;;  %5750 = vst [vmem:[%s9748_s19 + $0x128] sm:$0xff] %v5686_v0  ;;  %v4820_v2 = vsel %vm1330_vm2, %v4817_v15, %v4819_v44  ;;  %v5617_v50 = vadd.f32 %v5465_v6, %v4964_v20  ;;  %v5471_v35 = vsel %vm1984_vm3, %v5468_v38, %v5470_v11  ;;  %v4821_v19 = vrot.slane %v4578_v21, 1 }
 0x367   : > { %v4968_v48 = vadd.f32 %v9649_v43, %v4820_v2  ;;  %v4826_v54 = vsel %vm1330_vm2, %v4823_v9, %v4825_v56  ;;  %v5620_v24 = vadd.f32 %v5471_v35, %v4967_v53  ;;  %v5467_v33 = vsel %vm1984_vm3, %v5464_v49, %v5466_v52 }
 0x368   : > { %v5688_v60 = vadd.f32 %v9739_v45, %v5617_v50  ;;  %v4971_v27 = vadd.f32 %v9661_v29, %v4826_v54  ;;  %v4822_v36 = vsel %vm1330_vm2, %v4819_v44, %v4821_v19  ;;  %v4824_v62 = vsel %vm1330_vm2, %v4821_v19, %v4823_v9 }
 0x369   : > { %v5691_v63 = vadd.f32 %v9739_v45, %v5620_v24  ;;  %v4969_v55 = vadd.f32 %v9663_v57, %v4822_v36  ;;  %v4970_v43 = vadd.f32 %v9667_v58, %v4824_v62  ;;  %v5469_v15 = vsel %vm1984_vm3, %v5466_v52, %v5468_v38  ;;  %v7315_v59 = vpop.f32.mrb[216].mxu0 }
 0x36a   : > { %5752 = vst [vmem:[%s9748_s19 + $0x138] sm:$0xff] %v5688_v60  ;;  %v5618_v12 = vadd.f32 %v5467_v33, %v4965_v61  ;;  %v5619_v42 = vadd.f32 %v5469_v15, %v4966_v4  ;;  %v7241_v37 = vpop.f32.mrb[88].mxu1  ;;  %v5228_v26 = vpop.f32.mrb[217].mxu0  ;;  %v5476_v14 = vrot.slane %v7315_v59, 2 }
 0x36b   : > { %5755 = vst [vmem:[%s9748_s19 + $0x150] sm:$0xff] %v5691_v63  ;;  %v4831_v29 = vrot.slane %v7241_v37, 1  ;;  %v4591_v20 = vpop.f32.mrb[89].mxu1  ;;  %v5472_v47 = vrot.slane %v5228_v26, 2  ;;  %v7316_v51 = vpop.f32.mrb[218].mxu0 }
 0x36c   : > { %v5689_v57 = vadd.f32 %v9739_v45, %v5618_v12  ;;  %v5690_v58 = vadd.f32 %v9739_v45, %v5619_v42  ;;  %v4827_v41 = vrot.slane %v4591_v20, 1  ;;  %v7242_v13 = vpop.f32.mrb[90].mxu1  ;;  %v5478_v53 = vrot.slane %v7316_v51, 2  ;;  %v5231_v22 = vpop.f32.mrb[219].mxu0  ;;  %v10306_v12 = vld [vmem:[#allocation42_spill] sm:$0xff] }
 0x36d   : > { %v5473_v34 = vsel %vm1984_vm3, %v5470_v11, %v5472_v47  ;;  %v4833_v7 = vrot.slane %v7242_v13, 1  ;;  %v4594_v61 = vpop.f32.mrb[91].mxu1  ;;  %v5474_v4 = vrot.slane %v5231_v22, 2  ;;  %v10308_v13 = vld [vmem:[#allocation43_spill] sm:$0xff] }
 0x36e   : > { %5753 = vst [vmem:[%s9748_s19 + $0x140] sm:$0xff] %v5689_v57  ;;  %5754 = vst [vmem:[%s9748_s19 + $0x148] sm:$0xff] %v5690_v58  ;;  %v4828_v31 = vsel %vm1330_vm2, %v4825_v56, %v4827_v41  ;;  %v5621_v28 = vadd.f32 %v5473_v34, %v4968_v48  ;;  %v5479_v23 = vsel %vm1984_vm3, %v5476_v14, %v5478_v53  ;;  %v4829_v39 = vrot.slane %v4594_v61, 1  ;;  %v10307_v58 = vld [vmem:[#allocation8_spill] sm:$0xff] }
 0x36f   : > { %v4972_v1 = vadd.f32 %v9665_v17, %v4828_v31  ;;  %v4834_v3 = vsel %vm1330_vm2, %v4831_v29, %v4833_v7  ;;  %v5624_v9 = vadd.f32 %v5479_v23, %v4971_v27  ;;  %v5475_v38 = vsel %vm1984_vm3, %v5472_v47, %v5474_v4 }
 0x370   : > { %v5692_v16 = vadd.f32 %v9739_v45, %v5621_v28  ;;  %v4975_v49 = vadd.f32 %v9677_v10, %v4834_v3  ;;  %v4830_v5 = vsel %vm1330_vm2, %v4827_v41, %v4829_v39  ;;  %v4832_v40 = vsel %vm1330_vm2, %v4829_v39, %v4831_v29 }
 0x371   : > { %v5695_v0 = vadd.f32 %v9739_v45, %v5624_v9  ;;  %v4973_v44 = vadd.f32 %v9679_v30, %v4830_v5  ;;  %v4974_v17 = vadd.f32 %v10305_v8, %v4832_v40  ;;  %v5477_v11 = vsel %vm1984_vm3, %v5474_v4, %v5476_v14  ;;  %v7319_v46 = vpop.f32.mrb[220].mxu0 }
 0x372   : > { %5756 = vst [vmem:[%s9748_s19 + $0x158] sm:$0xff] %v5692_v16  ;;  %v5622_v6 = vadd.f32 %v5475_v38, %v4969_v55  ;;  %v5623_v56 = vadd.f32 %v5477_v11, %v4970_v43  ;;  %v7245_v21 = vpop.f32.mrb[92].mxu1  ;;  %v5244_v52 = vpop.f32.mrb[221].mxu0  ;;  %v5484_v2 = vrot.slane %v7319_v46, 2 }
 0x373   : > { %5759 = vst [vmem:[%s9748_s19 + $0x170] sm:$0xff] %v5695_v0  ;;  %v4839_v10 = vrot.slane %v7245_v21, 1  ;;  %v4607_v50 = vpop.f32.mrb[93].mxu1  ;;  %v5480_v35 = vrot.slane %v5244_v52, 2  ;;  %v7320_v19 = vpop.f32.mrb[222].mxu0 }
 0x374   : > { %v5693_v30 = vadd.f32 %v9739_v45, %v5622_v6  ;;  %v5694_v48 = vadd.f32 %v9739_v45, %v5623_v56  ;;  %v4835_v54 = vrot.slane %v4607_v50, 1  ;;  %v7246_v24 = vpop.f32.mrb[94].mxu1  ;;  %v5486_v33 = vrot.slane %v7320_v19, 2  ;;  %v5247_v60 = vpop.f32.mrb[223].mxu0  ;;  %v10309_v56 = vld [vmem:[#allocation9_spill] sm:$0xff] }
 0x375   : > { %v5481_v27 = vsel %vm1984_vm3, %v5478_v53, %v5480_v35  ;;  %v4841_v36 = vrot.slane %v7246_v24, 1  ;;  %v4610_v62 = vpop.f32.mrb[95].mxu1  ;;  %v5482_v63 = vrot.slane %v5247_v60, 2  ;;  %v10310_v24 = vld [vmem:[#allocation10_spill] sm:$0xff] }
 0x376   : > { %5757 = vst [vmem:[%s9748_s19 + $0x160] sm:$0xff] %v5693_v30  ;;  %5758 = vst [vmem:[%s9748_s19 + $0x168] sm:$0xff] %v5694_v48  ;;  %v4836_v55 = vsel %vm1330_vm2, %v4833_v7, %v4835_v54  ;;  %v5625_v43 = vadd.f32 %v5481_v27, %v4972_v1  ;;  %v5487_v15 = vsel %vm1984_vm3, %v5484_v2, %v5486_v33  ;;  %v4837_v59 = vrot.slane %v4610_v62, 1 }
 0x377   : > { %v4976_v42 = vadd.f32 %v10306_v12, %v4836_v55  ;;  %v4842_v37 = vsel %vm1330_vm2, %v4839_v10, %v4841_v36  ;;  %v5628_v26 = vadd.f32 %v5487_v15, %v4975_v49  ;;  %v5483_v29 = vsel %vm1984_vm3, %v5480_v35, %v5482_v63 }
 0x378   : > { %v5696_v14 = vadd.f32 %v9739_v45, %v5625_v43  ;;  %v4979_v20 = vadd.f32 %v9693_v25, %v4842_v37  ;;  %v4838_v47 = vsel %vm1330_vm2, %v4835_v54, %v4837_v59  ;;  %v4840_v51 = vsel %vm1330_vm2, %v4837_v59, %v4839_v10 }
 0x379   : > { %v5699_v57 = vadd.f32 %v9739_v45, %v5628_v26  ;;  %v4977_v41 = vadd.f32 %v10307_v58, %v4838_v47  ;;  %v4978_v53 = vadd.f32 %v10308_v13, %v4840_v51  ;;  %v5485_v22 = vsel %vm1984_vm3, %v5482_v63, %v5484_v2  ;;  %v7323_v34 = vpop.f32.mrb[224].mxu0  ;;  %v10010_v2 = vld [vmem:[%s10074_s2] ss:$0 sm:$0xff] }
 0x37a   : > { %5760 = vst [vmem:[%s9748_s19 + $0x178] sm:$0xff] %v5696_v14  ;;  %v5626_v7 = vadd.f32 %v5483_v29, %v4973_v44  ;;  %v5627_v61 = vadd.f32 %v5485_v22, %v4974_v17  ;;  %v7249_v4 = vpop.f32.mrb[96].mxu1  ;;  %v5260_v31 = vpop.f32.mrb[225].mxu0  ;;  %v5492_v28 = vrot.slane %v7323_v34, 2  ;;  %v10311_v22 = vld [vmem:[#allocation44_spill] sm:$0xff] }
 0x37b   : > { %5763 = vst [vmem:[%s9748_s19 + $0x190] sm:$0xff] %v5699_v57  ;;  %v4847_v25 = vrot.slane %v7249_v4, 1  ;;  %v4623_v23 = vpop.f32.mrb[97].mxu1  ;;  %v5488_v39 = vrot.slane %v5260_v31, 2  ;;  %v7324_v1 = vpop.f32.mrb[226].mxu0 }
 0x37c   : > { %v5697_v3 = vadd.f32 %v9739_v45, %v5626_v7  ;;  %v5698_v9 = vadd.f32 %v9739_v45, %v5627_v61  ;;  %v4843_v38 = vrot.slane %v4623_v23, 1  ;;  %v7250_v16 = vpop.f32.mrb[98].mxu1  ;;  %v5494_v49 = vrot.slane %v7324_v1, 2  ;;  %v5263_v5 = vpop.f32.mrb[227].mxu0 }
 0x37d   : > { %v5489_v40 = vsel %vm1984_vm3, %v5486_v33, %v5488_v39  ;;  %v4849_v0 = vrot.slane %v7250_v16, 1  ;;  %v4626_v44 = vpop.f32.mrb[99].mxu1  ;;  %v5490_v8 = vrot.slane %v5263_v5, 2 }
 0x37e   : > { %5761 = vst [vmem:[%s9748_s19 + $0x180] sm:$0xff] %v5697_v3  ;;  %5762 = vst [vmem:[%s9748_s19 + $0x188] sm:$0xff] %v5698_v9  ;;  %v4844_v17 = vsel %vm1330_vm2, %v4841_v36, %v4843_v38  ;;  %v5629_v11 = vadd.f32 %v5489_v40, %v4976_v42  ;;  %v5495_v46 = vsel %vm1984_vm3, %v5492_v28, %v5494_v49  ;;  %v4845_v6 = vrot.slane %v4626_v44, 1  ;;  %v10313_v3 = vld [vmem:[#allocation45_spill] sm:$0xff] }
 0x37f   : > { %v4980_v45 = vadd.f32 %v10309_v56, %v4844_v17  ;;  %v4850_v21 = vsel %vm1330_vm2, %v4847_v25, %v4849_v0  ;;  %v5632_v52 = vadd.f32 %v5495_v46, %v4979_v20  ;;  %v5491_v10 = vsel %vm1984_vm3, %v5488_v39, %v5490_v8 }
 0x380   : > { %v5700_v50 = vadd.f32 %v10010_v2, %v5629_v11  ;;  %v4983_v35 = vadd.f32 %v9709_v18, %v4850_v21  ;;  %v4846_v19 = vsel %vm1330_vm2, %v4843_v38, %v4845_v6  ;;  %v4848_v30 = vsel %vm1330_vm2, %v4845_v6, %v4847_v25  ;;  %v10312_v25 = vld [vmem:[#allocation11_spill] sm:$0xff]  ;;  %v10314_v38 = vld [vmem:[#allocation12_spill] sm:$0xff] }
 0x381   : > { %v5703_v48 = vadd.f32 %v10010_v2, %v5632_v52  ;;  %v4981_v54 = vadd.f32 %v9711_v32, %v4846_v19  ;;  %v4982_v33 = vadd.f32 %v10310_v24, %v4848_v30  ;;  %v5493_v60 = vsel %vm1984_vm3, %v5490_v8, %v5492_v28  ;;  %v7327_v27 = vpop.f32.mrb[228].mxu0 }
 0x382   : > { %5764 = vst [vmem:[%s9748_s19 + $0x198] sm:$0xff] %v5700_v50  ;;  %v5630_v36 = vadd.f32 %v5491_v10, %v4977_v41  ;;  %v5631_v62 = vadd.f32 %v5493_v60, %v4978_v53  ;;  %v7253_v63 = vpop.f32.mrb[100].mxu1  ;;  %v5276_v55 = vpop.f32.mrb[229].mxu0  ;;  %v5500_v43 = vrot.slane %v7327_v27, 2 }
 0x383   : > { %5767 = vst [vmem:[%s9748_s19 + $0x1b0] sm:$0xff] %v5703_v48  ;;  %v4855_v18 = vrot.slane %v7253_v63, 1  ;;  %v4639_v15 = vpop.f32.mrb[101].mxu1  ;;  %v5496_v59 = vrot.slane %v5276_v55, 2  ;;  %v7328_v12 = vpop.f32.mrb[230].mxu0 }
 0x384   : > { %v5701_v32 = vadd.f32 %v10010_v2, %v5630_v36  ;;  %v5702_v42 = vadd.f32 %v10010_v2, %v5631_v62  ;;  %v4851_v37 = vrot.slane %v4639_v15, 1  ;;  %v7254_v26 = vpop.f32.mrb[102].mxu1  ;;  %v5502_v29 = vrot.slane %v7328_v12, 2  ;;  %v5279_v14 = vpop.f32.mrb[231].mxu0 }
 0x385   : > { %v5497_v20 = vsel %vm1984_vm3, %v5494_v49, %v5496_v59  ;;  %v4857_v47 = vrot.slane %v7254_v26, 1  ;;  %v4642_v51 = vpop.f32.mrb[103].mxu1  ;;  %v5498_v57 = vrot.slane %v5279_v14, 2 }
 0x386   : > { %5765 = vst [vmem:[%s9748_s19 + $0x1a0] sm:$0xff] %v5701_v32  ;;  %5766 = vst [vmem:[%s9748_s19 + $0x1a8] sm:$0xff] %v5702_v42  ;;  %v4852_v58 = vsel %vm1330_vm2, %v4849_v0, %v4851_v37  ;;  %v5633_v41 = vadd.f32 %v5497_v20, %v4980_v45  ;;  %v5503_v13 = vsel %vm1984_vm3, %v5500_v43, %v5502_v29  ;;  %v4853_v53 = vrot.slane %v4642_v51, 1 }
 0x387   : > { %v4984_v34 = vadd.f32 %v10311_v22, %v4852_v58  ;;  %v4858_v7 = vsel %vm1330_vm2, %v4855_v18, %v4857_v47  ;;  %v5636_v61 = vadd.f32 %v5503_v13, %v4983_v35  ;;  %v5499_v4 = vsel %vm1984_vm3, %v5496_v59, %v5498_v57 }
 0x388   : > { %v5704_v31 = vadd.f32 %v10010_v2, %v5633_v41  ;;  %v4987_v28 = vadd.f32 %v10312_v25, %v4858_v7  ;;  %v4854_v23 = vsel %vm1330_vm2, %v4851_v37, %v4853_v53  ;;  %v4856_v39 = vsel %vm1330_vm2, %v4853_v53, %v4855_v18 }
 0x389   : > { %v5707_v1 = vadd.f32 %v10010_v2, %v5636_v61  ;;  %v4985_v9 = vadd.f32 %v10313_v3, %v4854_v23  ;;  %v4986_v16 = vadd.f32 %v10314_v38, %v4856_v39  ;;  %v5501_v49 = vsel %vm1984_vm3, %v5498_v57, %v5500_v43  ;;  %v7331_v5 = vpop.f32.mrb[232].mxu0 }
 0x38a   : > { %5768 = vst [vmem:[%s9748_s19 + $0x1b8] sm:$0xff] %v5704_v31  ;;  %v5634_v40 = vadd.f32 %v5499_v4, %v4981_v54  ;;  %v5635_v0 = vadd.f32 %v5501_v49, %v4982_v33  ;;  %v7257_v44 = vpop.f32.mrb[104].mxu1  ;;  %v5292_v8 = vpop.f32.mrb[233].mxu0  ;;  %v5508_v17 = vrot.slane %v7331_v5, 2  ;;  %v10315_v33 = vld [vmem:[#allocation46_spill] sm:$0xff] }
 0x38b   : > { %5771 = vst [vmem:[%s9748_s19 + $0x1d0] sm:$0xff] %v5707_v1  ;;  %v4655_v11 = vpop.f32.mrb[105].mxu1  ;;  %v5504_v46 = vrot.slane %v5292_v8, 2  ;;  %v7332_v6 = vpop.f32.mrb[234].mxu0 }
 0x38c   : > { %v5705_v56 = vadd.f32 %v10010_v2, %v5634_v40  ;;  %v5706_v45 = vadd.f32 %v10010_v2, %v5635_v0  ;;  %v4859_v21 = vrot.slane %v4655_v11, 1  ;;  %v5510_v52 = vrot.slane %v7332_v6, 2  ;;  %v5295_v10 = vpop.f32.mrb[235].mxu0  ;;  %v7258_v50 = vpop.f32.mrb[106].mxu1 }
 0x38d   : > { %v5505_v35 = vsel %vm1984_vm3, %v5502_v29, %v5504_v46  ;;  %v5506_v19 = vrot.slane %v5295_v10, 2  ;;  %v4658_v30 = vpop.f32.mrb[107].mxu1 }
 0x38e   : > { %5769 = vst [vmem:[%s9748_s19 + $0x1c0] sm:$0xff] %v5705_v56  ;;  %5770 = vst [vmem:[%s9748_s19 + $0x1c8] sm:$0xff] %v5706_v45  ;;  %v4860_v48 = vsel %vm1330_vm2, %v4857_v47, %v4859_v21  ;;  %v5637_v54 = vadd.f32 %v5505_v35, %v4984_v34  ;;  %v5511_v24 = vsel %vm1984_vm3, %v5508_v17, %v5510_v52 }
 0x38f   : > { %v4988_v60 = vadd.f32 %v10315_v33, %v4860_v48  ;;  %v5640_v27 = vadd.f32 %v5511_v24, %v4987_v28  ;;  %v5507_v36 = vsel %vm1984_vm3, %v5504_v46, %v5506_v19  ;;  %v5509_v62 = vsel %vm1984_vm3, %v5506_v19, %v5508_v17 }
 0x390   : > { %v5708_v63 = vadd.f32 %v10010_v2, %v5637_v54  ;;  %v5638_v55 = vadd.f32 %v5507_v36, %v4985_v9  ;;  %v5639_v18 = vadd.f32 %v5509_v62, %v4986_v16 }
 0x391   : > { %v5711_v43 = vadd.f32 %v10010_v2, %v5640_v27  ;;  %v7335_v15 = vpop.f32.mrb[236].mxu0 }
 0x392   : > { %5772 = vst [vmem:[%s9748_s19 + $0x1d8] sm:$0xff] %v5708_v63  ;;  %v5709_v59 = vadd.f32 %v10010_v2, %v5638_v55  ;;  %v5710_v12 = vadd.f32 %v10010_v2, %v5639_v18  ;;  %v5308_v32 = vpop.f32.mrb[237].mxu0 }
 0x393   : > { %5775 = vst [vmem:[%s9748_s19 + $0x1f0] sm:$0xff] %v5711_v43  ;;  %v5512_v42 = vrot.slane %v5308_v32, 2  ;;  %v7336_v37 = vpop.f32.mrb[238].mxu0 }
 0x394   : > { %5773 = vst [vmem:[%s9748_s19 + $0x1e0] sm:$0xff] %v5709_v59  ;;  %5774 = vst [vmem:[%s9748_s19 + $0x1e8] sm:$0xff] %v5710_v12  ;;  %v5311_v26 = vpop.f32.mrb[239].mxu0 }
 0x395   : > { %v5513_v29 = vsel %vm1984_vm3, %v5510_v52, %v5512_v42 }
 0x396   : > { %v5641_v14 = vadd.f32 %v5513_v29, %v4988_v60 }
 0x398   : > { %v5712_v20 = vadd.f32 %v10010_v2, %v5641_v14 }
 0x39a   : > { %5776 = vst [vmem:[%s9748_s19 + $0x1f8] sm:$0xff] %v5712_v20 }
 0x39b PF: > { %s13_s14 = sadd.s32 1, %s7858_s14   ;;  %s10316_s12 = smov %s7854_s13 }
 0x39c   : > { %p10_p5 = scmp.ge.s32.totalorder %s13_s14, 4   ;;  %s10317_s13 = smov %s10319_s15 }
 0x39e   :  { %12 = sbr.rel (!%p10_p5) target bundleno = 2 (0x2), region = 76 }

</bundles_post_ra>
